<compile_context>
chip_gen: v6e
topology: v6e:2x2x1
jax: 0.10.0
libtpu: 0.0.40
codegen_flags: <defaults>
</compile_context>

<pallas_src>
import functools

import jax
import jax.numpy as jnp
from jax.experimental import pallas as pl
from jax.experimental.pallas import tpu as pltpu


# ----------------------------------------------------------------------------
# small helpers
# ----------------------------------------------------------------------------
def _round_up(x, m):
    return ((x + m - 1) // m) * m


def _vmem_limit(working_set_bytes):
    # generous headroom, clamped so it is valid on v5e/v6e (128 MiB) and v7x (64 MiB)
    return int(min(max(2 * working_set_bytes + (4 << 20), 32 << 20), 48 << 20))


# ----------------------------------------------------------------------------
# Pallas kernel 1: tiled matmul + bias (+ReLU)   (all convolutions)
# ----------------------------------------------------------------------------
def _matmul_bias_kernel(a_ref, w_ref, b_ref, o_ref, acc_ref, *, apply_relu):
    """One (tm, tn) output tile; K is the innermost ("arbitrary") grid axis."""

    @pl.when(pl.program_id(2) == 0)
    def _():
        acc_ref[...] = jnp.zeros_like(acc_ref)

    acc_ref[...] += jnp.dot(a_ref[...], w_ref[...],
                            preferred_element_type=jnp.float32)

    @pl.when(pl.program_id(2) == pl.num_programs(2) - 1)
    def _():
        y = acc_ref[...] + b_ref[...]
        if apply_relu:
            y = jnp.maximum(y, 0.0)
        o_ref[...] = y.astype(o_ref.dtype)


def matmul_bias(a, w, b, apply_relu=False):
    """relu?(a @ w + b): bf16 MXU inputs, f32 accumulation, padded K/N tiles."""
    M, K = a.shape
    K2, N = w.shape
    assert K == K2

    # padded sizes & tile sizes (lane-dense N, aligned K, VMEM-friendly tiles)
    Kp = _round_up(K, 128)
    Np = _round_up(N, 128)
    if M >= 256:
        tm, Mp = 256, _round_up(M, 256)
    elif M >= 128:
        tm, Mp = 128, _round_up(M, 128)
    else:
        Mp = _round_up(M, 8)
        tm = Mp
    tk = 256 if Kp % 256 == 0 else 128
    tn = 256 if Np % 256 == 0 else 128

    a_p = a.astype(jnp.bfloat16)
    if (Mp, Kp) != (M, K):
        a_p = jnp.pad(a_p, ((0, Mp - M), (0, Kp - K)))
    w_p = w.astype(jnp.bfloat16)
    if (Kp, Np) != (K, N):
        w_p = jnp.pad(w_p, ((0, Kp - K), (0, Np - N)))
    b_p = b.astype(jnp.float32).reshape(1, N)
    if Np != N:
        b_p = jnp.pad(b_p, ((0, 0), (0, Np - N)))

    grid = (Mp // tm, Np // tn, Kp // tk)
    working = (2 * (tm * tk * 2 + tk * tn * 2 + tn * 4)   # double-buffered A/W/bias
               + 2 * tm * tn * 4                           # double-buffered output
               + tm * tn * 4)                              # accumulator scratch

    out = pl.pallas_call(
        functools.partial(_matmul_bias_kernel, apply_relu=apply_relu),
        out_shape=jax.ShapeDtypeStruct((Mp, Np), jnp.float32),
        grid=grid,
        in_specs=[
            pl.BlockSpec((tm, tk), lambda i, j, k: (i, k)),
            pl.BlockSpec((tk, tn), lambda i, j, k: (k, j)),
            pl.BlockSpec((1, tn), lambda i, j, k: (0, j)),
        ],
        out_specs=pl.BlockSpec((tm, tn), lambda i, j, k: (i, j)),
        scratch_shapes=[pltpu.VMEM((tm, tn), jnp.float32)],
        compiler_params=pltpu.CompilerParams(
            dimension_semantics=("parallel", "parallel", "arbitrary"),
            vmem_limit_bytes=_vmem_limit(working)),
        cost_estimate=pl.CostEstimate(
            flops=2 * Mp * Np * Kp,
            transcendentals=0,
            bytes_accessed=Mp * Kp * 2 + Kp * Np * 2 + Mp * Np * 4),
    )(a_p, w_p, b_p)

    if (Mp, Np) != (M, N):
        out = out[:M, :N]
    return out


# ----------------------------------------------------------------------------
# Pallas kernels 2+3: two-pass tiled instance norm (+ fused residual add)
# ----------------------------------------------------------------------------
def _in_stats_kernel(x_ref, sum_ref, sq_ref):
    """Accumulate per-(sample, channel) sum and sum^2 over HW tiles."""

    @pl.when(pl.program_id(1) == 0)
    def _():
        sum_ref[...] = jnp.zeros_like(sum_ref)
        sq_ref[...] = jnp.zeros_like(sq_ref)

    x = x_ref[...]                                   # (1, thw, C)
    sum_ref[...] += jnp.sum(x, axis=1, keepdims=True)
    sq_ref[...] += jnp.sum(x * x, axis=1, keepdims=True)


def _in_norm_kernel(*refs, inv_count, eps, apply_relu, has_residual):
    if has_residual:
        x_ref, sum_ref, sq_ref, g_ref, b_ref, res_ref, o_ref = refs
    else:
        x_ref, sum_ref, sq_ref, g_ref, b_ref, o_ref = refs
        res_ref = None

    x = x_ref[...]                                   # (1, thw, C)
    mean = sum_ref[...] * inv_count                  # (1, 1, C)
    var = sq_ref[...] * inv_count - mean * mean      # biased variance (PyTorch)
    var = jnp.maximum(var, 0.0)
    inv = jax.lax.rsqrt(var + eps)
    y = (x - mean) * (inv * g_ref[...]) + b_ref[...]
    if apply_relu:
        y = jnp.maximum(y, 0.0)
    if res_ref is not None:                          # fused residual add
        y = y + res_ref[...]
    o_ref[...] = y.astype(o_ref.dtype)


def instance_norm(x, gamma, beta, apply_relu=False, residual=None, eps=1e-5):
    N, H, W, C = x.shape
    HW = H * W
    thw = _round_up(HW, 8) if HW <= 2048 else 1024
    HWp = _round_up(HW, thw)
    n_t = HWp // thw

    def _prep(t):
        t = t.reshape(N, HW, C).astype(jnp.float32)
        if HWp != HW:
            t = jnp.pad(t, ((0, 0), (0, HWp - HW), (0, 0)))
        return t

    xr = _prep(x)
    tile_bytes = thw * C * 4
    stat_bytes = C * 4

    # ---- pass 1: per-(n, c) sums over HW tiles ------------------------------
    sums, sqs = pl.pallas_call(
        _in_stats_kernel,
        out_shape=(jax.ShapeDtypeStruct((N, 1, C), jnp.float32),
                   jax.ShapeDtypeStruct((N, 1, C), jnp.float32)),
        grid=(N, n_t),
        in_specs=[pl.BlockSpec((1, thw, C), lambda n, t: (n, t, 0))],
        out_specs=(pl.BlockSpec((1, 1, C), lambda n, t: (n, 0, 0)),
                   pl.BlockSpec((1, 1, C), lambda n, t: (n, 0, 0))),
        compiler_params=pltpu.CompilerParams(
            dimension_semantics=("parallel", "arbitrary"),
            vmem_limit_bytes=_vmem_limit(2 * tile_bytes + 4 * stat_bytes)),
    )(xr)

    # ---- pass 2: normalize + affine (+ReLU) (+fused residual add) -----------
    gb = gamma.reshape(1, C).astype(jnp.float32)
    bb = beta.reshape(1, C).astype(jnp.float32)
    inputs = [xr, sums, sqs, gb, bb]
    in_specs = [
        pl.BlockSpec((1, thw, C), lambda n, t: (n, t, 0)),
        pl.BlockSpec((1, 1, C), lambda n, t: (n, 0, 0)),
        pl.BlockSpec((1, 1, C), lambda n, t: (n, 0, 0)),
        pl.BlockSpec((1, C), lambda n, t: (0, 0)),
        pl.BlockSpec((1, C), lambda n, t: (0, 0)),
    ]
    has_res = residual is not None
    if has_res:
        inputs.append(_prep(residual))
        in_specs.append(pl.BlockSpec((1, thw, C), lambda n, t: (n, t, 0)))

    y = pl.pallas_call(
        functools.partial(_in_norm_kernel, inv_count=1.0 / HW, eps=eps,
                          apply_relu=apply_relu, has_residual=has_res),
        out_shape=jax.ShapeDtypeStruct((N, HWp, C), jnp.float32),
        grid=(N, n_t),
        in_specs=in_specs,
        out_specs=pl.BlockSpec((1, thw, C), lambda n, t: (n, t, 0)),
        compiler_params=pltpu.CompilerParams(
            dimension_semantics=("parallel", "parallel"),
            vmem_limit_bytes=_vmem_limit((3 + 2 * int(has_res)) * 2 * tile_bytes)),
    )(*inputs)

    if HWp != HW:
        y = y[:, :HW, :]
    return y.reshape(N, H, W, C)


# ----------------------------------------------------------------------------
# Convolution wrapper: reflection-pad + (optional nearest-2x upsample) + conv.
# The pad / upsample are folded into the im2col gather indices, so neither is
# materialized; the gathered patches are produced directly in bf16.
# ----------------------------------------------------------------------------
def _reflect_index(j, L):
    j = jnp.where(j < 0, -j, j)
    j = jnp.where(j >= L, 2 * L - 2 - j, j)
    return j


def conv2d_reflect(x, w, b, stride=1, upsample=1, apply_relu=False):
    """x: (N, H, W, Cin) NHWC.  w: (Cout, Cin, K, K) PyTorch layout.  b: (Cout,)."""
    N, H, W, Cin = x.shape
    Cout, _, K, _ = w.shape
    p = K // 2
    Hu, Wu = H * upsample, W * upsample
    Ho = (Hu + 2 * p - K) // stride + 1
    Wo = (Wu + 2 * p - K) // stride + 1

    # tap indices into the (conceptually) upsampled-and-reflect-padded image,
    # mapped back onto the original tensor
    oh = jnp.arange(Ho)[:, None] * stride + jnp.arange(K)[None, :] - p   # (Ho, K)
    ow = jnp.arange(Wo)[:, None] * stride + jnp.arange(K)[None, :] - p   # (Wo, K)
    rows = _reflect_index(oh, Hu) // upsample
    cols = _reflect_index(ow, Wu) // upsample

    xb = x.astype(jnp.bfloat16)                       # halve im2col HBM traffic
    g = xb[:, rows, :, :]                             # (N, Ho, K, W, Cin)
    g = g[:, :, :, cols, :]                           # (N, Ho, K, Wo, K, Cin)
    patches = jnp.transpose(g, (0, 1, 3, 2, 4, 5))    # (N, Ho, Wo, K, K, Cin)
    a = patches.reshape(N * Ho * Wo, K * K * Cin)

    w_mat = jnp.transpose(w, (2, 3, 1, 0)).reshape(K * K * Cin, Cout)
    out = matmul_bias(a, w_mat, b, apply_relu=apply_relu)   # Pallas MXU kernel
    return out.reshape(N, Ho, Wo, Cout)


# ----------------------------------------------------------------------------
# Parameter construction (deterministic, synthetic)
# ----------------------------------------------------------------------------
def _conv_params(key, cout, cin, k):
    kw_key, kb_key = jax.random.split(key)
    fan_in = cin * k * k
    scale = 1.0 / jnp.sqrt(jnp.float32(fan_in))
    w = jax.random.normal(kw_key, (cout, cin, k, k), jnp.float32) * scale
    b = jax.random.normal(kb_key, (cout,), jnp.float32) * 0.01
    return w, b


def make_params(seed=0):
    key = jax.random.PRNGKey(seed)
    p = {}

    def inst_params(c):
        # PyTorch InstanceNorm2d(affine=True) init: weight=1, bias=0
        return jnp.ones((c,), jnp.float32), jnp.zeros((c,), jnp.float32)

    keys = jax.random.split(key, 32)
    ki = iter(range(32))

    p["conv1_w"], p["conv1_b"] = _conv_params(keys[next(ki)], 32, 3, 9)
    p["inst1_g"], p["inst1_b"] = inst_params(32)
    p["conv2_w"], p["conv2_b"] = _conv_params(keys[next(ki)], 64, 32, 3)
    p["inst2_g"], p["inst2_b"] = inst_params(64)
    p["conv3_w"], p["conv3_b"] = _conv_params(keys[next(ki)], 128, 64, 3)
    p["inst3_g"], p["inst3_b"] = inst_params(128)

    for i in range(1, 6):
        p[f"res{i}_conv1_w"], p[f"res{i}_conv1_b"] = _conv_params(keys[next(ki)], 128, 128, 3)
        p[f"res{i}_inst1_g"], p[f"res{i}_inst1_b"] = inst_params(128)
        p[f"res{i}_conv2_w"], p[f"res{i}_conv2_b"] = _conv_params(keys[next(ki)], 128, 128, 3)
        p[f"res{i}_inst2_g"], p[f"res{i}_inst2_b"] = inst_params(128)

    p["up1_w"], p["up1_b"] = _conv_params(keys[next(ki)], 64, 128, 3)
    p["up2_w"], p["up2_b"] = _conv_params(keys[next(ki)], 32, 64, 3)
    p["up3_w"], p["up3_b"] = _conv_params(keys[next(ki)], 3, 32, 9)
    return p


# ----------------------------------------------------------------------------
# Full forward pass (mirrors Transformer.forward exactly)
# ----------------------------------------------------------------------------
def transformer_forward(x_nchw, p):
    x = jnp.transpose(x_nchw, (0, 2, 3, 1))  # NCHW -> NHWC

    x = instance_norm(conv2d_reflect(x, p["conv1_w"], p["conv1_b"], stride=1),
                      p["inst1_g"], p["inst1_b"], apply_relu=True)
    x = instance_norm(conv2d_reflect(x, p["conv2_w"], p["conv2_b"], stride=2),
                      p["inst2_g"], p["inst2_b"], apply_relu=True)
    x = instance_norm(conv2d_reflect(x, p["conv3_w"], p["conv3_b"], stride=2),
                      p["inst3_g"], p["inst3_b"], apply_relu=True)

    # 5 residual blocks; the `resident + x` add is fused into the 2nd norm kernel
    for i in range(1, 6):
        resident = x
        y = instance_norm(
            conv2d_reflect(x, p[f"res{i}_conv1_w"], p[f"res{i}_conv1_b"]),
            p[f"res{i}_inst1_g"], p[f"res{i}_inst1_b"], apply_relu=True)
        x = instance_norm(
            conv2d_reflect(y, p[f"res{i}_conv2_w"], p[f"res{i}_conv2_b"]),
            p[f"res{i}_inst2_g"], p[f"res{i}_inst2_b"], apply_relu=False,
            residual=resident)

    # UpsampleConvLayer: nearest-2x folded into the conv gather; the inner ReLU
    # of UpsampleConvLayer makes the extra outer ReLU in Transformer.forward
    # idempotent, so one ReLU suffices (matches the reference, incl. up3).
    x = conv2d_reflect(x, p["up1_w"], p["up1_b"], stride=1, upsample=2, apply_relu=True)
    x = conv2d_reflect(x, p["up2_w"], p["up2_b"], stride=1, upsample=2, apply_relu=True)
    x = conv2d_reflect(x, p["up3_w"], p["up3_b"], stride=1, apply_relu=True)

    return jnp.transpose(x, (0, 3, 1, 2))  # NHWC -> NCHW


# ----------------------------------------------------------------------------
if __name__ == "__main__":
    key = jax.random.PRNGKey(0)
    # min input size per the module docstring is (1, 3, 16, 16); use batch=2.
    x = jax.random.normal(key, (2, 3, 16, 16), jnp.float32)  # NCHW like PyTorch
    params = make_params(seed=0)

    fwd = jax.jit(transformer_forward)
    out = fwd(x, params)
    out = jax.block_until_ready(out)

    assert out.shape == (2, 3, 16, 16), out.shape
    assert bool(jnp.all(jnp.isfinite(out)))
    print("KERNEL_OK")
</pallas_src>

<mosaic_0001>
module attributes {stable_mosaic.version = 11 : i64} {
  func.func @_matmul_bias_kernel(%arg0: i32, %arg1: i32, %arg2: i32, %arg3: memref<256x256xbf16, #tpu.memory_space<vmem>>, %arg4: memref<256x128xbf16, #tpu.memory_space<vmem>>, %arg5: memref<1x128xf32, #tpu.memory_space<vmem>>, %arg6: memref<256x128xf32, #tpu.memory_space<vmem>>, %arg7: memref<256x128xf32, #tpu.memory_space<vmem>>) attributes {dimension_semantics = [#tpu.dimension_semantics<parallel>, #tpu.dimension_semantics<parallel>, #tpu.dimension_semantics<arbitrary>], iteration_bounds = array<i64: 2, 1, 1>, scalar_prefetch = 0 : i64, scratch_operands = 1 : i64, tpu.core_type = #tpu.core_type<tc>, window_params = [{transform_indices = @transform_0, window_bounds = array<i64: 256, 256>}, {transform_indices = @transform_1, window_bounds = array<i64: 256, 128>}, {transform_indices = @transform_2, window_bounds = array<i64: 1, 128>}, {transform_indices = @transform_3, window_bounds = array<i64: 256, 128>}]} {
    %c0_i32 = arith.constant 0 : i32
    %0 = arith.cmpi eq, %arg2, %c0_i32 : i32
    %1 = arith.extui %0 : i1 to i32
    %c0_i32_0 = arith.constant 0 : i32
    %2 = arith.cmpi ne, %1, %c0_i32_0 : i32
    scf.if %2 {
      %cst_10 = arith.constant 0.000000e+00 : f32
      %12 = vector.broadcast %cst_10 : f32 to vector<256x128xf32>
      %c0_11 = arith.constant 0 : index
      %c0_12 = arith.constant 0 : index
      %13 = vector.load %arg7[%c0_11, %c0_12] : memref<256x128xf32, #tpu.memory_space<vmem>>, vector<256x128xf32>
      tpu.vector_store %arg7[%c0_11, %c0_12], %12 {strides = array<i32>} : memref<256x128xf32, #tpu.memory_space<vmem>>, vector<256x128xf32>,
    } else {
    }
    %c0 = arith.constant 0 : index
    %c0_1 = arith.constant 0 : index
    %3 = vector.load %arg7[%c0, %c0_1] : memref<256x128xf32, #tpu.memory_space<vmem>>, vector<256x128xf32>
    %c0_2 = arith.constant 0 : index
    %c0_3 = arith.constant 0 : index
    %4 = vector.load %arg3[%c0_2, %c0_3] : memref<256x256xbf16, #tpu.memory_space<vmem>>, vector<256x256xbf16>
    %c0_4 = arith.constant 0 : index
    %c0_5 = arith.constant 0 : index
    %5 = vector.load %arg4[%c0_4, %c0_5] : memref<256x128xbf16, #tpu.memory_space<vmem>>, vector<256x128xbf16>
    %cst = arith.constant dense<0.000000e+00> : vector<256x128xf32>
    %6 = tpu.matmul %4, %5, %cst {dimension_numbers = #tpu.dot_dimension_numbers<[1], [0], [0], [1], [0, 0, 1, 1], [], []>} : vector<256x256xbf16>, vector<256x128xbf16>, vector<256x128xf32> -> vector<256x128xf32>
    %7 = arith.addf %3, %6 : vector<256x128xf32>
    %c0_6 = arith.constant 0 : index
    %c0_7 = arith.constant 0 : index
    %8 = vector.load %arg7[%c0_6, %c0_7] : memref<256x128xf32, #tpu.memory_space<vmem>>, vector<256x128xf32>
    tpu.vector_store %arg7[%c0_6, %c0_7], %7 {strides = array<i32>} : memref<256x128xf32, #tpu.memory_space<vmem>>, vector<256x128xf32>,
    %c0_i32_8 = arith.constant 0 : i32
    %9 = arith.cmpi eq, %arg2, %c0_i32_8 : i32
    %10 = arith.extui %9 : i1 to i32
    %c0_i32_9 = arith.constant 0 : i32
    %11 = arith.cmpi ne, %10, %c0_i32_9 : i32
    scf.if %11 {
      %c0_10 = arith.constant 0 : index
      %c0_11 = arith.constant 0 : index
      %12 = vector.load %arg7[%c0_10, %c0_11] : memref<256x128xf32, #tpu.memory_space<vmem>>, vector<256x128xf32>
      %c0_12 = arith.constant 0 : index
      %c0_13 = arith.constant 0 : index
      %13 = vector.load %arg5[%c0_12, %c0_13] : memref<1x128xf32, #tpu.memory_space<vmem>>, vector<1x128xf32>
      %14 = vector.broadcast %13 : vector<1x128xf32> to vector<256x128xf32>
      %15 = arith.addf %12, %14 : vector<256x128xf32>
      %c0_14 = arith.constant 0 : index
      %c0_15 = arith.constant 0 : index
      %16 = vector.load %arg6[%c0_14, %c0_15] : memref<256x128xf32, #tpu.memory_space<vmem>>, vector<256x128xf32>
      tpu.vector_store %arg6[%c0_14, %c0_15], %15 {strides = array<i32>} : memref<256x128xf32, #tpu.memory_space<vmem>>, vector<256x128xf32>,
    } else {
    }
    return
  }
  func.func @transform_0(%arg0: i32, %arg1: i32, %arg2: i32) -> (i32, i32) {
    %c0_i32 = arith.constant 0 : i32
    return %arg0, %arg2 : i32, i32
  }
  func.func @transform_1(%arg0: i32, %arg1: i32, %arg2: i32) -> (i32, i32) {
    %c0_i32 = arith.constant 0 : i32
    return %arg2, %arg1 : i32, i32
  }
  func.func @transform_2(%arg0: i32, %arg1: i32, %arg2: i32) -> (i32, i32) {
    %c0_i32 = arith.constant 0 : i32
    %c0_i32_0 = arith.constant 0 : i32
    return %c0_i32, %arg1 : i32, i32
  }
  func.func @transform_3(%arg0: i32, %arg1: i32, %arg2: i32) -> (i32, i32) {
    %c0_i32 = arith.constant 0 : i32
    return %arg0, %arg1 : i32, i32
  }
}

module attributes {stable_mosaic.version = 11 : i64} {
  func.func @_in_stats_kernel(%arg0: i32, %arg1: i32, %arg2: memref<1x256x32xf32, #tpu.memory_space<vmem>>, %arg3: memref<1x1x32xf32, #tpu.memory_space<vmem>>, %arg4: memref<1x1x32xf32, #tpu.memory_space<vmem>>) attributes {dimension_semantics = [#tpu.dimension_semantics<parallel>, #tpu.dimension_semantics<arbitrary>], iteration_bounds = array<i64: 2, 1>, scalar_prefetch = 0 : i64, scratch_operands = 0 : i64, tpu.core_type = #tpu.core_type<tc>, window_params = [{transform_indices = @transform_0, window_bounds = array<i64: 1, 256, 32>}, {transform_indices = @transform_1, window_bounds = array<i64: 1, 1, 32>}, {transform_indices = @transform_2, window_bounds = array<i64: 1, 1, 32>}]} {
    %c0_i32 = arith.constant 0 : i32
    %0 = arith.cmpi eq, %arg1, %c0_i32 : i32
    %1 = arith.extui %0 : i1 to i32
    %c0_i32_0 = arith.constant 0 : i32
    %2 = arith.cmpi ne, %1, %c0_i32_0 : i32
    scf.if %2 {
      %cst_16 = arith.constant 0.000000e+00 : f32
      %15 = vector.broadcast %cst_16 : f32 to vector<1x1x32xf32>
      %c0_17 = arith.constant 0 : index
      %c0_18 = arith.constant 0 : index
      %c0_19 = arith.constant 0 : index
      %16 = vector.load %arg3[%c0_17, %c0_18, %c0_19] : memref<1x1x32xf32, #tpu.memory_space<vmem>>, vector<1x1x32xf32>
      tpu.vector_store %arg3[%c0_17, %c0_18, %c0_19], %15 {strides = array<i32>} : memref<1x1x32xf32, #tpu.memory_space<vmem>>, vector<1x1x32xf32>,
      %cst_20 = arith.constant 0.000000e+00 : f32
      %17 = vector.broadcast %cst_20 : f32 to vector<1x1x32xf32>
      %c0_21 = arith.constant 0 : index
      %c0_22 = arith.constant 0 : index
      %c0_23 = arith.constant 0 : index
      %18 = vector.load %arg4[%c0_21, %c0_22, %c0_23] : memref<1x1x32xf32, #tpu.memory_space<vmem>>, vector<1x1x32xf32>
      tpu.vector_store %arg4[%c0_21, %c0_22, %c0_23], %17 {strides = array<i32>} : memref<1x1x32xf32, #tpu.memory_space<vmem>>, vector<1x1x32xf32>,
    } else {
    }
    %c0 = arith.constant 0 : index
    %c0_1 = arith.constant 0 : index
    %c0_2 = arith.constant 0 : index
    %3 = vector.load %arg2[%c0, %c0_1, %c0_2] : memref<1x256x32xf32, #tpu.memory_space<vmem>>, vector<1x256x32xf32>
    %c0_3 = arith.constant 0 : index
    %c0_4 = arith.constant 0 : index
    %c0_5 = arith.constant 0 : index
    %4 = vector.load %arg3[%c0_3, %c0_4, %c0_5] : memref<1x1x32xf32, #tpu.memory_space<vmem>>, vector<1x1x32xf32>
    %cst = arith.constant dense<0.000000e+00> : vector<1x32xf32>
    %5 = vector.multi_reduction <add>, %3, %cst [1] : vector<1x256x32xf32> to vector<1x32xf32>
    %6 = vector.shape_cast %5 : vector<1x32xf32> to vector<1x1x32xf32>
    %7 = arith.addf %4, %6 : vector<1x1x32xf32>
    %c0_6 = arith.constant 0 : index
    %c0_7 = arith.constant 0 : index
    %c0_8 = arith.constant 0 : index
    %8 = vector.load %arg3[%c0_6, %c0_7, %c0_8] : memref<1x1x32xf32, #tpu.memory_space<vmem>>, vector<1x1x32xf32>
    tpu.vector_store %arg3[%c0_6, %c0_7, %c0_8], %7 {strides = array<i32>} : memref<1x1x32xf32, #tpu.memory_space<vmem>>, vector<1x1x32xf32>,
    %c0_9 = arith.constant 0 : index
    %c0_10 = arith.constant 0 : index
    %c0_11 = arith.constant 0 : index
    %9 = vector.load %arg4[%c0_9, %c0_10, %c0_11] : memref<1x1x32xf32, #tpu.memory_space<vmem>>, vector<1x1x32xf32>
    %10 = arith.mulf %3, %3 : vector<1x256x32xf32>
    %cst_12 = arith.constant dense<0.000000e+00> : vector<1x32xf32>
    %11 = vector.multi_reduction <add>, %10, %cst_12 [1] : vector<1x256x32xf32> to vector<1x32xf32>
    %12 = vector.shape_cast %11 : vector<1x32xf32> to vector<1x1x32xf32>
    %13 = arith.addf %9, %12 : vector<1x1x32xf32>
    %c0_13 = arith.constant 0 : index
    %c0_14 = arith.constant 0 : index
    %c0_15 = arith.constant 0 : index
    %14 = vector.load %arg4[%c0_13, %c0_14, %c0_15] : memref<1x1x32xf32, #tpu.memory_space<vmem>>, vector<1x1x32xf32>
    tpu.vector_store %arg4[%c0_13, %c0_14, %c0_15], %13 {strides = array<i32>} : memref<1x1x32xf32, #tpu.memory_space<vmem>>, vector<1x1x32xf32>,
    return
  }
  func.func @transform_0(%arg0: i32, %arg1: i32) -> (i32, i32, i32) {
    %c0_i32 = arith.constant 0 : i32
    %c0_i32_0 = arith.constant 0 : i32
    return %arg0, %arg1, %c0_i32 : i32, i32, i32
  }
  func.func @transform_1(%arg0: i32, %arg1: i32) -> (i32, i32, i32) {
    %c0_i32 = arith.constant 0 : i32
    %c0_i32_0 = arith.constant 0 : i32
    %c0_i32_1 = arith.constant 0 : i32
    return %arg0, %c0_i32, %c0_i32_0 : i32, i32, i32
  }
  func.func @transform_2(%arg0: i32, %arg1: i32) -> (i32, i32, i32) {
    %c0_i32 = arith.constant 0 : i32
    %c0_i32_0 = arith.constant 0 : i32
    %c0_i32_1 = arith.constant 0 : i32
    return %arg0, %c0_i32, %c0_i32_0 : i32, i32, i32
  }
}

module attributes {stable_mosaic.version = 11 : i64} {
  func.func @_in_norm_kernel(%arg0: i32, %arg1: i32, %arg2: memref<1x256x32xf32, #tpu.memory_space<vmem>>, %arg3: memref<1x1x32xf32, #tpu.memory_space<vmem>>, %arg4: memref<1x1x32xf32, #tpu.memory_space<vmem>>, %arg5: memref<1x32xf32, #tpu.memory_space<vmem>>, %arg6: memref<1x32xf32, #tpu.memory_space<vmem>>, %arg7: memref<1x256x32xf32, #tpu.memory_space<vmem>>) attributes {dimension_semantics = [#tpu.dimension_semantics<parallel>, #tpu.dimension_semantics<parallel>], iteration_bounds = array<i64: 2, 1>, scalar_prefetch = 0 : i64, scratch_operands = 0 : i64, tpu.core_type = #tpu.core_type<tc>, window_params = [{transform_indices = @transform_0, window_bounds = array<i64: 1, 256, 32>}, {transform_indices = @transform_1, window_bounds = array<i64: 1, 1, 32>}, {transform_indices = @transform_2, window_bounds = array<i64: 1, 1, 32>}, {pipeline_mode = #tpu.pipeline_mode<synchronous>, transform_indices = @transform_3, window_bounds = array<i64: 1, 32>}, {pipeline_mode = #tpu.pipeline_mode<synchronous>, transform_indices = @transform_4, window_bounds = array<i64: 1, 32>}, {transform_indices = @transform_5, window_bounds = array<i64: 1, 256, 32>}]} {
    %c0 = arith.constant 0 : index
    %c0_0 = arith.constant 0 : index
    %c0_1 = arith.constant 0 : index
    %0 = vector.load %arg2[%c0, %c0_0, %c0_1] : memref<1x256x32xf32, #tpu.memory_space<vmem>>, vector<1x256x32xf32>
    %c0_2 = arith.constant 0 : index
    %c0_3 = arith.constant 0 : index
    %c0_4 = arith.constant 0 : index
    %1 = vector.load %arg3[%c0_2, %c0_3, %c0_4] : memref<1x1x32xf32, #tpu.memory_space<vmem>>, vector<1x1x32xf32>
    %cst = arith.constant 3.906250e-03 : f32
    %2 = vector.broadcast %cst : f32 to vector<1x1x32xf32>
    %3 = arith.mulf %1, %2 : vector<1x1x32xf32>
    %c0_5 = arith.constant 0 : index
    %c0_6 = arith.constant 0 : index
    %c0_7 = arith.constant 0 : index
    %4 = vector.load %arg4[%c0_5, %c0_6, %c0_7] : memref<1x1x32xf32, #tpu.memory_space<vmem>>, vector<1x1x32xf32>
    %cst_8 = arith.constant 3.906250e-03 : f32
    %5 = vector.broadcast %cst_8 : f32 to vector<1x1x32xf32>
    %6 = arith.mulf %4, %5 : vector<1x1x32xf32>
    %7 = arith.mulf %3, %3 : vector<1x1x32xf32>
    %8 = arith.subf %6, %7 : vector<1x1x32xf32>
    %cst_9 = arith.constant 0.000000e+00 : f32
    %9 = vector.broadcast %cst_9 : f32 to vector<1x1x32xf32>
    %10 = arith.maximumf %8, %9 : vector<1x1x32xf32>
    %cst_10 = arith.constant 9.99999974E-6 : f32
    %11 = vector.broadcast %cst_10 : f32 to vector<1x1x32xf32>
    %12 = arith.addf %10, %11 : vector<1x1x32xf32>
    %13 = math.rsqrt %12 : vector<1x1x32xf32>
    %14 = vector.broadcast %3 : vector<1x1x32xf32> to vector<1x256x32xf32>
    %15 = arith.subf %0, %14 : vector<1x256x32xf32>
    %c0_11 = arith.constant 0 : index
    %c0_12 = arith.constant 0 : index
    %16 = vector.load %arg5[%c0_11, %c0_12] : memref<1x32xf32, #tpu.memory_space<vmem>>, vector<1x32xf32>
    %17 = vector.shape_cast %16 : vector<1x32xf32> to vector<1x1x32xf32>
    %18 = arith.mulf %13, %17 : vector<1x1x32xf32>
    %19 = vector.broadcast %18 : vector<1x1x32xf32> to vector<1x256x32xf32>
    %20 = arith.mulf %15, %19 : vector<1x256x32xf32>
    %c0_13 = arith.constant 0 : index
    %c0_14 = arith.constant 0 : index
    %21 = vector.load %arg6[%c0_13, %c0_14] : memref<1x32xf32, #tpu.memory_space<vmem>>, vector<1x32xf32>
    %22 = vector.shape_cast %21 : vector<1x32xf32> to vector<1x1x32xf32>
    %23 = vector.broadcast %22 : vector<1x1x32xf32> to vector<1x256x32xf32>
    %24 = arith.addf %20, %23 : vector<1x256x32xf32>
    %cst_15 = arith.constant 0.000000e+00 : f32
    %25 = vector.broadcast %cst_15 : f32 to vector<1x256x32xf32>
    %26 = arith.maximumf %24, %25 : vector<1x256x32xf32>
    %c0_16 = arith.constant 0 : index
    %c0_17 = arith.constant 0 : index
    %c0_18 = arith.constant 0 : index
    %27 = vector.load %arg7[%c0_16, %c0_17, %c0_18] : memref<1x256x32xf32, #tpu.memory_space<vmem>>, vector<1x256x32xf32>
    tpu.vector_store %arg7[%c0_16, %c0_17, %c0_18], %26 {strides = array<i32>} : memref<1x256x32xf32, #tpu.memory_space<vmem>>, vector<1x256x32xf32>,
    return
  }
  func.func @transform_0(%arg0: i32, %arg1: i32) -> (i32, i32, i32) {
    %c0_i32 = arith.constant 0 : i32
    %c0_i32_0 = arith.constant 0 : i32
    return %arg0, %arg1, %c0_i32 : i32, i32, i32
  }
  func.func @transform_1(%arg0: i32, %arg1: i32) -> (i32, i32, i32) {
    %c0_i32 = arith.constant 0 : i32
    %c0_i32_0 = arith.constant 0 : i32
    %c0_i32_1 = arith.constant 0 : i32
    return %arg0, %c0_i32, %c0_i32_0 : i32, i32, i32
  }
  func.func @transform_2(%arg0: i32, %arg1: i32) -> (i32, i32, i32) {
    %c0_i32 = arith.constant 0 : i32
    %c0_i32_0 = arith.constant 0 : i32
    %c0_i32_1 = arith.constant 0 : i32
    return %arg0, %c0_i32, %c0_i32_0 : i32, i32, i32
  }
  func.func @transform_3(%arg0: i32, %arg1: i32) -> (i32, i32) {
    %c0_i32 = arith.constant 0 : i32
    %c0_i32_0 = arith.constant 0 : i32
    %c0_i32_1 = arith.constant 0 : i32
    return %c0_i32, %c0_i32_0 : i32, i32
  }
  func.func @transform_4(%arg0: i32, %arg1: i32) -> (i32, i32) {
    %c0_i32 = arith.constant 0 : i32
    %c0_i32_0 = arith.constant 0 : i32
    %c0_i32_1 = arith.constant 0 : i32
    return %c0_i32, %c0_i32_0 : i32, i32
  }
  func.func @transform_5(%arg0: i32, %arg1: i32) -> (i32, i32, i32) {
    %c0_i32 = arith.constant 0 : i32
    %c0_i32_0 = arith.constant 0 : i32
    return %arg0, %arg1, %c0_i32 : i32, i32, i32
  }
}

module attributes {stable_mosaic.version = 11 : i64} {
  func.func @_matmul_bias_kernel(%arg0: i32, %arg1: i32, %arg2: i32, %arg3: memref<128x128xbf16, #tpu.memory_space<vmem>>, %arg4: memref<128x128xbf16, #tpu.memory_space<vmem>>, %arg5: memref<1x128xf32, #tpu.memory_space<vmem>>, %arg6: memref<128x128xf32, #tpu.memory_space<vmem>>, %arg7: memref<128x128xf32, #tpu.memory_space<vmem>>) attributes {dimension_semantics = [#tpu.dimension_semantics<parallel>, #tpu.dimension_semantics<parallel>, #tpu.dimension_semantics<arbitrary>], iteration_bounds = array<i64: 1, 1, 3>, scalar_prefetch = 0 : i64, scratch_operands = 1 : i64, tpu.core_type = #tpu.core_type<tc>, window_params = [{transform_indices = @transform_0, window_bounds = array<i64: 128, 128>}, {transform_indices = @transform_1, window_bounds = array<i64: 128, 128>}, {transform_indices = @transform_2, window_bounds = array<i64: 1, 128>}, {transform_indices = @transform_3, window_bounds = array<i64: 128, 128>}]} {
    %c0_i32 = arith.constant 0 : i32
    %0 = arith.cmpi eq, %arg2, %c0_i32 : i32
    %1 = arith.extui %0 : i1 to i32
    %c0_i32_0 = arith.constant 0 : i32
    %2 = arith.cmpi ne, %1, %c0_i32_0 : i32
    scf.if %2 {
      %cst_9 = arith.constant 0.000000e+00 : f32
      %12 = vector.broadcast %cst_9 : f32 to vector<128x128xf32>
      %c0_10 = arith.constant 0 : index
      %c0_11 = arith.constant 0 : index
      %13 = vector.load %arg7[%c0_10, %c0_11] : memref<128x128xf32, #tpu.memory_space<vmem>>, vector<128x128xf32>
      tpu.vector_store %arg7[%c0_10, %c0_11], %12 {strides = array<i32>} : memref<128x128xf32, #tpu.memory_space<vmem>>, vector<128x128xf32>,
    } else {
    }
    %c0 = arith.constant 0 : index
    %c0_1 = arith.constant 0 : index
    %3 = vector.load %arg7[%c0, %c0_1] : memref<128x128xf32, #tpu.memory_space<vmem>>, vector<128x128xf32>
    %c0_2 = arith.constant 0 : index
    %c0_3 = arith.constant 0 : index
    %4 = vector.load %arg3[%c0_2, %c0_3] : memref<128x128xbf16, #tpu.memory_space<vmem>>, vector<128x128xbf16>
    %c0_4 = arith.constant 0 : index
    %c0_5 = arith.constant 0 : index
    %5 = vector.load %arg4[%c0_4, %c0_5] : memref<128x128xbf16, #tpu.memory_space<vmem>>, vector<128x128xbf16>
    %cst = arith.constant dense<0.000000e+00> : vector<128x128xf32>
    %6 = tpu.matmul %4, %5, %cst {dimension_numbers = #tpu.dot_dimension_numbers<[1], [0], [0], [1], [0, 0, 1, 1], [], []>} : vector<128x128xbf16>, vector<128x128xbf16>, vector<128x128xf32> -> vector<128x128xf32>
    %7 = arith.addf %3, %6 : vector<128x128xf32>
    %c0_6 = arith.constant 0 : index
    %c0_7 = arith.constant 0 : index
    %8 = vector.load %arg7[%c0_6, %c0_7] : memref<128x128xf32, #tpu.memory_space<vmem>>, vector<128x128xf32>
    tpu.vector_store %arg7[%c0_6, %c0_7], %7 {strides = array<i32>} : memref<128x128xf32, #tpu.memory_space<vmem>>, vector<128x128xf32>,
    %c2_i32 = arith.constant 2 : i32
    %9 = arith.cmpi eq, %arg2, %c2_i32 : i32
    %10 = arith.extui %9 : i1 to i32
    %c0_i32_8 = arith.constant 0 : i32
    %11 = arith.cmpi ne, %10, %c0_i32_8 : i32
    scf.if %11 {
      %c0_9 = arith.constant 0 : index
      %c0_10 = arith.constant 0 : index
      %12 = vector.load %arg7[%c0_9, %c0_10] : memref<128x128xf32, #tpu.memory_space<vmem>>, vector<128x128xf32>
      %c0_11 = arith.constant 0 : index
      %c0_12 = arith.constant 0 : index
      %13 = vector.load %arg5[%c0_11, %c0_12] : memref<1x128xf32, #tpu.memory_space<vmem>>, vector<1x128xf32>
      %14 = vector.broadcast %13 : vector<1x128xf32> to vector<128x128xf32>
      %15 = arith.addf %12, %14 : vector<128x128xf32>
      %c0_13 = arith.constant 0 : index
      %c0_14 = arith.constant 0 : index
      %16 = vector.load %arg6[%c0_13, %c0_14] : memref<128x128xf32, #tpu.memory_space<vmem>>, vector<128x128xf32>
      tpu.vector_store %arg6[%c0_13, %c0_14], %15 {strides = array<i32>} : memref<128x128xf32, #tpu.memory_space<vmem>>, vector<128x128xf32>,
    } else {
    }
    return
  }
  func.func @transform_0(%arg0: i32, %arg1: i32, %arg2: i32) -> (i32, i32) {
    %c0_i32 = arith.constant 0 : i32
    return %arg0, %arg2 : i32, i32
  }
  func.func @transform_1(%arg0: i32, %arg1: i32, %arg2: i32) -> (i32, i32) {
    %c0_i32 = arith.constant 0 : i32
    return %arg2, %arg1 : i32, i32
  }
  func.func @transform_2(%arg0: i32, %arg1: i32, %arg2: i32) -> (i32, i32) {
    %c0_i32 = arith.constant 0 : i32
    %c0_i32_0 = arith.constant 0 : i32
    return %c0_i32, %arg1 : i32, i32
  }
  func.func @transform_3(%arg0: i32, %arg1: i32, %arg2: i32) -> (i32, i32) {
    %c0_i32 = arith.constant 0 : i32
    return %arg0, %arg1 : i32, i32
  }
}

module attributes {stable_mosaic.version = 11 : i64} {
  func.func @_in_stats_kernel(%arg0: i32, %arg1: i32, %arg2: memref<1x64x64xf32, #tpu.memory_space<vmem>>, %arg3: memref<1x1x64xf32, #tpu.memory_space<vmem>>, %arg4: memref<1x1x64xf32, #tpu.memory_space<vmem>>) attributes {dimension_semantics = [#tpu.dimension_semantics<parallel>, #tpu.dimension_semantics<arbitrary>], iteration_bounds = array<i64: 2, 1>, scalar_prefetch = 0 : i64, scratch_operands = 0 : i64, tpu.core_type = #tpu.core_type<tc>, window_params = [{transform_indices = @transform_0, window_bounds = array<i64: 1, 64, 64>}, {transform_indices = @transform_1, window_bounds = array<i64: 1, 1, 64>}, {transform_indices = @transform_2, window_bounds = array<i64: 1, 1, 64>}]} {
    %c0_i32 = arith.constant 0 : i32
    %0 = arith.cmpi eq, %arg1, %c0_i32 : i32
    %1 = arith.extui %0 : i1 to i32
    %c0_i32_0 = arith.constant 0 : i32
    %2 = arith.cmpi ne, %1, %c0_i32_0 : i32
    scf.if %2 {
      %cst_16 = arith.constant 0.000000e+00 : f32
      %15 = vector.broadcast %cst_16 : f32 to vector<1x1x64xf32>
      %c0_17 = arith.constant 0 : index
      %c0_18 = arith.constant 0 : index
      %c0_19 = arith.constant 0 : index
      %16 = vector.load %arg3[%c0_17, %c0_18, %c0_19] : memref<1x1x64xf32, #tpu.memory_space<vmem>>, vector<1x1x64xf32>
      tpu.vector_store %arg3[%c0_17, %c0_18, %c0_19], %15 {strides = array<i32>} : memref<1x1x64xf32, #tpu.memory_space<vmem>>, vector<1x1x64xf32>,
      %cst_20 = arith.constant 0.000000e+00 : f32
      %17 = vector.broadcast %cst_20 : f32 to vector<1x1x64xf32>
      %c0_21 = arith.constant 0 : index
      %c0_22 = arith.constant 0 : index
      %c0_23 = arith.constant 0 : index
      %18 = vector.load %arg4[%c0_21, %c0_22, %c0_23] : memref<1x1x64xf32, #tpu.memory_space<vmem>>, vector<1x1x64xf32>
      tpu.vector_store %arg4[%c0_21, %c0_22, %c0_23], %17 {strides = array<i32>} : memref<1x1x64xf32, #tpu.memory_space<vmem>>, vector<1x1x64xf32>,
    } else {
    }
    %c0 = arith.constant 0 : index
    %c0_1 = arith.constant 0 : index
    %c0_2 = arith.constant 0 : index
    %3 = vector.load %arg2[%c0, %c0_1, %c0_2] : memref<1x64x64xf32, #tpu.memory_space<vmem>>, vector<1x64x64xf32>
    %c0_3 = arith.constant 0 : index
    %c0_4 = arith.constant 0 : index
    %c0_5 = arith.constant 0 : index
    %4 = vector.load %arg3[%c0_3, %c0_4, %c0_5] : memref<1x1x64xf32, #tpu.memory_space<vmem>>, vector<1x1x64xf32>
    %cst = arith.constant dense<0.000000e+00> : vector<1x64xf32>
    %5 = vector.multi_reduction <add>, %3, %cst [1] : vector<1x64x64xf32> to vector<1x64xf32>
    %6 = vector.shape_cast %5 : vector<1x64xf32> to vector<1x1x64xf32>
    %7 = arith.addf %4, %6 : vector<1x1x64xf32>
    %c0_6 = arith.constant 0 : index
    %c0_7 = arith.constant 0 : index
    %c0_8 = arith.constant 0 : index
    %8 = vector.load %arg3[%c0_6, %c0_7, %c0_8] : memref<1x1x64xf32, #tpu.memory_space<vmem>>, vector<1x1x64xf32>
    tpu.vector_store %arg3[%c0_6, %c0_7, %c0_8], %7 {strides = array<i32>} : memref<1x1x64xf32, #tpu.memory_space<vmem>>, vector<1x1x64xf32>,
    %c0_9 = arith.constant 0 : index
    %c0_10 = arith.constant 0 : index
    %c0_11 = arith.constant 0 : index
    %9 = vector.load %arg4[%c0_9, %c0_10, %c0_11] : memref<1x1x64xf32, #tpu.memory_space<vmem>>, vector<1x1x64xf32>
    %10 = arith.mulf %3, %3 : vector<1x64x64xf32>
    %cst_12 = arith.constant dense<0.000000e+00> : vector<1x64xf32>
    %11 = vector.multi_reduction <add>, %10, %cst_12 [1] : vector<1x64x64xf32> to vector<1x64xf32>
    %12 = vector.shape_cast %11 : vector<1x64xf32> to vector<1x1x64xf32>
    %13 = arith.addf %9, %12 : vector<1x1x64xf32>
    %c0_13 = arith.constant 0 : index
    %c0_14 = arith.constant 0 : index
    %c0_15 = arith.constant 0 : index
    %14 = vector.load %arg4[%c0_13, %c0_14, %c0_15] : memref<1x1x64xf32, #tpu.memory_space<vmem>>, vector<1x1x64xf32>
    tpu.vector_store %arg4[%c0_13, %c0_14, %c0_15], %13 {strides = array<i32>} : memref<1x1x64xf32, #tpu.memory_space<vmem>>, vector<1x1x64xf32>,
    return
  }
  func.func @transform_0(%arg0: i32, %arg1: i32) -> (i32, i32, i32) {
    %c0_i32 = arith.constant 0 : i32
    %c0_i32_0 = arith.constant 0 : i32
    return %arg0, %arg1, %c0_i32 : i32, i32, i32
  }
  func.func @transform_1(%arg0: i32, %arg1: i32) -> (i32, i32, i32) {
    %c0_i32 = arith.constant 0 : i32
    %c0_i32_0 = arith.constant 0 : i32
    %c0_i32_1 = arith.constant 0 : i32
    return %arg0, %c0_i32, %c0_i32_0 : i32, i32, i32
  }
  func.func @transform_2(%arg0: i32, %arg1: i32) -> (i32, i32, i32) {
    %c0_i32 = arith.constant 0 : i32
    %c0_i32_0 = arith.constant 0 : i32
    %c0_i32_1 = arith.constant 0 : i32
    return %arg0, %c0_i32, %c0_i32_0 : i32, i32, i32
  }
}

module attributes {stable_mosaic.version = 11 : i64} {
  func.func @_in_norm_kernel(%arg0: i32, %arg1: i32, %arg2: memref<1x64x64xf32, #tpu.memory_space<vmem>>, %arg3: memref<1x1x64xf32, #tpu.memory_space<vmem>>, %arg4: memref<1x1x64xf32, #tpu.memory_space<vmem>>, %arg5: memref<1x64xf32, #tpu.memory_space<vmem>>, %arg6: memref<1x64xf32, #tpu.memory_space<vmem>>, %arg7: memref<1x64x64xf32, #tpu.memory_space<vmem>>) attributes {dimension_semantics = [#tpu.dimension_semantics<parallel>, #tpu.dimension_semantics<parallel>], iteration_bounds = array<i64: 2, 1>, scalar_prefetch = 0 : i64, scratch_operands = 0 : i64, tpu.core_type = #tpu.core_type<tc>, window_params = [{transform_indices = @transform_0, window_bounds = array<i64: 1, 64, 64>}, {transform_indices = @transform_1, window_bounds = array<i64: 1, 1, 64>}, {transform_indices = @transform_2, window_bounds = array<i64: 1, 1, 64>}, {pipeline_mode = #tpu.pipeline_mode<synchronous>, transform_indices = @transform_3, window_bounds = array<i64: 1, 64>}, {pipeline_mode = #tpu.pipeline_mode<synchronous>, transform_indices = @transform_4, window_bounds = array<i64: 1, 64>}, {transform_indices = @transform_5, window_bounds = array<i64: 1, 64, 64>}]} {
    %c0 = arith.constant 0 : index
    %c0_0 = arith.constant 0 : index
    %c0_1 = arith.constant 0 : index
    %0 = vector.load %arg2[%c0, %c0_0, %c0_1] : memref<1x64x64xf32, #tpu.memory_space<vmem>>, vector<1x64x64xf32>
    %c0_2 = arith.constant 0 : index
    %c0_3 = arith.constant 0 : index
    %c0_4 = arith.constant 0 : index
    %1 = vector.load %arg3[%c0_2, %c0_3, %c0_4] : memref<1x1x64xf32, #tpu.memory_space<vmem>>, vector<1x1x64xf32>
    %cst = arith.constant 1.562500e-02 : f32
    %2 = vector.broadcast %cst : f32 to vector<1x1x64xf32>
    %3 = arith.mulf %1, %2 : vector<1x1x64xf32>
    %c0_5 = arith.constant 0 : index
    %c0_6 = arith.constant 0 : index
    %c0_7 = arith.constant 0 : index
    %4 = vector.load %arg4[%c0_5, %c0_6, %c0_7] : memref<1x1x64xf32, #tpu.memory_space<vmem>>, vector<1x1x64xf32>
    %cst_8 = arith.constant 1.562500e-02 : f32
    %5 = vector.broadcast %cst_8 : f32 to vector<1x1x64xf32>
    %6 = arith.mulf %4, %5 : vector<1x1x64xf32>
    %7 = arith.mulf %3, %3 : vector<1x1x64xf32>
    %8 = arith.subf %6, %7 : vector<1x1x64xf32>
    %cst_9 = arith.constant 0.000000e+00 : f32
    %9 = vector.broadcast %cst_9 : f32 to vector<1x1x64xf32>
    %10 = arith.maximumf %8, %9 : vector<1x1x64xf32>
    %cst_10 = arith.constant 9.99999974E-6 : f32
    %11 = vector.broadcast %cst_10 : f32 to vector<1x1x64xf32>
    %12 = arith.addf %10, %11 : vector<1x1x64xf32>
    %13 = math.rsqrt %12 : vector<1x1x64xf32>
    %14 = vector.broadcast %3 : vector<1x1x64xf32> to vector<1x64x64xf32>
    %15 = arith.subf %0, %14 : vector<1x64x64xf32>
    %c0_11 = arith.constant 0 : index
    %c0_12 = arith.constant 0 : index
    %16 = vector.load %arg5[%c0_11, %c0_12] : memref<1x64xf32, #tpu.memory_space<vmem>>, vector<1x64xf32>
    %17 = vector.shape_cast %16 : vector<1x64xf32> to vector<1x1x64xf32>
    %18 = arith.mulf %13, %17 : vector<1x1x64xf32>
    %19 = vector.broadcast %18 : vector<1x1x64xf32> to vector<1x64x64xf32>
    %20 = arith.mulf %15, %19 : vector<1x64x64xf32>
    %c0_13 = arith.constant 0 : index
    %c0_14 = arith.constant 0 : index
    %21 = vector.load %arg6[%c0_13, %c0_14] : memref<1x64xf32, #tpu.memory_space<vmem>>, vector<1x64xf32>
    %22 = vector.shape_cast %21 : vector<1x64xf32> to vector<1x1x64xf32>
    %23 = vector.broadcast %22 : vector<1x1x64xf32> to vector<1x64x64xf32>
    %24 = arith.addf %20, %23 : vector<1x64x64xf32>
    %cst_15 = arith.constant 0.000000e+00 : f32
    %25 = vector.broadcast %cst_15 : f32 to vector<1x64x64xf32>
    %26 = arith.maximumf %24, %25 : vector<1x64x64xf32>
    %c0_16 = arith.constant 0 : index
    %c0_17 = arith.constant 0 : index
    %c0_18 = arith.constant 0 : index
    %27 = vector.load %arg7[%c0_16, %c0_17, %c0_18] : memref<1x64x64xf32, #tpu.memory_space<vmem>>, vector<1x64x64xf32>
    tpu.vector_store %arg7[%c0_16, %c0_17, %c0_18], %26 {strides = array<i32>} : memref<1x64x64xf32, #tpu.memory_space<vmem>>, vector<1x64x64xf32>,
    return
  }
  func.func @transform_0(%arg0: i32, %arg1: i32) -> (i32, i32, i32) {
    %c0_i32 = arith.constant 0 : i32
    %c0_i32_0 = arith.constant 0 : i32
    return %arg0, %arg1, %c0_i32 : i32, i32, i32
  }
  func.func @transform_1(%arg0: i32, %arg1: i32) -> (i32, i32, i32) {
    %c0_i32 = arith.constant 0 : i32
    %c0_i32_0 = arith.constant 0 : i32
    %c0_i32_1 = arith.constant 0 : i32
    return %arg0, %c0_i32, %c0_i32_0 : i32, i32, i32
  }
  func.func @transform_2(%arg0: i32, %arg1: i32) -> (i32, i32, i32) {
    %c0_i32 = arith.constant 0 : i32
    %c0_i32_0 = arith.constant 0 : i32
    %c0_i32_1 = arith.constant 0 : i32
    return %arg0, %c0_i32, %c0_i32_0 : i32, i32, i32
  }
  func.func @transform_3(%arg0: i32, %arg1: i32) -> (i32, i32) {
    %c0_i32 = arith.constant 0 : i32
    %c0_i32_0 = arith.constant 0 : i32
    %c0_i32_1 = arith.constant 0 : i32
    return %c0_i32, %c0_i32_0 : i32, i32
  }
  func.func @transform_4(%arg0: i32, %arg1: i32) -> (i32, i32) {
    %c0_i32 = arith.constant 0 : i32
    %c0_i32_0 = arith.constant 0 : i32
    %c0_i32_1 = arith.constant 0 : i32
    return %c0_i32, %c0_i32_0 : i32, i32
  }
  func.func @transform_5(%arg0: i32, %arg1: i32) -> (i32, i32, i32) {
    %c0_i32 = arith.constant 0 : i32
    %c0_i32_0 = arith.constant 0 : i32
    return %arg0, %arg1, %c0_i32 : i32, i32, i32
  }
}

module attributes {stable_mosaic.version = 11 : i64} {
  func.func @_matmul_bias_kernel(%arg0: i32, %arg1: i32, %arg2: i32, %arg3: memref<32x128xbf16, #tpu.memory_space<vmem>>, %arg4: memref<128x128xbf16, #tpu.memory_space<vmem>>, %arg5: memref<1x128xf32, #tpu.memory_space<vmem>>, %arg6: memref<32x128xf32, #tpu.memory_space<vmem>>, %arg7: memref<32x128xf32, #tpu.memory_space<vmem>>) attributes {dimension_semantics = [#tpu.dimension_semantics<parallel>, #tpu.dimension_semantics<parallel>, #tpu.dimension_semantics<arbitrary>], iteration_bounds = array<i64: 1, 1, 5>, scalar_prefetch = 0 : i64, scratch_operands = 1 : i64, tpu.core_type = #tpu.core_type<tc>, window_params = [{transform_indices = @transform_0, window_bounds = array<i64: 32, 128>}, {transform_indices = @transform_1, window_bounds = array<i64: 128, 128>}, {transform_indices = @transform_2, window_bounds = array<i64: 1, 128>}, {transform_indices = @transform_3, window_bounds = array<i64: 32, 128>}]} {
    %c0_i32 = arith.constant 0 : i32
    %0 = arith.cmpi eq, %arg2, %c0_i32 : i32
    %1 = arith.extui %0 : i1 to i32
    %c0_i32_0 = arith.constant 0 : i32
    %2 = arith.cmpi ne, %1, %c0_i32_0 : i32
    scf.if %2 {
      %cst_9 = arith.constant 0.000000e+00 : f32
      %12 = vector.broadcast %cst_9 : f32 to vector<32x128xf32>
      %c0_10 = arith.constant 0 : index
      %c0_11 = arith.constant 0 : index
      %13 = vector.load %arg7[%c0_10, %c0_11] : memref<32x128xf32, #tpu.memory_space<vmem>>, vector<32x128xf32>
      tpu.vector_store %arg7[%c0_10, %c0_11], %12 {strides = array<i32>} : memref<32x128xf32, #tpu.memory_space<vmem>>, vector<32x128xf32>,
    } else {
    }
    %c0 = arith.constant 0 : index
    %c0_1 = arith.constant 0 : index
    %3 = vector.load %arg7[%c0, %c0_1] : memref<32x128xf32, #tpu.memory_space<vmem>>, vector<32x128xf32>
    %c0_2 = arith.constant 0 : index
    %c0_3 = arith.constant 0 : index
    %4 = vector.load %arg3[%c0_2, %c0_3] : memref<32x128xbf16, #tpu.memory_space<vmem>>, vector<32x128xbf16>
    %c0_4 = arith.constant 0 : index
    %c0_5 = arith.constant 0 : index
    %5 = vector.load %arg4[%c0_4, %c0_5] : memref<128x128xbf16, #tpu.memory_space<vmem>>, vector<128x128xbf16>
    %cst = arith.constant dense<0.000000e+00> : vector<32x128xf32>
    %6 = tpu.matmul %4, %5, %cst {dimension_numbers = #tpu.dot_dimension_numbers<[1], [0], [0], [1], [0, 0, 1, 1], [], []>} : vector<32x128xbf16>, vector<128x128xbf16>, vector<32x128xf32> -> vector<32x128xf32>
    %7 = arith.addf %3, %6 : vector<32x128xf32>
    %c0_6 = arith.constant 0 : index
    %c0_7 = arith.constant 0 : index
    %8 = vector.load %arg7[%c0_6, %c0_7] : memref<32x128xf32, #tpu.memory_space<vmem>>, vector<32x128xf32>
    tpu.vector_store %arg7[%c0_6, %c0_7], %7 {strides = array<i32>} : memref<32x128xf32, #tpu.memory_space<vmem>>, vector<32x128xf32>,
    %c4_i32 = arith.constant 4 : i32
    %9 = arith.cmpi eq, %arg2, %c4_i32 : i32
    %10 = arith.extui %9 : i1 to i32
    %c0_i32_8 = arith.constant 0 : i32
    %11 = arith.cmpi ne, %10, %c0_i32_8 : i32
    scf.if %11 {
      %c0_9 = arith.constant 0 : index
      %c0_10 = arith.constant 0 : index
      %12 = vector.load %arg7[%c0_9, %c0_10] : memref<32x128xf32, #tpu.memory_space<vmem>>, vector<32x128xf32>
      %c0_11 = arith.constant 0 : index
      %c0_12 = arith.constant 0 : index
      %13 = vector.load %arg5[%c0_11, %c0_12] : memref<1x128xf32, #tpu.memory_space<vmem>>, vector<1x128xf32>
      %14 = vector.broadcast %13 : vector<1x128xf32> to vector<32x128xf32>
      %15 = arith.addf %12, %14 : vector<32x128xf32>
      %c0_13 = arith.constant 0 : index
      %c0_14 = arith.constant 0 : index
      %16 = vector.load %arg6[%c0_13, %c0_14] : memref<32x128xf32, #tpu.memory_space<vmem>>, vector<32x128xf32>
      tpu.vector_store %arg6[%c0_13, %c0_14], %15 {strides = array<i32>} : memref<32x128xf32, #tpu.memory_space<vmem>>, vector<32x128xf32>,
    } else {
    }
    return
  }
  func.func @transform_0(%arg0: i32, %arg1: i32, %arg2: i32) -> (i32, i32) {
    %c0_i32 = arith.constant 0 : i32
    return %arg0, %arg2 : i32, i32
  }
  func.func @transform_1(%arg0: i32, %arg1: i32, %arg2: i32) -> (i32, i32) {
    %c0_i32 = arith.constant 0 : i32
    return %arg2, %arg1 : i32, i32
  }
  func.func @transform_2(%arg0: i32, %arg1: i32, %arg2: i32) -> (i32, i32) {
    %c0_i32 = arith.constant 0 : i32
    %c0_i32_0 = arith.constant 0 : i32
    return %c0_i32, %arg1 : i32, i32
  }
  func.func @transform_3(%arg0: i32, %arg1: i32, %arg2: i32) -> (i32, i32) {
    %c0_i32 = arith.constant 0 : i32
    return %arg0, %arg1 : i32, i32
  }
}

module attributes {stable_mosaic.version = 11 : i64} {
  func.func @_in_stats_kernel(%arg0: i32, %arg1: i32, %arg2: memref<1x16x128xf32, #tpu.memory_space<vmem>>, %arg3: memref<1x1x128xf32, #tpu.memory_space<vmem>>, %arg4: memref<1x1x128xf32, #tpu.memory_space<vmem>>) attributes {dimension_semantics = [#tpu.dimension_semantics<parallel>, #tpu.dimension_semantics<arbitrary>], iteration_bounds = array<i64: 2, 1>, scalar_prefetch = 0 : i64, scratch_operands = 0 : i64, tpu.core_type = #tpu.core_type<tc>, window_params = [{transform_indices = @transform_0, window_bounds = array<i64: 1, 16, 128>}, {transform_indices = @transform_1, window_bounds = array<i64: 1, 1, 128>}, {transform_indices = @transform_2, window_bounds = array<i64: 1, 1, 128>}]} {
    %c0_i32 = arith.constant 0 : i32
    %0 = arith.cmpi eq, %arg1, %c0_i32 : i32
    %1 = arith.extui %0 : i1 to i32
    %c0_i32_0 = arith.constant 0 : i32
    %2 = arith.cmpi ne, %1, %c0_i32_0 : i32
    scf.if %2 {
      %cst_16 = arith.constant 0.000000e+00 : f32
      %15 = vector.broadcast %cst_16 : f32 to vector<1x1x128xf32>
      %c0_17 = arith.constant 0 : index
      %c0_18 = arith.constant 0 : index
      %c0_19 = arith.constant 0 : index
      %16 = vector.load %arg3[%c0_17, %c0_18, %c0_19] : memref<1x1x128xf32, #tpu.memory_space<vmem>>, vector<1x1x128xf32>
      tpu.vector_store %arg3[%c0_17, %c0_18, %c0_19], %15 {strides = array<i32>} : memref<1x1x128xf32, #tpu.memory_space<vmem>>, vector<1x1x128xf32>,
      %cst_20 = arith.constant 0.000000e+00 : f32
      %17 = vector.broadcast %cst_20 : f32 to vector<1x1x128xf32>
      %c0_21 = arith.constant 0 : index
      %c0_22 = arith.constant 0 : index
      %c0_23 = arith.constant 0 : index
      %18 = vector.load %arg4[%c0_21, %c0_22, %c0_23] : memref<1x1x128xf32, #tpu.memory_space<vmem>>, vector<1x1x128xf32>
      tpu.vector_store %arg4[%c0_21, %c0_22, %c0_23], %17 {strides = array<i32>} : memref<1x1x128xf32, #tpu.memory_space<vmem>>, vector<1x1x128xf32>,
    } else {
    }
    %c0 = arith.constant 0 : index
    %c0_1 = arith.constant 0 : index
    %c0_2 = arith.constant 0 : index
    %3 = vector.load %arg2[%c0, %c0_1, %c0_2] : memref<1x16x128xf32, #tpu.memory_space<vmem>>, vector<1x16x128xf32>
    %c0_3 = arith.constant 0 : index
    %c0_4 = arith.constant 0 : index
    %c0_5 = arith.constant 0 : index
    %4 = vector.load %arg3[%c0_3, %c0_4, %c0_5] : memref<1x1x128xf32, #tpu.memory_space<vmem>>, vector<1x1x128xf32>
    %cst = arith.constant dense<0.000000e+00> : vector<1x128xf32>
    %5 = vector.multi_reduction <add>, %3, %cst [1] : vector<1x16x128xf32> to vector<1x128xf32>
    %6 = vector.shape_cast %5 : vector<1x128xf32> to vector<1x1x128xf32>
    %7 = arith.addf %4, %6 : vector<1x1x128xf32>
    %c0_6 = arith.constant 0 : index
    %c0_7 = arith.constant 0 : index
    %c0_8 = arith.constant 0 : index
    %8 = vector.load %arg3[%c0_6, %c0_7, %c0_8] : memref<1x1x128xf32, #tpu.memory_space<vmem>>, vector<1x1x128xf32>
    tpu.vector_store %arg3[%c0_6, %c0_7, %c0_8], %7 {strides = array<i32>} : memref<1x1x128xf32, #tpu.memory_space<vmem>>, vector<1x1x128xf32>,
    %c0_9 = arith.constant 0 : index
    %c0_10 = arith.constant 0 : index
    %c0_11 = arith.constant 0 : index
    %9 = vector.load %arg4[%c0_9, %c0_10, %c0_11] : memref<1x1x128xf32, #tpu.memory_space<vmem>>, vector<1x1x128xf32>
    %10 = arith.mulf %3, %3 : vector<1x16x128xf32>
    %cst_12 = arith.constant dense<0.000000e+00> : vector<1x128xf32>
    %11 = vector.multi_reduction <add>, %10, %cst_12 [1] : vector<1x16x128xf32> to vector<1x128xf32>
    %12 = vector.shape_cast %11 : vector<1x128xf32> to vector<1x1x128xf32>
    %13 = arith.addf %9, %12 : vector<1x1x128xf32>
    %c0_13 = arith.constant 0 : index
    %c0_14 = arith.constant 0 : index
    %c0_15 = arith.constant 0 : index
    %14 = vector.load %arg4[%c0_13, %c0_14, %c0_15] : memref<1x1x128xf32, #tpu.memory_space<vmem>>, vector<1x1x128xf32>
    tpu.vector_store %arg4[%c0_13, %c0_14, %c0_15], %13 {strides = array<i32>} : memref<1x1x128xf32, #tpu.memory_space<vmem>>, vector<1x1x128xf32>,
    return
  }
  func.func @transform_0(%arg0: i32, %arg1: i32) -> (i32, i32, i32) {
    %c0_i32 = arith.constant 0 : i32
    %c0_i32_0 = arith.constant 0 : i32
    return %arg0, %arg1, %c0_i32 : i32, i32, i32
  }
  func.func @transform_1(%arg0: i32, %arg1: i32) -> (i32, i32, i32) {
    %c0_i32 = arith.constant 0 : i32
    %c0_i32_0 = arith.constant 0 : i32
    %c0_i32_1 = arith.constant 0 : i32
    return %arg0, %c0_i32, %c0_i32_0 : i32, i32, i32
  }
  func.func @transform_2(%arg0: i32, %arg1: i32) -> (i32, i32, i32) {
    %c0_i32 = arith.constant 0 : i32
    %c0_i32_0 = arith.constant 0 : i32
    %c0_i32_1 = arith.constant 0 : i32
    return %arg0, %c0_i32, %c0_i32_0 : i32, i32, i32
  }
}

module attributes {stable_mosaic.version = 11 : i64} {
  func.func @_in_norm_kernel(%arg0: i32, %arg1: i32, %arg2: memref<1x16x128xf32, #tpu.memory_space<vmem>>, %arg3: memref<1x1x128xf32, #tpu.memory_space<vmem>>, %arg4: memref<1x1x128xf32, #tpu.memory_space<vmem>>, %arg5: memref<1x128xf32, #tpu.memory_space<vmem>>, %arg6: memref<1x128xf32, #tpu.memory_space<vmem>>, %arg7: memref<1x16x128xf32, #tpu.memory_space<vmem>>) attributes {dimension_semantics = [#tpu.dimension_semantics<parallel>, #tpu.dimension_semantics<parallel>], iteration_bounds = array<i64: 2, 1>, scalar_prefetch = 0 : i64, scratch_operands = 0 : i64, tpu.core_type = #tpu.core_type<tc>, window_params = [{transform_indices = @transform_0, window_bounds = array<i64: 1, 16, 128>}, {transform_indices = @transform_1, window_bounds = array<i64: 1, 1, 128>}, {transform_indices = @transform_2, window_bounds = array<i64: 1, 1, 128>}, {pipeline_mode = #tpu.pipeline_mode<synchronous>, transform_indices = @transform_3, window_bounds = array<i64: 1, 128>}, {pipeline_mode = #tpu.pipeline_mode<synchronous>, transform_indices = @transform_4, window_bounds = array<i64: 1, 128>}, {transform_indices = @transform_5, window_bounds = array<i64: 1, 16, 128>}]} {
    %c0 = arith.constant 0 : index
    %c0_0 = arith.constant 0 : index
    %c0_1 = arith.constant 0 : index
    %0 = vector.load %arg2[%c0, %c0_0, %c0_1] : memref<1x16x128xf32, #tpu.memory_space<vmem>>, vector<1x16x128xf32>
    %c0_2 = arith.constant 0 : index
    %c0_3 = arith.constant 0 : index
    %c0_4 = arith.constant 0 : index
    %1 = vector.load %arg3[%c0_2, %c0_3, %c0_4] : memref<1x1x128xf32, #tpu.memory_space<vmem>>, vector<1x1x128xf32>
    %cst = arith.constant 6.250000e-02 : f32
    %2 = vector.broadcast %cst : f32 to vector<1x1x128xf32>
    %3 = arith.mulf %1, %2 : vector<1x1x128xf32>
    %c0_5 = arith.constant 0 : index
    %c0_6 = arith.constant 0 : index
    %c0_7 = arith.constant 0 : index
    %4 = vector.load %arg4[%c0_5, %c0_6, %c0_7] : memref<1x1x128xf32, #tpu.memory_space<vmem>>, vector<1x1x128xf32>
    %cst_8 = arith.constant 6.250000e-02 : f32
    %5 = vector.broadcast %cst_8 : f32 to vector<1x1x128xf32>
    %6 = arith.mulf %4, %5 : vector<1x1x128xf32>
    %7 = arith.mulf %3, %3 : vector<1x1x128xf32>
    %8 = arith.subf %6, %7 : vector<1x1x128xf32>
    %cst_9 = arith.constant 0.000000e+00 : f32
    %9 = vector.broadcast %cst_9 : f32 to vector<1x1x128xf32>
    %10 = arith.maximumf %8, %9 : vector<1x1x128xf32>
    %cst_10 = arith.constant 9.99999974E-6 : f32
    %11 = vector.broadcast %cst_10 : f32 to vector<1x1x128xf32>
    %12 = arith.addf %10, %11 : vector<1x1x128xf32>
    %13 = math.rsqrt %12 : vector<1x1x128xf32>
    %14 = vector.broadcast %3 : vector<1x1x128xf32> to vector<1x16x128xf32>
    %15 = arith.subf %0, %14 : vector<1x16x128xf32>
    %c0_11 = arith.constant 0 : index
    %c0_12 = arith.constant 0 : index
    %16 = vector.load %arg5[%c0_11, %c0_12] : memref<1x128xf32, #tpu.memory_space<vmem>>, vector<1x128xf32>
    %17 = vector.shape_cast %16 : vector<1x128xf32> to vector<1x1x128xf32>
    %18 = arith.mulf %13, %17 : vector<1x1x128xf32>
    %19 = vector.broadcast %18 : vector<1x1x128xf32> to vector<1x16x128xf32>
    %20 = arith.mulf %15, %19 : vector<1x16x128xf32>
    %c0_13 = arith.constant 0 : index
    %c0_14 = arith.constant 0 : index
    %21 = vector.load %arg6[%c0_13, %c0_14] : memref<1x128xf32, #tpu.memory_space<vmem>>, vector<1x128xf32>
    %22 = vector.shape_cast %21 : vector<1x128xf32> to vector<1x1x128xf32>
    %23 = vector.broadcast %22 : vector<1x1x128xf32> to vector<1x16x128xf32>
    %24 = arith.addf %20, %23 : vector<1x16x128xf32>
    %cst_15 = arith.constant 0.000000e+00 : f32
    %25 = vector.broadcast %cst_15 : f32 to vector<1x16x128xf32>
    %26 = arith.maximumf %24, %25 : vector<1x16x128xf32>
    %c0_16 = arith.constant 0 : index
    %c0_17 = arith.constant 0 : index
    %c0_18 = arith.constant 0 : index
    %27 = vector.load %arg7[%c0_16, %c0_17, %c0_18] : memref<1x16x128xf32, #tpu.memory_space<vmem>>, vector<1x16x128xf32>
    tpu.vector_store %arg7[%c0_16, %c0_17, %c0_18], %26 {strides = array<i32>} : memref<1x16x128xf32, #tpu.memory_space<vmem>>, vector<1x16x128xf32>,
    return
  }
  func.func @transform_0(%arg0: i32, %arg1: i32) -> (i32, i32, i32) {
    %c0_i32 = arith.constant 0 : i32
    %c0_i32_0 = arith.constant 0 : i32
    return %arg0, %arg1, %c0_i32 : i32, i32, i32
  }
  func.func @transform_1(%arg0: i32, %arg1: i32) -> (i32, i32, i32) {
    %c0_i32 = arith.constant 0 : i32
    %c0_i32_0 = arith.constant 0 : i32
    %c0_i32_1 = arith.constant 0 : i32
    return %arg0, %c0_i32, %c0_i32_0 : i32, i32, i32
  }
  func.func @transform_2(%arg0: i32, %arg1: i32) -> (i32, i32, i32) {
    %c0_i32 = arith.constant 0 : i32
    %c0_i32_0 = arith.constant 0 : i32
    %c0_i32_1 = arith.constant 0 : i32
    return %arg0, %c0_i32, %c0_i32_0 : i32, i32, i32
  }
  func.func @transform_3(%arg0: i32, %arg1: i32) -> (i32, i32) {
    %c0_i32 = arith.constant 0 : i32
    %c0_i32_0 = arith.constant 0 : i32
    %c0_i32_1 = arith.constant 0 : i32
    return %c0_i32, %c0_i32_0 : i32, i32
  }
  func.func @transform_4(%arg0: i32, %arg1: i32) -> (i32, i32) {
    %c0_i32 = arith.constant 0 : i32
    %c0_i32_0 = arith.constant 0 : i32
    %c0_i32_1 = arith.constant 0 : i32
    return %c0_i32, %c0_i32_0 : i32, i32
  }
  func.func @transform_5(%arg0: i32, %arg1: i32) -> (i32, i32, i32) {
    %c0_i32 = arith.constant 0 : i32
    %c0_i32_0 = arith.constant 0 : i32
    return %arg0, %arg1, %c0_i32 : i32, i32, i32
  }
}

module attributes {stable_mosaic.version = 11 : i64} {
  func.func @_matmul_bias_kernel(%arg0: i32, %arg1: i32, %arg2: i32, %arg3: memref<32x128xbf16, #tpu.memory_space<vmem>>, %arg4: memref<128x128xbf16, #tpu.memory_space<vmem>>, %arg5: memref<1x128xf32, #tpu.memory_space<vmem>>, %arg6: memref<32x128xf32, #tpu.memory_space<vmem>>, %arg7: memref<32x128xf32, #tpu.memory_space<vmem>>) attributes {dimension_semantics = [#tpu.dimension_semantics<parallel>, #tpu.dimension_semantics<parallel>, #tpu.dimension_semantics<arbitrary>], iteration_bounds = array<i64: 1, 1, 9>, scalar_prefetch = 0 : i64, scratch_operands = 1 : i64, tpu.core_type = #tpu.core_type<tc>, window_params = [{transform_indices = @transform_0, window_bounds = array<i64: 32, 128>}, {transform_indices = @transform_1, window_bounds = array<i64: 128, 128>}, {transform_indices = @transform_2, window_bounds = array<i64: 1, 128>}, {transform_indices = @transform_3, window_bounds = array<i64: 32, 128>}]} {
    %c0_i32 = arith.constant 0 : i32
    %0 = arith.cmpi eq, %arg2, %c0_i32 : i32
    %1 = arith.extui %0 : i1 to i32
    %c0_i32_0 = arith.constant 0 : i32
    %2 = arith.cmpi ne, %1, %c0_i32_0 : i32
    scf.if %2 {
      %cst_9 = arith.constant 0.000000e+00 : f32
      %12 = vector.broadcast %cst_9 : f32 to vector<32x128xf32>
      %c0_10 = arith.constant 0 : index
      %c0_11 = arith.constant 0 : index
      %13 = vector.load %arg7[%c0_10, %c0_11] : memref<32x128xf32, #tpu.memory_space<vmem>>, vector<32x128xf32>
      tpu.vector_store %arg7[%c0_10, %c0_11], %12 {strides = array<i32>} : memref<32x128xf32, #tpu.memory_space<vmem>>, vector<32x128xf32>,
    } else {
    }
    %c0 = arith.constant 0 : index
    %c0_1 = arith.constant 0 : index
    %3 = vector.load %arg7[%c0, %c0_1] : memref<32x128xf32, #tpu.memory_space<vmem>>, vector<32x128xf32>
    %c0_2 = arith.constant 0 : index
    %c0_3 = arith.constant 0 : index
    %4 = vector.load %arg3[%c0_2, %c0_3] : memref<32x128xbf16, #tpu.memory_space<vmem>>, vector<32x128xbf16>
    %c0_4 = arith.constant 0 : index
    %c0_5 = arith.constant 0 : index
    %5 = vector.load %arg4[%c0_4, %c0_5] : memref<128x128xbf16, #tpu.memory_space<vmem>>, vector<128x128xbf16>
    %cst = arith.constant dense<0.000000e+00> : vector<32x128xf32>
    %6 = tpu.matmul %4, %5, %cst {dimension_numbers = #tpu.dot_dimension_numbers<[1], [0], [0], [1], [0, 0, 1, 1], [], []>} : vector<32x128xbf16>, vector<128x128xbf16>, vector<32x128xf32> -> vector<32x128xf32>
    %7 = arith.addf %3, %6 : vector<32x128xf32>
    %c0_6 = arith.constant 0 : index
    %c0_7 = arith.constant 0 : index
    %8 = vector.load %arg7[%c0_6, %c0_7] : memref<32x128xf32, #tpu.memory_space<vmem>>, vector<32x128xf32>
    tpu.vector_store %arg7[%c0_6, %c0_7], %7 {strides = array<i32>} : memref<32x128xf32, #tpu.memory_space<vmem>>, vector<32x128xf32>,
    %c8_i32 = arith.constant 8 : i32
    %9 = arith.cmpi eq, %arg2, %c8_i32 : i32
    %10 = arith.extui %9 : i1 to i32
    %c0_i32_8 = arith.constant 0 : i32
    %11 = arith.cmpi ne, %10, %c0_i32_8 : i32
    scf.if %11 {
      %c0_9 = arith.constant 0 : index
      %c0_10 = arith.constant 0 : index
      %12 = vector.load %arg7[%c0_9, %c0_10] : memref<32x128xf32, #tpu.memory_space<vmem>>, vector<32x128xf32>
      %c0_11 = arith.constant 0 : index
      %c0_12 = arith.constant 0 : index
      %13 = vector.load %arg5[%c0_11, %c0_12] : memref<1x128xf32, #tpu.memory_space<vmem>>, vector<1x128xf32>
      %14 = vector.broadcast %13 : vector<1x128xf32> to vector<32x128xf32>
      %15 = arith.addf %12, %14 : vector<32x128xf32>
      %c0_13 = arith.constant 0 : index
      %c0_14 = arith.constant 0 : index
      %16 = vector.load %arg6[%c0_13, %c0_14] : memref<32x128xf32, #tpu.memory_space<vmem>>, vector<32x128xf32>
      tpu.vector_store %arg6[%c0_13, %c0_14], %15 {strides = array<i32>} : memref<32x128xf32, #tpu.memory_space<vmem>>, vector<32x128xf32>,
    } else {
    }
    return
  }
  func.func @transform_0(%arg0: i32, %arg1: i32, %arg2: i32) -> (i32, i32) {
    %c0_i32 = arith.constant 0 : i32
    return %arg0, %arg2 : i32, i32
  }
  func.func @transform_1(%arg0: i32, %arg1: i32, %arg2: i32) -> (i32, i32) {
    %c0_i32 = arith.constant 0 : i32
    return %arg2, %arg1 : i32, i32
  }
  func.func @transform_2(%arg0: i32, %arg1: i32, %arg2: i32) -> (i32, i32) {
    %c0_i32 = arith.constant 0 : i32
    %c0_i32_0 = arith.constant 0 : i32
    return %c0_i32, %arg1 : i32, i32
  }
  func.func @transform_3(%arg0: i32, %arg1: i32, %arg2: i32) -> (i32, i32) {
    %c0_i32 = arith.constant 0 : i32
    return %arg0, %arg1 : i32, i32
  }
}

module attributes {stable_mosaic.version = 11 : i64} {
  func.func @_in_norm_kernel(%arg0: i32, %arg1: i32, %arg2: memref<1x16x128xf32, #tpu.memory_space<vmem>>, %arg3: memref<1x1x128xf32, #tpu.memory_space<vmem>>, %arg4: memref<1x1x128xf32, #tpu.memory_space<vmem>>, %arg5: memref<1x128xf32, #tpu.memory_space<vmem>>, %arg6: memref<1x128xf32, #tpu.memory_space<vmem>>, %arg7: memref<1x16x128xf32, #tpu.memory_space<vmem>>, %arg8: memref<1x16x128xf32, #tpu.memory_space<vmem>>) attributes {dimension_semantics = [#tpu.dimension_semantics<parallel>, #tpu.dimension_semantics<parallel>], iteration_bounds = array<i64: 2, 1>, scalar_prefetch = 0 : i64, scratch_operands = 0 : i64, tpu.core_type = #tpu.core_type<tc>, window_params = [{transform_indices = @transform_0, window_bounds = array<i64: 1, 16, 128>}, {transform_indices = @transform_1, window_bounds = array<i64: 1, 1, 128>}, {transform_indices = @transform_2, window_bounds = array<i64: 1, 1, 128>}, {pipeline_mode = #tpu.pipeline_mode<synchronous>, transform_indices = @transform_3, window_bounds = array<i64: 1, 128>}, {pipeline_mode = #tpu.pipeline_mode<synchronous>, transform_indices = @transform_4, window_bounds = array<i64: 1, 128>}, {transform_indices = @transform_5, window_bounds = array<i64: 1, 16, 128>}, {transform_indices = @transform_6, window_bounds = array<i64: 1, 16, 128>}]} {
    %c0 = arith.constant 0 : index
    %c0_0 = arith.constant 0 : index
    %c0_1 = arith.constant 0 : index
    %0 = vector.load %arg2[%c0, %c0_0, %c0_1] : memref<1x16x128xf32, #tpu.memory_space<vmem>>, vector<1x16x128xf32>
    %c0_2 = arith.constant 0 : index
    %c0_3 = arith.constant 0 : index
    %c0_4 = arith.constant 0 : index
    %1 = vector.load %arg3[%c0_2, %c0_3, %c0_4] : memref<1x1x128xf32, #tpu.memory_space<vmem>>, vector<1x1x128xf32>
    %cst = arith.constant 6.250000e-02 : f32
    %2 = vector.broadcast %cst : f32 to vector<1x1x128xf32>
    %3 = arith.mulf %1, %2 : vector<1x1x128xf32>
    %c0_5 = arith.constant 0 : index
    %c0_6 = arith.constant 0 : index
    %c0_7 = arith.constant 0 : index
    %4 = vector.load %arg4[%c0_5, %c0_6, %c0_7] : memref<1x1x128xf32, #tpu.memory_space<vmem>>, vector<1x1x128xf32>
    %cst_8 = arith.constant 6.250000e-02 : f32
    %5 = vector.broadcast %cst_8 : f32 to vector<1x1x128xf32>
    %6 = arith.mulf %4, %5 : vector<1x1x128xf32>
    %7 = arith.mulf %3, %3 : vector<1x1x128xf32>
    %8 = arith.subf %6, %7 : vector<1x1x128xf32>
    %cst_9 = arith.constant 0.000000e+00 : f32
    %9 = vector.broadcast %cst_9 : f32 to vector<1x1x128xf32>
    %10 = arith.maximumf %8, %9 : vector<1x1x128xf32>
    %cst_10 = arith.constant 9.99999974E-6 : f32
    %11 = vector.broadcast %cst_10 : f32 to vector<1x1x128xf32>
    %12 = arith.addf %10, %11 : vector<1x1x128xf32>
    %13 = math.rsqrt %12 : vector<1x1x128xf32>
    %14 = vector.broadcast %3 : vector<1x1x128xf32> to vector<1x16x128xf32>
    %15 = arith.subf %0, %14 : vector<1x16x128xf32>
    %c0_11 = arith.constant 0 : index
    %c0_12 = arith.constant 0 : index
    %16 = vector.load %arg5[%c0_11, %c0_12] : memref<1x128xf32, #tpu.memory_space<vmem>>, vector<1x128xf32>
    %17 = vector.shape_cast %16 : vector<1x128xf32> to vector<1x1x128xf32>
    %18 = arith.mulf %13, %17 : vector<1x1x128xf32>
    %19 = vector.broadcast %18 : vector<1x1x128xf32> to vector<1x16x128xf32>
    %20 = arith.mulf %15, %19 : vector<1x16x128xf32>
    %c0_13 = arith.constant 0 : index
    %c0_14 = arith.constant 0 : index
    %21 = vector.load %arg6[%c0_13, %c0_14] : memref<1x128xf32, #tpu.memory_space<vmem>>, vector<1x128xf32>
    %22 = vector.shape_cast %21 : vector<1x128xf32> to vector<1x1x128xf32>
    %23 = vector.broadcast %22 : vector<1x1x128xf32> to vector<1x16x128xf32>
    %24 = arith.addf %20, %23 : vector<1x16x128xf32>
    %c0_15 = arith.constant 0 : index
    %c0_16 = arith.constant 0 : index
    %c0_17 = arith.constant 0 : index
    %25 = vector.load %arg7[%c0_15, %c0_16, %c0_17] : memref<1x16x128xf32, #tpu.memory_space<vmem>>, vector<1x16x128xf32>
    %26 = arith.addf %24, %25 : vector<1x16x128xf32>
    %c0_18 = arith.constant 0 : index
    %c0_19 = arith.constant 0 : index
    %c0_20 = arith.constant 0 : index
    %27 = vector.load %arg8[%c0_18, %c0_19, %c0_20] : memref<1x16x128xf32, #tpu.memory_space<vmem>>, vector<1x16x128xf32>
    tpu.vector_store %arg8[%c0_18, %c0_19, %c0_20], %26 {strides = array<i32>} : memref<1x16x128xf32, #tpu.memory_space<vmem>>, vector<1x16x128xf32>,
    return
  }
  func.func @transform_0(%arg0: i32, %arg1: i32) -> (i32, i32, i32) {
    %c0_i32 = arith.constant 0 : i32
    %c0_i32_0 = arith.constant 0 : i32
    return %arg0, %arg1, %c0_i32 : i32, i32, i32
  }
  func.func @transform_1(%arg0: i32, %arg1: i32) -> (i32, i32, i32) {
    %c0_i32 = arith.constant 0 : i32
    %c0_i32_0 = arith.constant 0 : i32
    %c0_i32_1 = arith.constant 0 : i32
    return %arg0, %c0_i32, %c0_i32_0 : i32, i32, i32
  }
  func.func @transform_2(%arg0: i32, %arg1: i32) -> (i32, i32, i32) {
    %c0_i32 = arith.constant 0 : i32
    %c0_i32_0 = arith.constant 0 : i32
    %c0_i32_1 = arith.constant 0 : i32
    return %arg0, %c0_i32, %c0_i32_0 : i32, i32, i32
  }
  func.func @transform_3(%arg0: i32, %arg1: i32) -> (i32, i32) {
    %c0_i32 = arith.constant 0 : i32
    %c0_i32_0 = arith.constant 0 : i32
    %c0_i32_1 = arith.constant 0 : i32
    return %c0_i32, %c0_i32_0 : i32, i32
  }
  func.func @transform_4(%arg0: i32, %arg1: i32) -> (i32, i32) {
    %c0_i32 = arith.constant 0 : i32
    %c0_i32_0 = arith.constant 0 : i32
    %c0_i32_1 = arith.constant 0 : i32
    return %c0_i32, %c0_i32_0 : i32, i32
  }
  func.func @transform_5(%arg0: i32, %arg1: i32) -> (i32, i32, i32) {
    %c0_i32 = arith.constant 0 : i32
    %c0_i32_0 = arith.constant 0 : i32
    return %arg0, %arg1, %c0_i32 : i32, i32, i32
  }
  func.func @transform_6(%arg0: i32, %arg1: i32) -> (i32, i32, i32) {
    %c0_i32 = arith.constant 0 : i32
    %c0_i32_0 = arith.constant 0 : i32
    return %arg0, %arg1, %c0_i32 : i32, i32, i32
  }
}

module attributes {stable_mosaic.version = 11 : i64} {
  func.func @_matmul_bias_kernel(%arg0: i32, %arg1: i32, %arg2: i32, %arg3: memref<128x128xbf16, #tpu.memory_space<vmem>>, %arg4: memref<128x128xbf16, #tpu.memory_space<vmem>>, %arg5: memref<1x128xf32, #tpu.memory_space<vmem>>, %arg6: memref<128x128xf32, #tpu.memory_space<vmem>>, %arg7: memref<128x128xf32, #tpu.memory_space<vmem>>) attributes {dimension_semantics = [#tpu.dimension_semantics<parallel>, #tpu.dimension_semantics<parallel>, #tpu.dimension_semantics<arbitrary>], iteration_bounds = array<i64: 1, 1, 9>, scalar_prefetch = 0 : i64, scratch_operands = 1 : i64, tpu.core_type = #tpu.core_type<tc>, window_params = [{transform_indices = @transform_0, window_bounds = array<i64: 128, 128>}, {transform_indices = @transform_1, window_bounds = array<i64: 128, 128>}, {transform_indices = @transform_2, window_bounds = array<i64: 1, 128>}, {transform_indices = @transform_3, window_bounds = array<i64: 128, 128>}]} {
    %c0_i32 = arith.constant 0 : i32
    %0 = arith.cmpi eq, %arg2, %c0_i32 : i32
    %1 = arith.extui %0 : i1 to i32
    %c0_i32_0 = arith.constant 0 : i32
    %2 = arith.cmpi ne, %1, %c0_i32_0 : i32
    scf.if %2 {
      %cst_9 = arith.constant 0.000000e+00 : f32
      %12 = vector.broadcast %cst_9 : f32 to vector<128x128xf32>
      %c0_10 = arith.constant 0 : index
      %c0_11 = arith.constant 0 : index
      %13 = vector.load %arg7[%c0_10, %c0_11] : memref<128x128xf32, #tpu.memory_space<vmem>>, vector<128x128xf32>
      tpu.vector_store %arg7[%c0_10, %c0_11], %12 {strides = array<i32>} : memref<128x128xf32, #tpu.memory_space<vmem>>, vector<128x128xf32>,
    } else {
    }
    %c0 = arith.constant 0 : index
    %c0_1 = arith.constant 0 : index
    %3 = vector.load %arg7[%c0, %c0_1] : memref<128x128xf32, #tpu.memory_space<vmem>>, vector<128x128xf32>
    %c0_2 = arith.constant 0 : index
    %c0_3 = arith.constant 0 : index
    %4 = vector.load %arg3[%c0_2, %c0_3] : memref<128x128xbf16, #tpu.memory_space<vmem>>, vector<128x128xbf16>
    %c0_4 = arith.constant 0 : index
    %c0_5 = arith.constant 0 : index
    %5 = vector.load %arg4[%c0_4, %c0_5] : memref<128x128xbf16, #tpu.memory_space<vmem>>, vector<128x128xbf16>
    %cst = arith.constant dense<0.000000e+00> : vector<128x128xf32>
    %6 = tpu.matmul %4, %5, %cst {dimension_numbers = #tpu.dot_dimension_numbers<[1], [0], [0], [1], [0, 0, 1, 1], [], []>} : vector<128x128xbf16>, vector<128x128xbf16>, vector<128x128xf32> -> vector<128x128xf32>
    %7 = arith.addf %3, %6 : vector<128x128xf32>
    %c0_6 = arith.constant 0 : index
    %c0_7 = arith.constant 0 : index
    %8 = vector.load %arg7[%c0_6, %c0_7] : memref<128x128xf32, #tpu.memory_space<vmem>>, vector<128x128xf32>
    tpu.vector_store %arg7[%c0_6, %c0_7], %7 {strides = array<i32>} : memref<128x128xf32, #tpu.memory_space<vmem>>, vector<128x128xf32>,
    %c8_i32 = arith.constant 8 : i32
    %9 = arith.cmpi eq, %arg2, %c8_i32 : i32
    %10 = arith.extui %9 : i1 to i32
    %c0_i32_8 = arith.constant 0 : i32
    %11 = arith.cmpi ne, %10, %c0_i32_8 : i32
    scf.if %11 {
      %c0_9 = arith.constant 0 : index
      %c0_10 = arith.constant 0 : index
      %12 = vector.load %arg7[%c0_9, %c0_10] : memref<128x128xf32, #tpu.memory_space<vmem>>, vector<128x128xf32>
      %c0_11 = arith.constant 0 : index
      %c0_12 = arith.constant 0 : index
      %13 = vector.load %arg5[%c0_11, %c0_12] : memref<1x128xf32, #tpu.memory_space<vmem>>, vector<1x128xf32>
      %14 = vector.broadcast %13 : vector<1x128xf32> to vector<128x128xf32>
      %15 = arith.addf %12, %14 : vector<128x128xf32>
      %cst_13 = arith.constant 0.000000e+00 : f32
      %16 = vector.broadcast %cst_13 : f32 to vector<128x128xf32>
      %17 = arith.maximumf %15, %16 : vector<128x128xf32>
      %c0_14 = arith.constant 0 : index
      %c0_15 = arith.constant 0 : index
      %18 = vector.load %arg6[%c0_14, %c0_15] : memref<128x128xf32, #tpu.memory_space<vmem>>, vector<128x128xf32>
      tpu.vector_store %arg6[%c0_14, %c0_15], %17 {strides = array<i32>} : memref<128x128xf32, #tpu.memory_space<vmem>>, vector<128x128xf32>,
    } else {
    }
    return
  }
  func.func @transform_0(%arg0: i32, %arg1: i32, %arg2: i32) -> (i32, i32) {
    %c0_i32 = arith.constant 0 : i32
    return %arg0, %arg2 : i32, i32
  }
  func.func @transform_1(%arg0: i32, %arg1: i32, %arg2: i32) -> (i32, i32) {
    %c0_i32 = arith.constant 0 : i32
    return %arg2, %arg1 : i32, i32
  }
  func.func @transform_2(%arg0: i32, %arg1: i32, %arg2: i32) -> (i32, i32) {
    %c0_i32 = arith.constant 0 : i32
    %c0_i32_0 = arith.constant 0 : i32
    return %c0_i32, %arg1 : i32, i32
  }
  func.func @transform_3(%arg0: i32, %arg1: i32, %arg2: i32) -> (i32, i32) {
    %c0_i32 = arith.constant 0 : i32
    return %arg0, %arg1 : i32, i32
  }
}

module attributes {stable_mosaic.version = 11 : i64} {
  func.func @_matmul_bias_kernel(%arg0: i32, %arg1: i32, %arg2: i32, %arg3: memref<256x128xbf16, #tpu.memory_space<vmem>>, %arg4: memref<128x128xbf16, #tpu.memory_space<vmem>>, %arg5: memref<1x128xf32, #tpu.memory_space<vmem>>, %arg6: memref<256x128xf32, #tpu.memory_space<vmem>>, %arg7: memref<256x128xf32, #tpu.memory_space<vmem>>) attributes {dimension_semantics = [#tpu.dimension_semantics<parallel>, #tpu.dimension_semantics<parallel>, #tpu.dimension_semantics<arbitrary>], iteration_bounds = array<i64: 2, 1, 5>, scalar_prefetch = 0 : i64, scratch_operands = 1 : i64, tpu.core_type = #tpu.core_type<tc>, window_params = [{transform_indices = @transform_0, window_bounds = array<i64: 256, 128>}, {transform_indices = @transform_1, window_bounds = array<i64: 128, 128>}, {transform_indices = @transform_2, window_bounds = array<i64: 1, 128>}, {transform_indices = @transform_3, window_bounds = array<i64: 256, 128>}]} {
    %c0_i32 = arith.constant 0 : i32
    %0 = arith.cmpi eq, %arg2, %c0_i32 : i32
    %1 = arith.extui %0 : i1 to i32
    %c0_i32_0 = arith.constant 0 : i32
    %2 = arith.cmpi ne, %1, %c0_i32_0 : i32
    scf.if %2 {
      %cst_9 = arith.constant 0.000000e+00 : f32
      %12 = vector.broadcast %cst_9 : f32 to vector<256x128xf32>
      %c0_10 = arith.constant 0 : index
      %c0_11 = arith.constant 0 : index
      %13 = vector.load %arg7[%c0_10, %c0_11] : memref<256x128xf32, #tpu.memory_space<vmem>>, vector<256x128xf32>
      tpu.vector_store %arg7[%c0_10, %c0_11], %12 {strides = array<i32>} : memref<256x128xf32, #tpu.memory_space<vmem>>, vector<256x128xf32>,
    } else {
    }
    %c0 = arith.constant 0 : index
    %c0_1 = arith.constant 0 : index
    %3 = vector.load %arg7[%c0, %c0_1] : memref<256x128xf32, #tpu.memory_space<vmem>>, vector<256x128xf32>
    %c0_2 = arith.constant 0 : index
    %c0_3 = arith.constant 0 : index
    %4 = vector.load %arg3[%c0_2, %c0_3] : memref<256x128xbf16, #tpu.memory_space<vmem>>, vector<256x128xbf16>
    %c0_4 = arith.constant 0 : index
    %c0_5 = arith.constant 0 : index
    %5 = vector.load %arg4[%c0_4, %c0_5] : memref<128x128xbf16, #tpu.memory_space<vmem>>, vector<128x128xbf16>
    %cst = arith.constant dense<0.000000e+00> : vector<256x128xf32>
    %6 = tpu.matmul %4, %5, %cst {dimension_numbers = #tpu.dot_dimension_numbers<[1], [0], [0], [1], [0, 0, 1, 1], [], []>} : vector<256x128xbf16>, vector<128x128xbf16>, vector<256x128xf32> -> vector<256x128xf32>
    %7 = arith.addf %3, %6 : vector<256x128xf32>
    %c0_6 = arith.constant 0 : index
    %c0_7 = arith.constant 0 : index
    %8 = vector.load %arg7[%c0_6, %c0_7] : memref<256x128xf32, #tpu.memory_space<vmem>>, vector<256x128xf32>
    tpu.vector_store %arg7[%c0_6, %c0_7], %7 {strides = array<i32>} : memref<256x128xf32, #tpu.memory_space<vmem>>, vector<256x128xf32>,
    %c4_i32 = arith.constant 4 : i32
    %9 = arith.cmpi eq, %arg2, %c4_i32 : i32
    %10 = arith.extui %9 : i1 to i32
    %c0_i32_8 = arith.constant 0 : i32
    %11 = arith.cmpi ne, %10, %c0_i32_8 : i32
    scf.if %11 {
      %c0_9 = arith.constant 0 : index
      %c0_10 = arith.constant 0 : index
      %12 = vector.load %arg7[%c0_9, %c0_10] : memref<256x128xf32, #tpu.memory_space<vmem>>, vector<256x128xf32>
      %c0_11 = arith.constant 0 : index
      %c0_12 = arith.constant 0 : index
      %13 = vector.load %arg5[%c0_11, %c0_12] : memref<1x128xf32, #tpu.memory_space<vmem>>, vector<1x128xf32>
      %14 = vector.broadcast %13 : vector<1x128xf32> to vector<256x128xf32>
      %15 = arith.addf %12, %14 : vector<256x128xf32>
      %cst_13 = arith.constant 0.000000e+00 : f32
      %16 = vector.broadcast %cst_13 : f32 to vector<256x128xf32>
      %17 = arith.maximumf %15, %16 : vector<256x128xf32>
      %c0_14 = arith.constant 0 : index
      %c0_15 = arith.constant 0 : index
      %18 = vector.load %arg6[%c0_14, %c0_15] : memref<256x128xf32, #tpu.memory_space<vmem>>, vector<256x128xf32>
      tpu.vector_store %arg6[%c0_14, %c0_15], %17 {strides = array<i32>} : memref<256x128xf32, #tpu.memory_space<vmem>>, vector<256x128xf32>,
    } else {
    }
    return
  }
  func.func @transform_0(%arg0: i32, %arg1: i32, %arg2: i32) -> (i32, i32) {
    %c0_i32 = arith.constant 0 : i32
    return %arg0, %arg2 : i32, i32
  }
  func.func @transform_1(%arg0: i32, %arg1: i32, %arg2: i32) -> (i32, i32) {
    %c0_i32 = arith.constant 0 : i32
    return %arg2, %arg1 : i32, i32
  }
  func.func @transform_2(%arg0: i32, %arg1: i32, %arg2: i32) -> (i32, i32) {
    %c0_i32 = arith.constant 0 : i32
    %c0_i32_0 = arith.constant 0 : i32
    return %c0_i32, %arg1 : i32, i32
  }
  func.func @transform_3(%arg0: i32, %arg1: i32, %arg2: i32) -> (i32, i32) {
    %c0_i32 = arith.constant 0 : i32
    return %arg0, %arg1 : i32, i32
  }
}

module attributes {stable_mosaic.version = 11 : i64} {
  func.func @_matmul_bias_kernel(%arg0: i32, %arg1: i32, %arg2: i32, %arg3: memref<256x128xbf16, #tpu.memory_space<vmem>>, %arg4: memref<128x128xbf16, #tpu.memory_space<vmem>>, %arg5: memref<1x128xf32, #tpu.memory_space<vmem>>, %arg6: memref<256x128xf32, #tpu.memory_space<vmem>>, %arg7: memref<256x128xf32, #tpu.memory_space<vmem>>) attributes {dimension_semantics = [#tpu.dimension_semantics<parallel>, #tpu.dimension_semantics<parallel>, #tpu.dimension_semantics<arbitrary>], iteration_bounds = array<i64: 2, 1, 21>, scalar_prefetch = 0 : i64, scratch_operands = 1 : i64, tpu.core_type = #tpu.core_type<tc>, window_params = [{transform_indices = @transform_0, window_bounds = array<i64: 256, 128>}, {transform_indices = @transform_1, window_bounds = array<i64: 128, 128>}, {transform_indices = @transform_2, window_bounds = array<i64: 1, 128>}, {transform_indices = @transform_3, window_bounds = array<i64: 256, 128>}]} {
    %c0_i32 = arith.constant 0 : i32
    %0 = arith.cmpi eq, %arg2, %c0_i32 : i32
    %1 = arith.extui %0 : i1 to i32
    %c0_i32_0 = arith.constant 0 : i32
    %2 = arith.cmpi ne, %1, %c0_i32_0 : i32
    scf.if %2 {
      %cst_9 = arith.constant 0.000000e+00 : f32
      %12 = vector.broadcast %cst_9 : f32 to vector<256x128xf32>
      %c0_10 = arith.constant 0 : index
      %c0_11 = arith.constant 0 : index
      %13 = vector.load %arg7[%c0_10, %c0_11] : memref<256x128xf32, #tpu.memory_space<vmem>>, vector<256x128xf32>
      tpu.vector_store %arg7[%c0_10, %c0_11], %12 {strides = array<i32>} : memref<256x128xf32, #tpu.memory_space<vmem>>, vector<256x128xf32>,
    } else {
    }
    %c0 = arith.constant 0 : index
    %c0_1 = arith.constant 0 : index
    %3 = vector.load %arg7[%c0, %c0_1] : memref<256x128xf32, #tpu.memory_space<vmem>>, vector<256x128xf32>
    %c0_2 = arith.constant 0 : index
    %c0_3 = arith.constant 0 : index
    %4 = vector.load %arg3[%c0_2, %c0_3] : memref<256x128xbf16, #tpu.memory_space<vmem>>, vector<256x128xbf16>
    %c0_4 = arith.constant 0 : index
    %c0_5 = arith.constant 0 : index
    %5 = vector.load %arg4[%c0_4, %c0_5] : memref<128x128xbf16, #tpu.memory_space<vmem>>, vector<128x128xbf16>
    %cst = arith.constant dense<0.000000e+00> : vector<256x128xf32>
    %6 = tpu.matmul %4, %5, %cst {dimension_numbers = #tpu.dot_dimension_numbers<[1], [0], [0], [1], [0, 0, 1, 1], [], []>} : vector<256x128xbf16>, vector<128x128xbf16>, vector<256x128xf32> -> vector<256x128xf32>
    %7 = arith.addf %3, %6 : vector<256x128xf32>
    %c0_6 = arith.constant 0 : index
    %c0_7 = arith.constant 0 : index
    %8 = vector.load %arg7[%c0_6, %c0_7] : memref<256x128xf32, #tpu.memory_space<vmem>>, vector<256x128xf32>
    tpu.vector_store %arg7[%c0_6, %c0_7], %7 {strides = array<i32>} : memref<256x128xf32, #tpu.memory_space<vmem>>, vector<256x128xf32>,
    %c20_i32 = arith.constant 20 : i32
    %9 = arith.cmpi eq, %arg2, %c20_i32 : i32
    %10 = arith.extui %9 : i1 to i32
    %c0_i32_8 = arith.constant 0 : i32
    %11 = arith.cmpi ne, %10, %c0_i32_8 : i32
    scf.if %11 {
      %c0_9 = arith.constant 0 : index
      %c0_10 = arith.constant 0 : index
      %12 = vector.load %arg7[%c0_9, %c0_10] : memref<256x128xf32, #tpu.memory_space<vmem>>, vector<256x128xf32>
      %c0_11 = arith.constant 0 : index
      %c0_12 = arith.constant 0 : index
      %13 = vector.load %arg5[%c0_11, %c0_12] : memref<1x128xf32, #tpu.memory_space<vmem>>, vector<1x128xf32>
      %14 = vector.broadcast %13 : vector<1x128xf32> to vector<256x128xf32>
      %15 = arith.addf %12, %14 : vector<256x128xf32>
      %cst_13 = arith.constant 0.000000e+00 : f32
      %16 = vector.broadcast %cst_13 : f32 to vector<256x128xf32>
      %17 = arith.maximumf %15, %16 : vector<256x128xf32>
      %c0_14 = arith.constant 0 : index
      %c0_15 = arith.constant 0 : index
      %18 = vector.load %arg6[%c0_14, %c0_15] : memref<256x128xf32, #tpu.memory_space<vmem>>, vector<256x128xf32>
      tpu.vector_store %arg6[%c0_14, %c0_15], %17 {strides = array<i32>} : memref<256x128xf32, #tpu.memory_space<vmem>>, vector<256x128xf32>,
    } else {
    }
    return
  }
  func.func @transform_0(%arg0: i32, %arg1: i32, %arg2: i32) -> (i32, i32) {
    %c0_i32 = arith.constant 0 : i32
    return %arg0, %arg2 : i32, i32
  }
  func.func @transform_1(%arg0: i32, %arg1: i32, %arg2: i32) -> (i32, i32) {
    %c0_i32 = arith.constant 0 : i32
    return %arg2, %arg1 : i32, i32
  }
  func.func @transform_2(%arg0: i32, %arg1: i32, %arg2: i32) -> (i32, i32) {
    %c0_i32 = arith.constant 0 : i32
    %c0_i32_0 = arith.constant 0 : i32
    return %c0_i32, %arg1 : i32, i32
  }
  func.func @transform_3(%arg0: i32, %arg1: i32, %arg2: i32) -> (i32, i32) {
    %c0_i32 = arith.constant 0 : i32
    return %arg0, %arg1 : i32, i32
  }
}

</mosaic_0001>

<bundles_post_ra>
// kernel: transformer_forward.42
= control target key start
LH: loop header
LB: loop body
LE: loop exit
PB: predicated region body
PF: predicated region fallthrough
CT: control target
= control target key end

     0   :  { %s1425_s12 = smov 0   ;;  %s1427_s13 = smov 0   ;;  %s1618_s0 = inlined_call_operand.vmem [shape: bf16[512,256], index: 0, kind: input, shape index: {}]   ;;  %s1619_s1 = inlined_call_operand.vmem [shape: bf16[256,128], index: 1, kind: input, shape index: {}]   ;;  %s1620_s2 = inlined_call_operand.vmem [shape: f32[1,128], index: 2, kind: input, shape index: {}]   ;;  %s1621_s3 = inlined_call_operand.vmem [shape: f32[512,128], index: 3, kind: output, shape index: {}]  }
   0x1   :  { %s1429_s14 = smov 0  }
   0x2 LB: > { %s32_s15 = sadd.s32 1, %s1399_s13  ;;  %p1107_p0 = scmp.ge.s32.totalorder %s1403_s14, 1  ;;  %s1403_s14 = sphi %s1429_s14, %s13_s14   ;;  %s1399_s13 = sphi %s1427_s13, %s1623_s13   ;;  %s1395_s12 = sphi %s1425_s12, %s1622_s12  }
   0x3   : > { %p34_p1 = scmp.ge.s32.totalorder %s32_s15, 2  ;;  %p191_p2 = scmp.lt.s32.totalorder %s1403_s14, 3 }
   0x5   : > { %s1625_s15 = smov (%p34_p1, %s32_s15), 0  ;;  %p192_p3 = pnand %p1107_p0, %p191_p2 }
   0x6   : > { %s1108_s18 = sshll.u32 (!%p192_p3), %s1395_s12, 5 }
   0x7   : > { %195 = sbr.rel (%p192_p3) target bundleno = 305 (0x131), region = 32  ;;  %p236_p4 = scmp.lt.s32.totalorder (!%p192_p3), %s1108_s18, 63 }
   0xc   : > { %v1317_v0 = vld [vmem:[%s1619_s1 + $0x78] sm:$0xff]   ;;  %v1319_v2 = vld [vmem:[%s1619_s1 + $0x70] sm:$0xff]   ;;  %v1321_v4 = vld [vmem:[%s1619_s1 + $0x68] sm:$0xff]   ;;  %s1627_s18 = smov (!%p236_p4, %s1108_s18), 63 }
   0xd   : > { %v1318_v1 = vld [vmem:[%s1619_s1 + $0x38] sm:$0xff]   ;;  %1165 = vmatprep.subr.bf16.mxu0 %v1317_v0  ;;  %1277 = vmatprep.subr.bf16.mxu1 %v1317_v0  ;;  %v1320_v3 = vld [vmem:[%s1619_s1 + $0x30] sm:$0xff]   ;;  %v1322_v5 = vld [vmem:[%s1619_s1 + $0x28] sm:$0xff]   ;;  %s1164_s6 = sshll.u32 %s1627_s18, 3 }
   0xe   : > { %1166 = vmatpush3.bf16.msra.mxu0 %v1318_v1  ;;  %1285 = vmatpush3.bf16.msra.mxu1 %v1318_v1  ;;  %v1323_v6 = vld [vmem:[%s1619_s1 + $0x60] sm:$0xff]   ;;  %v1325_v8 = vld [vmem:[%s1619_s1 + $0x58] sm:$0xff]   ;;  %s1478_s11 = scalar_lea.vmem %s1618_s0, %s1164_s6  ;;  %v1327_v10 = vld [vmem:[%s1619_s1 + $0x50] sm:$0xff]   ;;  %s1543_s8 = scalar_lea.vmem %s1621_s3, %s1164_s6 }
   0xf   : > { %1167 = vmatprep.subr.bf16.mxu0 %v1319_v2  ;;  %1278 = vmatprep.subr.bf16.mxu1 %v1319_v2  ;;  %v1324_v7 = vld [vmem:[%s1619_s1 + $0x20] sm:$0xff]   ;;  %v1326_v9 = vld [vmem:[%s1619_s1 + $0x18] sm:$0xff]   ;;  %v1328_v13 = vld [vmem:[%s1619_s1 + $0x10] sm:$0xff]  }
  0x10   : > { %v1335_v11 = vld [vmem:[%s1478_s11 + $0x4] ss:$8 sps:$4 sm:$0xff]   ;;  %v1333_v18 = vld [vmem:[%s1478_s11] ss:$8 sps:$4 sm:$0xff]   ;;  %v1339_v20 = vld [vmem:[%s1478_s11 + $0x14] ss:$8 sps:$4 sm:$0xff]  }
  0x11   : > { %v1338_v12 = vld [vmem:[%s1478_s11 + $0x84] ss:$8 sps:$4 sm:$0xff]   ;;  %688 = vmatprep.mubr.bf16.mxu0 %v1335_v11  ;;  %v1336_v19 = vld [vmem:[%s1478_s11 + $0x80] ss:$8 sps:$4 sm:$0xff]   ;;  %v1341_v21 = vld [vmem:[%s1478_s11 + $0x94] ss:$8 sps:$4 sm:$0xff]  }
  0x12   : > { %1168 = vmatpush3.bf16.msra.mxu0 %v1320_v3  ;;  %1286 = vmatpush3.bf16.msra.mxu1 %v1320_v3  ;;  %v1329_v14 = vld [vmem:[%s1619_s1 + $0x48] sm:$0xff]   ;;  %v1331_v16 = vld [vmem:[%s1619_s1 + $0x40] sm:$0xff]   ;;  %v1343_v22 = vld [vmem:[%s1478_s11 + $0x10] ss:$8 sps:$4 sm:$0xff]  }
  0x13   : > { %1169 = vmatprep.subr.bf16.mxu0 %v1321_v4  ;;  %1279 = vmatprep.subr.bf16.mxu1 %v1321_v4  ;;  %v1330_v15 = vld [vmem:[%s1619_s1 + $0x8] sm:$0xff]   ;;  %v1332_v17 = vld [vmem:[%s1619_s1] sm:$0xff]   ;;  %v1344_v23 = vld [vmem:[%s1478_s11 + $0x90] ss:$8 sps:$4 sm:$0xff]  }
  0x14   : > { %752 = vmatprep.mubr.bf16.mxu1 %v1338_v12  ;;  %v1345_v24 = vld [vmem:[%s1478_s11 + $0x24] ss:$8 sps:$4 sm:$0xff]   ;;  %v1349_v26 = vld [vmem:[%s1478_s11 + $0x20] ss:$8 sps:$4 sm:$0xff]   ;;  %v1351_v28 = vld [vmem:[%s1478_s11 + $0x34] ss:$8 sps:$4 sm:$0xff]  }
  0x15   : > { %v1347_v25 = vld [vmem:[%s1478_s11 + $0xa4] ss:$8 sps:$4 sm:$0xff]   ;;  %v1350_v27 = vld [vmem:[%s1478_s11 + $0xa0] ss:$8 sps:$4 sm:$0xff]   ;;  %v1353_v29 = vld [vmem:[%s1478_s11 + $0xb4] ss:$8 sps:$4 sm:$0xff]  }
  0x16   : > { %1170 = vmatpush3.bf16.msra.mxu0 %v1322_v5  ;;  %1287 = vmatpush3.bf16.msra.mxu1 %v1322_v5  ;;  %v1355_v30 = vld [vmem:[%s1478_s11 + $0x30] ss:$8 sps:$4 sm:$0xff]   ;;  %v1357_v32 = vld [vmem:[%s1478_s11 + $0x44] ss:$8 sps:$4 sm:$0xff]   ;;  %v1361_v34 = vld [vmem:[%s1478_s11 + $0x40] ss:$8 sps:$4 sm:$0xff]  }
  0x17   : > { %1171 = vmatprep.subr.bf16.mxu0 %v1323_v6  ;;  %1280 = vmatprep.subr.bf16.mxu1 %v1323_v6  ;;  %v1356_v31 = vld [vmem:[%s1478_s11 + $0xb0] ss:$8 sps:$4 sm:$0xff]   ;;  %v1359_v33 = vld [vmem:[%s1478_s11 + $0xc4] ss:$8 sps:$4 sm:$0xff]   ;;  %v1362_v35 = vld [vmem:[%s1478_s11 + $0xc0] ss:$8 sps:$4 sm:$0xff]  }
  0x18   : > { %v1363_v36 = vld [vmem:[%s1478_s11 + $0x54] ss:$8 sps:$4 sm:$0xff]   ;;  %v1367_v38 = vld [vmem:[%s1478_s11 + $0x50] ss:$8 sps:$4 sm:$0xff]   ;;  %v1369_v40 = vld [vmem:[%s1478_s11 + $0x64] ss:$8 sps:$4 sm:$0xff]  }
  0x19   : > { %v1365_v37 = vld [vmem:[%s1478_s11 + $0xd4] ss:$8 sps:$4 sm:$0xff]   ;;  %v1368_v39 = vld [vmem:[%s1478_s11 + $0xd0] ss:$8 sps:$4 sm:$0xff]   ;;  %v1371_v41 = vld [vmem:[%s1478_s11 + $0xe4] ss:$8 sps:$4 sm:$0xff]  }
  0x1a   : > { %1172 = vmatpush3.bf16.msra.mxu0 %v1324_v7  ;;  %1288 = vmatpush3.bf16.msra.mxu1 %v1324_v7  ;;  %v1373_v42 = vld [vmem:[%s1478_s11 + $0x60] ss:$8 sps:$4 sm:$0xff]   ;;  %v1375_v44 = vld [vmem:[%s1478_s11 + $0x74] ss:$8 sps:$4 sm:$0xff]   ;;  %v1379_v46 = vld [vmem:[%s1478_s11 + $0x70] ss:$8 sps:$4 sm:$0xff]  }
  0x1b   : > { %1173 = vmatprep.subr.bf16.mxu0 %v1325_v8  ;;  %1281 = vmatprep.subr.bf16.mxu1 %v1325_v8  ;;  %v1374_v43 = vld [vmem:[%s1478_s11 + $0xe0] ss:$8 sps:$4 sm:$0xff]   ;;  %v1377_v45 = vld [vmem:[%s1478_s11 + $0xf4] ss:$8 sps:$4 sm:$0xff]   ;;  %v1380_v47 = vld [vmem:[%s1478_s11 + $0xf0] ss:$8 sps:$4 sm:$0xff]  }
  0x1c   : > { %v1536_v51 = vld [vmem:[%s1620_s2] ss:$0 sm:$0xff] }
  0x1e   : > { %1174 = vmatpush3.bf16.msra.mxu0 %v1326_v9  ;;  %1289 = vmatpush3.bf16.msra.mxu1 %v1326_v9 }
  0x1f   : > { %1175 = vmatprep.subr.bf16.mxu0 %v1327_v10  ;;  %1282 = vmatprep.subr.bf16.mxu1 %v1327_v10 }
  0x22   : > { %1176 = vmatpush3.bf16.msra.mxu0 %v1328_v13  ;;  %1290 = vmatpush3.bf16.msra.mxu1 %v1328_v13 }
  0x23   : > { %1177 = vmatprep.subr.bf16.mxu0 %v1329_v14  ;;  %1283 = vmatprep.subr.bf16.mxu1 %v1329_v14 }
  0x26   : > { %1178 = vmatpush3.bf16.msra.mxu0 %v1330_v15  ;;  %1291 = vmatpush3.bf16.msra.mxu1 %v1330_v15 }
  0x27   : > { %1179 = vmatprep.subr.bf16.mxu0 %v1331_v16  ;;  %1284 = vmatprep.subr.bf16.mxu1 %v1331_v16 }
  0x2a   : > { %1180 = vmatpush3.bf16.msra.mxu0 %v1332_v17  ;;  %1292 = vmatpush3.bf16.msra.mxu1 %v1332_v17 }
  0x2d   : > { %689 = vmatmul.mubr.bf16.vlgmr.msra.gmra.mxu0 %v1333_v18  ;;  %753 = vmatmul.mubr.bf16.vlgmr.msra.gmra.mxu1 %v1336_v19 }
  0x2e   : > { %696 = vmatprep.mubr.bf16.mxu0 %v1339_v20  ;;  %760 = vmatprep.mubr.bf16.mxu1 %v1341_v21 }
  0x35   : > { %697 = vmatmul.mubr.bf16.gmra.mxu0 %v1343_v22  ;;  %761 = vmatmul.mubr.bf16.gmra.mxu1 %v1344_v23 }
  0x36   : > { %704 = vmatprep.mubr.bf16.mxu0 %v1345_v24  ;;  %768 = vmatprep.mubr.bf16.mxu1 %v1347_v25 }
  0x3d   : > { %705 = vmatmul.mubr.bf16.gmra.mxu0 %v1349_v26  ;;  %769 = vmatmul.mubr.bf16.gmra.mxu1 %v1350_v27 }
  0x3e   : > { %712 = vmatprep.mubr.bf16.mxu0 %v1351_v28  ;;  %776 = vmatprep.mubr.bf16.mxu1 %v1353_v29 }
  0x45   : > { %713 = vmatmul.mubr.bf16.gmra.mxu0 %v1355_v30  ;;  %777 = vmatmul.mubr.bf16.gmra.mxu1 %v1356_v31 }
  0x46   : > { %720 = vmatprep.mubr.bf16.mxu0 %v1357_v32  ;;  %784 = vmatprep.mubr.bf16.mxu1 %v1359_v33 }
  0x4d   : > { %721 = vmatmul.mubr.bf16.gmra.mxu0 %v1361_v34  ;;  %785 = vmatmul.mubr.bf16.gmra.mxu1 %v1362_v35 }
  0x4e   : > { %728 = vmatprep.mubr.bf16.mxu0 %v1363_v36  ;;  %792 = vmatprep.mubr.bf16.mxu1 %v1365_v37 }
  0x55   : > { %729 = vmatmul.mubr.bf16.gmra.mxu0 %v1367_v38  ;;  %793 = vmatmul.mubr.bf16.gmra.mxu1 %v1368_v39 }
  0x56   : > { %736 = vmatprep.mubr.bf16.mxu0 %v1369_v40  ;;  %800 = vmatprep.mubr.bf16.mxu1 %v1371_v41 }
  0x5d   : > { %737 = vmatmul.mubr.bf16.gmra.mxu0 %v1373_v42  ;;  %801 = vmatmul.mubr.bf16.gmra.mxu1 %v1374_v43 }
  0x5e   : > { %744 = vmatprep.mubr.bf16.mxu0 %v1375_v44  ;;  %808 = vmatprep.mubr.bf16.mxu1 %v1377_v45 }
  0x65   : > { %745 = vmatmul.mubr.bf16.gmra.mxu0 %v1379_v46  ;;  %809 = vmatmul.mubr.bf16.gmra.mxu1 %v1380_v47 }
  0xed   : > { %v1181_v48 = vpop.f32.mrf.mxu0  ;;  %v1229_v49 = vpop.f32.mrf.mxu1 }
  0xef   : > { %v1182_v50 = vpop.f32.mrf.mxu0  ;;  %v1230_v52 = vpop.f32.mrf.mxu1 }
  0xf0   : > { %v1183_v53 = vadd.f32 %v1182_v50, %v1181_v48  ;;  %v1231_v54 = vadd.f32 %v1230_v52, %v1229_v49 }
  0xf1   : > { %v1184_v55 = vpop.f32.mrf.mxu0  ;;  %v1232_v56 = vpop.f32.mrf.mxu1 }
  0xf2   : > { %v923_v57 = vadd.f32 %v1183_v53, %v1536_v51  ;;  %v939_v58 = vadd.f32 %v1231_v54, %v1536_v51 }
  0xf3   : > { %v1185_v59 = vpop.f32.mrf.mxu0  ;;  %v1233_v60 = vpop.f32.mrf.mxu1 }
  0xf4   : > { %955 = vst [vmem:[%s1543_s8] sm:$0xff] %v923_v57  ;;  %971 = vst [vmem:[%s1543_s8 + $0x80] sm:$0xff] %v939_v58  ;;  %v1186_v61 = vadd.f32 %v1185_v59, %v1184_v55  ;;  %v1234_v62 = vadd.f32 %v1233_v60, %v1232_v56 }
  0xf5   : > { %v1187_v63 = vpop.f32.mrf.mxu0  ;;  %v1235_v0 = vpop.f32.mrf.mxu1 }
  0xf6   : > { %v924_v1 = vadd.f32 %v1186_v61, %v1536_v51  ;;  %v940_v2 = vadd.f32 %v1234_v62, %v1536_v51 }
  0xf7   : > { %v1188_v3 = vpop.f32.mrf.mxu0  ;;  %v1236_v4 = vpop.f32.mrf.mxu1 }
  0xf8   : > { %956 = vst [vmem:[%s1543_s8 + $0x8] sm:$0xff] %v924_v1  ;;  %972 = vst [vmem:[%s1543_s8 + $0x88] sm:$0xff] %v940_v2  ;;  %v1189_v5 = vadd.f32 %v1188_v3, %v1187_v63  ;;  %v1237_v6 = vadd.f32 %v1236_v4, %v1235_v0 }
  0xf9   : > { %v1190_v7 = vpop.f32.mrf.mxu0  ;;  %v1238_v8 = vpop.f32.mrf.mxu1 }
  0xfa   : > { %v925_v9 = vadd.f32 %v1189_v5, %v1536_v51  ;;  %v941_v10 = vadd.f32 %v1237_v6, %v1536_v51 }
  0xfb   : > { %v1191_v11 = vpop.f32.mrf.mxu0  ;;  %v1239_v12 = vpop.f32.mrf.mxu1 }
  0xfc   : > { %957 = vst [vmem:[%s1543_s8 + $0x10] sm:$0xff] %v925_v9  ;;  %973 = vst [vmem:[%s1543_s8 + $0x90] sm:$0xff] %v941_v10  ;;  %v1192_v13 = vadd.f32 %v1191_v11, %v1190_v7  ;;  %v1240_v14 = vadd.f32 %v1239_v12, %v1238_v8 }
  0xfd   : > { %v1193_v15 = vpop.f32.mrf.mxu0  ;;  %v1241_v16 = vpop.f32.mrf.mxu1 }
  0xfe   : > { %v926_v17 = vadd.f32 %v1192_v13, %v1536_v51  ;;  %v942_v18 = vadd.f32 %v1240_v14, %v1536_v51 }
  0xff   : > { %v1194_v19 = vpop.f32.mrf.mxu0  ;;  %v1242_v20 = vpop.f32.mrf.mxu1 }
 0x100   : > { %958 = vst [vmem:[%s1543_s8 + $0x18] sm:$0xff] %v926_v17  ;;  %974 = vst [vmem:[%s1543_s8 + $0x98] sm:$0xff] %v942_v18  ;;  %v1195_v21 = vadd.f32 %v1194_v19, %v1193_v15  ;;  %v1243_v22 = vadd.f32 %v1242_v20, %v1241_v16 }
 0x101   : > { %v1196_v23 = vpop.f32.mrf.mxu0  ;;  %v1244_v24 = vpop.f32.mrf.mxu1 }
 0x102   : > { %v927_v25 = vadd.f32 %v1195_v21, %v1536_v51  ;;  %v943_v26 = vadd.f32 %v1243_v22, %v1536_v51 }
 0x103   : > { %v1197_v27 = vpop.f32.mrf.mxu0  ;;  %v1245_v28 = vpop.f32.mrf.mxu1 }
 0x104   : > { %959 = vst [vmem:[%s1543_s8 + $0x20] sm:$0xff] %v927_v25  ;;  %975 = vst [vmem:[%s1543_s8 + $0xa0] sm:$0xff] %v943_v26  ;;  %v1198_v29 = vadd.f32 %v1197_v27, %v1196_v23  ;;  %v1246_v30 = vadd.f32 %v1245_v28, %v1244_v24 }
 0x105   : > { %v1199_v31 = vpop.f32.mrf.mxu0  ;;  %v1247_v32 = vpop.f32.mrf.mxu1 }
 0x106   : > { %v928_v33 = vadd.f32 %v1198_v29, %v1536_v51  ;;  %v944_v34 = vadd.f32 %v1246_v30, %v1536_v51 }
 0x107   : > { %v1200_v35 = vpop.f32.mrf.mxu0  ;;  %v1248_v36 = vpop.f32.mrf.mxu1 }
 0x108   : > { %960 = vst [vmem:[%s1543_s8 + $0x28] sm:$0xff] %v928_v33  ;;  %976 = vst [vmem:[%s1543_s8 + $0xa8] sm:$0xff] %v944_v34  ;;  %v1201_v37 = vadd.f32 %v1200_v35, %v1199_v31  ;;  %v1249_v38 = vadd.f32 %v1248_v36, %v1247_v32 }
 0x109   : > { %v1202_v39 = vpop.f32.mrf.mxu0  ;;  %v1250_v40 = vpop.f32.mrf.mxu1 }
 0x10a   : > { %v929_v41 = vadd.f32 %v1201_v37, %v1536_v51  ;;  %v945_v42 = vadd.f32 %v1249_v38, %v1536_v51 }
 0x10b   : > { %v1203_v43 = vpop.f32.mrf.mxu0  ;;  %v1251_v44 = vpop.f32.mrf.mxu1 }
 0x10c   : > { %961 = vst [vmem:[%s1543_s8 + $0x30] sm:$0xff] %v929_v41  ;;  %977 = vst [vmem:[%s1543_s8 + $0xb0] sm:$0xff] %v945_v42  ;;  %v1204_v45 = vadd.f32 %v1203_v43, %v1202_v39  ;;  %v1252_v46 = vadd.f32 %v1251_v44, %v1250_v40 }
 0x10d   : > { %v1205_v47 = vpop.f32.mrf.mxu0  ;;  %v1253_v48 = vpop.f32.mrf.mxu1 }
 0x10e   : > { %v930_v49 = vadd.f32 %v1204_v45, %v1536_v51  ;;  %v946_v50 = vadd.f32 %v1252_v46, %v1536_v51 }
 0x10f   : > { %v1206_v52 = vpop.f32.mrf.mxu0  ;;  %v1254_v53 = vpop.f32.mrf.mxu1 }
 0x110   : > { %962 = vst [vmem:[%s1543_s8 + $0x38] sm:$0xff] %v930_v49  ;;  %978 = vst [vmem:[%s1543_s8 + $0xb8] sm:$0xff] %v946_v50  ;;  %v1207_v54 = vadd.f32 %v1206_v52, %v1205_v47  ;;  %v1255_v55 = vadd.f32 %v1254_v53, %v1253_v48 }
 0x111   : > { %v1208_v56 = vpop.f32.mrf.mxu0  ;;  %v1256_v57 = vpop.f32.mrf.mxu1 }
 0x112   : > { %v931_v58 = vadd.f32 %v1207_v54, %v1536_v51  ;;  %v947_v59 = vadd.f32 %v1255_v55, %v1536_v51 }
 0x113   : > { %v1209_v60 = vpop.f32.mrf.mxu0  ;;  %v1257_v61 = vpop.f32.mrf.mxu1 }
 0x114   : > { %963 = vst [vmem:[%s1543_s8 + $0x40] sm:$0xff] %v931_v58  ;;  %979 = vst [vmem:[%s1543_s8 + $0xc0] sm:$0xff] %v947_v59  ;;  %v1210_v62 = vadd.f32 %v1209_v60, %v1208_v56  ;;  %v1258_v63 = vadd.f32 %v1257_v61, %v1256_v57 }
 0x115   : > { %v1211_v0 = vpop.f32.mrf.mxu0  ;;  %v1259_v1 = vpop.f32.mrf.mxu1 }
 0x116   : > { %v932_v2 = vadd.f32 %v1210_v62, %v1536_v51  ;;  %v948_v3 = vadd.f32 %v1258_v63, %v1536_v51 }
 0x117   : > { %v1212_v4 = vpop.f32.mrf.mxu0  ;;  %v1260_v5 = vpop.f32.mrf.mxu1 }
 0x118   : > { %964 = vst [vmem:[%s1543_s8 + $0x48] sm:$0xff] %v932_v2  ;;  %980 = vst [vmem:[%s1543_s8 + $0xc8] sm:$0xff] %v948_v3  ;;  %v1213_v6 = vadd.f32 %v1212_v4, %v1211_v0  ;;  %v1261_v7 = vadd.f32 %v1260_v5, %v1259_v1 }
 0x119   : > { %v1214_v8 = vpop.f32.mrf.mxu0  ;;  %v1262_v9 = vpop.f32.mrf.mxu1 }
 0x11a   : > { %v933_v10 = vadd.f32 %v1213_v6, %v1536_v51  ;;  %v949_v11 = vadd.f32 %v1261_v7, %v1536_v51 }
 0x11b   : > { %v1215_v12 = vpop.f32.mrf.mxu0  ;;  %v1263_v13 = vpop.f32.mrf.mxu1 }
 0x11c   : > { %965 = vst [vmem:[%s1543_s8 + $0x50] sm:$0xff] %v933_v10  ;;  %981 = vst [vmem:[%s1543_s8 + $0xd0] sm:$0xff] %v949_v11  ;;  %v1216_v14 = vadd.f32 %v1215_v12, %v1214_v8  ;;  %v1264_v15 = vadd.f32 %v1263_v13, %v1262_v9 }
 0x11d   : > { %v1217_v16 = vpop.f32.mrf.mxu0  ;;  %v1265_v17 = vpop.f32.mrf.mxu1 }
 0x11e   : > { %v934_v18 = vadd.f32 %v1216_v14, %v1536_v51  ;;  %v950_v19 = vadd.f32 %v1264_v15, %v1536_v51 }
 0x11f   : > { %v1218_v20 = vpop.f32.mrf.mxu0  ;;  %v1266_v21 = vpop.f32.mrf.mxu1 }
 0x120   : > { %966 = vst [vmem:[%s1543_s8 + $0x58] sm:$0xff] %v934_v18  ;;  %982 = vst [vmem:[%s1543_s8 + $0xd8] sm:$0xff] %v950_v19  ;;  %v1219_v22 = vadd.f32 %v1218_v20, %v1217_v16  ;;  %v1267_v23 = vadd.f32 %v1266_v21, %v1265_v17 }
 0x121   : > { %v1220_v24 = vpop.f32.mrf.mxu0  ;;  %v1268_v25 = vpop.f32.mrf.mxu1 }
 0x122   : > { %v935_v26 = vadd.f32 %v1219_v22, %v1536_v51  ;;  %v951_v27 = vadd.f32 %v1267_v23, %v1536_v51 }
 0x123   : > { %v1221_v28 = vpop.f32.mrf.mxu0  ;;  %v1269_v29 = vpop.f32.mrf.mxu1 }
 0x124   : > { %967 = vst [vmem:[%s1543_s8 + $0x60] sm:$0xff] %v935_v26  ;;  %983 = vst [vmem:[%s1543_s8 + $0xe0] sm:$0xff] %v951_v27  ;;  %v1222_v30 = vadd.f32 %v1221_v28, %v1220_v24  ;;  %v1270_v31 = vadd.f32 %v1269_v29, %v1268_v25 }
 0x125   : > { %v1223_v32 = vpop.f32.mrf.mxu0  ;;  %v1271_v33 = vpop.f32.mrf.mxu1 }
 0x126   : > { %v936_v34 = vadd.f32 %v1222_v30, %v1536_v51  ;;  %v952_v35 = vadd.f32 %v1270_v31, %v1536_v51 }
 0x127   : > { %v1224_v36 = vpop.f32.mrf.mxu0  ;;  %v1272_v37 = vpop.f32.mrf.mxu1 }
 0x128   : > { %968 = vst [vmem:[%s1543_s8 + $0x68] sm:$0xff] %v936_v34  ;;  %984 = vst [vmem:[%s1543_s8 + $0xe8] sm:$0xff] %v952_v35  ;;  %v1225_v38 = vadd.f32 %v1224_v36, %v1223_v32  ;;  %v1273_v39 = vadd.f32 %v1272_v37, %v1271_v33 }
 0x129   : > { %v1226_v40 = vpop.f32.mrf.mxu0  ;;  %v1274_v41 = vpop.f32.mrf.mxu1 }
 0x12a   : > { %v937_v42 = vadd.f32 %v1225_v38, %v1536_v51  ;;  %v953_v43 = vadd.f32 %v1273_v39, %v1536_v51 }
 0x12b   : > { %v1227_v44 = vpop.f32.mrf.mxu0  ;;  %v1275_v45 = vpop.f32.mrf.mxu1 }
 0x12c   : > { %969 = vst [vmem:[%s1543_s8 + $0x70] sm:$0xff] %v937_v42  ;;  %985 = vst [vmem:[%s1543_s8 + $0xf0] sm:$0xff] %v953_v43  ;;  %v1228_v46 = vadd.f32 %v1227_v44, %v1226_v40  ;;  %v1276_v47 = vadd.f32 %v1275_v45, %v1274_v41 }
 0x12e   : > { %v938_v48 = vadd.f32 %v1228_v46, %v1536_v51  ;;  %v954_v49 = vadd.f32 %v1276_v47, %v1536_v51 }
 0x130   : > { %970 = vst [vmem:[%s1543_s8 + $0x78] sm:$0xff] %v938_v48  ;;  %986 = vst [vmem:[%s1543_s8 + $0xf8] sm:$0xff] %v954_v49 }
 0x131 PF: > { %s13_s14 = sadd.s32 1, %s1403_s14   ;;  %s1622_s12 = smov %s1399_s13 }
 0x132   : > { %p10_p5 = scmp.ge.s32.totalorder %s13_s14, 4   ;;  %s1623_s13 = smov %s1625_s15 }
 0x134   :  { %12 = sbr.rel (!%p10_p5) target bundleno = 2 (0x2), region = 76 }

// kernel: transformer_forward.43
= control target key start
LH: loop header
LB: loop body
LE: loop exit
PB: predicated region body
PF: predicated region fallthrough
CT: control target
= control target key end

     0   :  { %s555_s9 = smov 0   ;;  %s557_s10 = smov 0   ;;  %s703_s0 = inlined_call_operand.vmem [shape: f32[2,256,32], index: 0, kind: input, shape index: {}]   ;;  %s704_s1 = inlined_call_operand.vmem [shape: f32[2,1,32], index: 1, kind: output, shape index: {0}]   ;;  %s705_s2 = inlined_call_operand.vmem [shape: f32[2,1,32], index: 2, kind: output, shape index: {1}]  }
   0x1   :  { %s559_s11 = smov 0  }
   0x2 LB: > { %s25_s12 = sadd.s32 1, %s533_s10  ;;  %p484_p0 = scmp.ge.s32.totalorder %s537_s11, 1  ;;  %s537_s11 = sphi %s559_s11, %s13_s11   ;;  %s533_s10 = sphi %s557_s10, %s707_s10   ;;  %s529_s9 = sphi %s555_s9, %s706_s9  }
   0x3   : > { %p27_p1 = scmp.ge.s32.totalorder %s25_s12, 2  ;;  %p134_p2 = scmp.lt.s32.totalorder %s537_s11, 3 }
   0x5   : > { %s709_s12 = smov (%p27_p1, %s25_s12), 0  ;;  %p135_p3 = pnand %p484_p0, %p134_p2 }
   0x6   : > { %p162_p4 = scmp.lt.s32.totalorder (!%p135_p3), %s529_s9, 1 }
   0x7   : > { %138 = sbr.rel (%p135_p3) target bundleno = 99 (0x63), region = 24 }
   0xc   : > { %s711_s9 = smov (!%p162_p4, %s529_s9), 1  ;;  %vm181_vm0 = vcmask 253952   ;;  %vm217_vm1 = vcmask 261120   ;;  %v539_v0 = vmov 0.0  }
   0xd   : > { %s489_s13 = sshll.u32 %s711_s9, 8  ;;  %s576_s16 = scalar_lea.vmem %s704_s1, %s711_s9 }
   0xe   : > { %s581_s19 = scalar_lea.vmem %s703_s0, %s489_s13  ;;  %182 = vst.msk [vmem:[%s576_s16] sm:$0x1] %vm181_vm0, %v539_v0  ;;  %s588_s22 = scalar_lea.vmem %s705_s2, %s711_s9 }
   0xf   : > { %v184_v1 = vld [vmem:[%s581_s19] sm:$0xff]  ;;  %v185_v2 = vld [vmem:[%s581_s19 + $0x8] sm:$0xff]  ;;  %v186_v3 = vld [vmem:[%s581_s19 + $0x10] sm:$0xff]  ;;  %183 = vst.msk [vmem:[%s588_s22] sm:$0x1] %vm181_vm0, %v539_v0 }
  0x10   : > { %v218_v4 = vsel %vm217_vm1, %v184_v1, 0.0  ;;  %v219_v5 = vsel %vm217_vm1, %v185_v2, 0.0  ;;  %v221_v6 = vsel %vm217_vm1, %v186_v3, 0.0  ;;  %v187_v7 = vld [vmem:[%s581_s19 + $0x18] sm:$0xff]  ;;  %v188_v10 = vld [vmem:[%s581_s19 + $0x20] sm:$0xff]  ;;  %v189_v13 = vld [vmem:[%s581_s19 + $0x28] sm:$0xff]  ;;  %v291_v28 = vmul.f32 %v184_v1, %v184_v1 }
  0x11   : > { %v220_v8 = vadd.f32 %v219_v5, %v218_v4  ;;  %v223_v9 = vsel %vm217_vm1, %v187_v7, 0.0  ;;  %v225_v12 = vsel %vm217_vm1, %v188_v10, 0.0  ;;  %v227_v15 = vsel %vm217_vm1, %v189_v13, 0.0  ;;  %v190_v16 = vld [vmem:[%s581_s19 + $0x30] sm:$0xff]  ;;  %v191_v19 = vld [vmem:[%s581_s19 + $0x38] sm:$0xff]  ;;  %v192_v22 = vld [vmem:[%s581_s19 + $0x40] sm:$0xff] }
  0x12   : > { %v229_v18 = vsel %vm217_vm1, %v190_v16, 0.0  ;;  %v231_v21 = vsel %vm217_vm1, %v191_v19, 0.0  ;;  %v233_v24 = vsel %vm217_vm1, %v192_v22, 0.0  ;;  %v193_v25 = vld [vmem:[%s581_s19 + $0x48] sm:$0xff]  ;;  %v292_v29 = vmul.f32 %v185_v2, %v185_v2  ;;  %v194_v31 = vld [vmem:[%s581_s19 + $0x50] sm:$0xff]  ;;  %v195_v33 = vld [vmem:[%s581_s19 + $0x58] sm:$0xff] }
  0x13   : > { %v222_v11 = vadd.f32 %v221_v6, %v220_v8  ;;  %v235_v27 = vsel %vm217_vm1, %v193_v25, 0.0  ;;  %v293_v30 = vmul.f32 %v186_v3, %v186_v3  ;;  %v237_v34 = vsel %vm217_vm1, %v194_v31, 0.0  ;;  %v196_v42 = vld [vmem:[%s581_s19 + $0x60] sm:$0xff]  ;;  %v197_v48 = vld [vmem:[%s581_s19 + $0x68] sm:$0xff]  ;;  %v198_v54 = vld [vmem:[%s581_s19 + $0x70] sm:$0xff] }
  0x14   : > { %v294_v35 = vmul.f32 %v187_v7, %v187_v7  ;;  %v239_v37 = vsel %vm217_vm1, %v195_v33, 0.0  ;;  %v295_v38 = vmul.f32 %v188_v10, %v188_v10  ;;  %v323_v39 = vsel %vm217_vm1, %v291_v28, 0.0  ;;  %v199_v60 = vld [vmem:[%s581_s19 + $0x78] sm:$0xff]  ;;  %v200_v2 = vld [vmem:[%s581_s19 + $0x80] sm:$0xff]  ;;  %v201_v8 = vld [vmem:[%s581_s19 + $0x88] sm:$0xff] }
  0x15   : > { %v224_v14 = vadd.f32 %v223_v9, %v222_v11  ;;  %v324_v40 = vsel %vm217_vm1, %v292_v29, 0.0  ;;  %v326_v41 = vsel %vm217_vm1, %v293_v30, 0.0  ;;  %v241_v45 = vsel %vm217_vm1, %v196_v42, 0.0 }
  0x16   : > { %v325_v44 = vadd.f32 %v324_v40, %v323_v39  ;;  %v296_v46 = vmul.f32 %v189_v13, %v189_v13  ;;  %v328_v47 = vsel %vm217_vm1, %v294_v35, 0.0  ;;  %v243_v51 = vsel %vm217_vm1, %v197_v48, 0.0 }
  0x17   : > { %v226_v17 = vadd.f32 %v225_v12, %v224_v14  ;;  %v297_v52 = vmul.f32 %v190_v16, %v190_v16  ;;  %v330_v53 = vsel %vm217_vm1, %v295_v38, 0.0  ;;  %v245_v57 = vsel %vm217_vm1, %v198_v54, 0.0  ;;  %v202_v14 = vld [vmem:[%s581_s19 + $0x90] sm:$0xff] }
  0x18   : > { %v327_v50 = vadd.f32 %v326_v41, %v325_v44  ;;  %v298_v58 = vmul.f32 %v191_v19, %v191_v19  ;;  %v332_v59 = vsel %vm217_vm1, %v296_v46, 0.0  ;;  %v247_v63 = vsel %vm217_vm1, %v199_v60, 0.0  ;;  %v206_v38 = vld [vmem:[%s581_s19 + $0xb0] sm:$0xff]  ;;  %v207_v44 = vld [vmem:[%s581_s19 + $0xb8] sm:$0xff] }
  0x19   : > { %v228_v20 = vadd.f32 %v227_v15, %v226_v17  ;;  %v299_v0 = vmul.f32 %v192_v22, %v192_v22  ;;  %v334_v1 = vsel %vm217_vm1, %v297_v52, 0.0  ;;  %v249_v5 = vsel %vm217_vm1, %v200_v2, 0.0 }
  0x1a   : > { %v329_v56 = vadd.f32 %v328_v47, %v327_v50  ;;  %v300_v6 = vmul.f32 %v193_v25, %v193_v25  ;;  %v336_v7 = vsel %vm217_vm1, %v298_v58, 0.0  ;;  %v251_v11 = vsel %vm217_vm1, %v201_v8, 0.0  ;;  %v208_v50 = vld [vmem:[%s581_s19 + $0xc0] sm:$0xff] }
  0x1b   : > { %v230_v23 = vadd.f32 %v229_v18, %v228_v20  ;;  %v301_v12 = vmul.f32 %v194_v31, %v194_v31  ;;  %v338_v13 = vsel %vm217_vm1, %v299_v0, 0.0  ;;  %v253_v17 = vsel %vm217_vm1, %v202_v14, 0.0  ;;  %v203_v20 = vld [vmem:[%s581_s19 + $0x98] sm:$0xff] }
  0x1c   : > { %v331_v62 = vadd.f32 %v330_v53, %v329_v56  ;;  %v302_v18 = vmul.f32 %v195_v33, %v195_v33  ;;  %v340_v19 = vsel %vm217_vm1, %v300_v6, 0.0  ;;  %v304_v30 = vmul.f32 %v197_v48, %v197_v48  ;;  %v209_v56 = vld [vmem:[%s581_s19 + $0xc8] sm:$0xff] }
  0x1d   : > { %v232_v26 = vadd.f32 %v231_v21, %v230_v23  ;;  %v255_v23 = vsel %vm217_vm1, %v203_v20, 0.0  ;;  %v342_v25 = vsel %vm217_vm1, %v301_v12, 0.0  ;;  %v261_v41 = vsel %vm217_vm1, %v206_v38, 0.0 }
  0x1e   : > { %v333_v4 = vadd.f32 %v332_v59, %v331_v62  ;;  %v344_v31 = vsel %vm217_vm1, %v302_v18, 0.0  ;;  %v263_v47 = vsel %vm217_vm1, %v207_v44, 0.0  ;;  %v307_v48 = vmul.f32 %v200_v2, %v200_v2  ;;  %v210_v62 = vld [vmem:[%s581_s19 + $0xd0] sm:$0xff] }
  0x1f   : > { %v234_v32 = vadd.f32 %v233_v24, %v232_v26  ;;  %v303_v24 = vmul.f32 %v196_v42, %v196_v42  ;;  %v204_v26 = vld [vmem:[%s581_s19 + $0xa0] sm:$0xff]  ;;  %v306_v42 = vmul.f32 %v199_v60, %v199_v60  ;;  %v265_v53 = vsel %vm217_vm1, %v208_v50, 0.0 }
  0x20   : > { %v335_v10 = vadd.f32 %v334_v1, %v333_v4  ;;  %v257_v29 = vsel %vm217_vm1, %v204_v26, 0.0  ;;  %v267_v59 = vsel %vm217_vm1, %v209_v56, 0.0  ;;  %v309_v60 = vmul.f32 %v202_v14, %v202_v14  ;;  %v211_v4 = vld [vmem:[%s581_s19 + $0xd8] sm:$0xff] }
  0x21   : > { %v236_v36 = vadd.f32 %v235_v27, %v234_v32  ;;  %v205_v32 = vld [vmem:[%s581_s19 + $0xa8] sm:$0xff]  ;;  %v269_v1 = vsel %vm217_vm1, %v210_v62, 0.0  ;;  %v310_v2 = vmul.f32 %v203_v20, %v203_v20  ;;  %v313_v20 = vmul.f32 %v206_v38, %v206_v38 }
  0x22   : > { %v337_v16 = vadd.f32 %v336_v7, %v335_v10  ;;  %v259_v35 = vsel %vm217_vm1, %v205_v32, 0.0  ;;  %v271_v7 = vsel %vm217_vm1, %v211_v4, 0.0  ;;  %v212_v10 = vld [vmem:[%s581_s19 + $0xe0] sm:$0xff]  ;;  %v312_v14 = vmul.f32 %v205_v32, %v205_v32 }
  0x23   : > { %v238_v43 = vadd.f32 %v237_v34, %v236_v36  ;;  %v305_v36 = vmul.f32 %v198_v54, %v198_v54  ;;  %v308_v54 = vmul.f32 %v201_v8, %v201_v8  ;;  %v311_v8 = vmul.f32 %v204_v26, %v204_v26 }
  0x24   : > { %v339_v22 = vadd.f32 %v338_v13, %v337_v16  ;;  %v273_v13 = vsel %vm217_vm1, %v212_v10, 0.0  ;;  %v213_v16 = vld [vmem:[%s581_s19 + $0xe8] sm:$0xff]  ;;  %v314_v26 = vmul.f32 %v207_v44, %v207_v44  ;;  %v315_v32 = vmul.f32 %v208_v50, %v208_v50 }
  0x25   : > { %v240_v49 = vadd.f32 %v239_v37, %v238_v43  ;;  %v346_v37 = vsel %vm217_vm1, %v303_v24, 0.0  ;;  %v348_v43 = vsel %vm217_vm1, %v304_v30, 0.0  ;;  %v318_v44 = vmul.f32 %v211_v4, %v211_v4 }
  0x26   : > { %v341_v28 = vadd.f32 %v340_v19, %v339_v22  ;;  %v275_v19 = vsel %vm217_vm1, %v213_v16, 0.0  ;;  %v214_v22 = vld [vmem:[%s581_s19 + $0xf0] sm:$0xff] }
  0x27   : > { %v242_v55 = vadd.f32 %v241_v45, %v240_v49  ;;  %v350_v49 = vsel %vm217_vm1, %v305_v36, 0.0  ;;  %v316_v36 = vmul.f32 %v209_v56, %v209_v56  ;;  %v321_v56 = vmul.f32 %v214_v22, %v214_v22 }
  0x28   : > { %v343_v34 = vadd.f32 %v342_v25, %v341_v28  ;;  %v277_v25 = vsel %vm217_vm1, %v214_v22, 0.0  ;;  %v215_v28 = vld [vmem:[%s581_s19 + $0xf8] sm:$0xff] }
  0x29   : > { %v244_v61 = vadd.f32 %v243_v51, %v242_v55  ;;  %v352_v55 = vsel %vm217_vm1, %v306_v42, 0.0 }
  0x2a   : > { %v345_v40 = vadd.f32 %v344_v31, %v343_v34  ;;  %v279_v31 = vsel %vm217_vm1, %v215_v28, 0.0 }
  0x2b   : > { %v246_v3 = vadd.f32 %v245_v57, %v244_v61  ;;  %v354_v61 = vsel %vm217_vm1, %v307_v48, 0.0  ;;  %v319_v48 = vmul.f32 %v212_v10, %v212_v10 }
  0x2c   : > { %v347_v46 = vadd.f32 %v346_v37, %v345_v40  ;;  %v368_v37 = vsel %vm217_vm1, %v314_v26, 0.0  ;;  %v317_v40 = vmul.f32 %v210_v62, %v210_v62 }
  0x2d   : > { %v248_v9 = vadd.f32 %v247_v63, %v246_v3  ;;  %v356_v3 = vsel %vm217_vm1, %v308_v54, 0.0 }
  0x2e   : > { %v349_v52 = vadd.f32 %v348_v43, %v347_v46 }
  0x2f   : > { %v250_v15 = vadd.f32 %v249_v5, %v248_v9  ;;  %v358_v9 = vsel %vm217_vm1, %v309_v60, 0.0  ;;  %v216_v60 = vld [vmem:[%s576_s16] sm:$0x1] }
  0x30   : > { %v351_v58 = vadd.f32 %v350_v49, %v349_v52  ;;  %v374_v49 = vsel %vm217_vm1, %v317_v40, 0.0  ;;  %v320_v52 = vmul.f32 %v213_v16, %v213_v16 }
  0x31   : > { %v252_v21 = vadd.f32 %v251_v11, %v250_v15  ;;  %v360_v15 = vsel %vm217_vm1, %v310_v2, 0.0 }
  0x32   : > { %v353_v0 = vadd.f32 %v352_v55, %v351_v58  ;;  %v380_v62 = vsel %vm217_vm1, %v320_v52, 0.0 }
  0x33   : > { %v254_v27 = vadd.f32 %v253_v17, %v252_v21  ;;  %v362_v21 = vsel %vm217_vm1, %v311_v8, 0.0 }
  0x34   : > { %v355_v6 = vadd.f32 %v354_v61, %v353_v0  ;;  %v322_v61 = vmul.f32 %v215_v28, %v215_v28 }
  0x35   : > { %v256_v33 = vadd.f32 %v255_v23, %v254_v27  ;;  %v364_v27 = vsel %vm217_vm1, %v312_v14, 0.0 }
  0x36   : > { %v357_v12 = vadd.f32 %v356_v3, %v355_v6  ;;  %v384_v4 = vsel %vm217_vm1, %v322_v61, 0.0 }
  0x37   : > { %v258_v39 = vadd.f32 %v257_v29, %v256_v33  ;;  %v366_v33 = vsel %vm217_vm1, %v313_v20, 0.0 }
  0x38   : > { %v359_v18 = vadd.f32 %v358_v9, %v357_v12  ;;  %v290_v12 = vld [vmem:[%s588_s22] sm:$0x1] }
  0x39   : > { %v260_v45 = vadd.f32 %v259_v35, %v258_v39 }
  0x3a   : > { %v361_v24 = vadd.f32 %v360_v15, %v359_v18 }
  0x3b   : > { %v262_v51 = vadd.f32 %v261_v41, %v260_v45  ;;  %v370_v41 = vsel %vm217_vm1, %v315_v32, 0.0  ;;  %v372_v45 = vsel %vm217_vm1, %v316_v36, 0.0 }
  0x3c   : > { %v363_v30 = vadd.f32 %v362_v21, %v361_v24 }
  0x3d   : > { %v264_v57 = vadd.f32 %v263_v47, %v262_v51 }
  0x3e   : > { %v365_v35 = vadd.f32 %v364_v27, %v363_v30 }
  0x3f   : > { %v266_v63 = vadd.f32 %v265_v53, %v264_v57  ;;  %v376_v53 = vsel %vm217_vm1, %v318_v44, 0.0  ;;  %v378_v57 = vsel %vm217_vm1, %v319_v48, 0.0 }
  0x40   : > { %v367_v39 = vadd.f32 %v366_v33, %v365_v35 }
  0x41   : > { %v268_v5 = vadd.f32 %v267_v59, %v266_v63 }
  0x42   : > { %v369_v43 = vadd.f32 %v368_v37, %v367_v39 }
  0x43   : > { %v270_v11 = vadd.f32 %v269_v1, %v268_v5  ;;  %v382_v1 = vsel %vm217_vm1, %v321_v56, 0.0 }
  0x44   : > { %v371_v47 = vadd.f32 %v370_v41, %v369_v43 }
  0x45   : > { %v272_v17 = vadd.f32 %v271_v7, %v270_v11 }
  0x46   : > { %v373_v51 = vadd.f32 %v372_v45, %v371_v47 }
  0x47   : > { %v274_v23 = vadd.f32 %v273_v13, %v272_v17 }
  0x48   : > { %v375_v55 = vadd.f32 %v374_v49, %v373_v51 }
  0x49   : > { %v276_v29 = vadd.f32 %v275_v19, %v274_v23 }
  0x4a   : > { %v377_v59 = vadd.f32 %v376_v53, %v375_v55 }
  0x4b   : > { %v278_v34 = vadd.f32 %v277_v25, %v276_v29 }
  0x4c   : > { %v379_v0 = vadd.f32 %v378_v57, %v377_v59 }
  0x4d   : > { %v280_v38 = vadd.f32 %v279_v31, %v278_v34 }
  0x4e   : > { %v381_v3 = vadd.f32 %v380_v62, %v379_v0 }
  0x4f   : > { %v281_v42 = vrot.slane %v280_v38, 4 }
  0x50   : > { %v383_v5 = vadd.f32 %v382_v1, %v381_v3 }
  0x51   : > { %v282_v46 = vadd.f32 %v281_v42, %v280_v38 }
  0x52   : > { %v385_v6 = vadd.f32 %v384_v4, %v383_v5 }
  0x53   : > { %v283_v50 = vrot.slane %v282_v46, 2 }
  0x54   : > { %v386_v7 = vrot.slane %v385_v6, 4 }
  0x55   : > { %v284_v54 = vadd.f32 %v283_v50, %v282_v46 }
  0x56   : > { %v387_v8 = vadd.f32 %v386_v7, %v385_v6 }
  0x57   : > { %v285_v58 = vrot.slane %v284_v54, 1 }
  0x58   : > { %v388_v9 = vrot.slane %v387_v8, 2 }
  0x59   : > { %v286_v63 = vadd.f32 %v285_v58, %v284_v54 }
  0x5a   : > { %v389_v10 = vadd.f32 %v388_v9, %v387_v8 }
  0x5b   : > { %v287_v2 = vadd.f32 %v286_v63, %v216_v60 }
  0x5c   : > { %v390_v11 = vrot.slane %v389_v10, 1 }
  0x5d   : > { %289 = vst.msk [vmem:[%s576_s16] sm:$0x1] %vm181_vm0, %v287_v2 }
  0x5e   : > { %v391_v13 = vadd.f32 %v390_v11, %v389_v10 }
  0x60   : > { %v392_v14 = vadd.f32 %v391_v13, %v290_v12 }
  0x62   : > { %393 = vst.msk [vmem:[%s588_s22] sm:$0x1] %vm181_vm0, %v392_v14 }
  0x63 PF: > { %s13_s11 = sadd.s32 1, %s537_s11   ;;  %s706_s9 = smov %s533_s10 }
  0x64   : > { %p10_p5 = scmp.ge.s32.totalorder %s13_s11, 4   ;;  %s707_s10 = smov %s709_s12 }
  0x66   :  { %12 = sbr.rel (!%p10_p5) target bundleno = 2 (0x2), region = 70 }

// kernel: transformer_forward.44
= control target key start
LH: loop header
LB: loop body
LE: loop exit
PB: predicated region body
PF: predicated region fallthrough
CT: control target
= control target key end

     0   :  { %s714_s18 = smov 0   ;;  %s716_s19 = smov 0   ;;  %s1145_s0 = inlined_call_operand.vmem [shape: f32[2,256,32], index: 0, kind: input, shape index: {}]   ;;  %s1146_s1 = inlined_call_operand.vmem [shape: f32[2,1,32], index: 1, kind: input, shape index: {}]   ;;  %s1147_s2 = inlined_call_operand.vmem [shape: f32[2,1,32], index: 2, kind: input, shape index: {}]   ;;  %s1148_s3 = inlined_call_operand.vmem [shape: f32[1,32], index: 3, kind: input, shape index: {}]   ;;  %s1149_s4 = inlined_call_operand.vmem [shape: f32[1,32], index: 4, kind: input, shape index: {}]   ;;  %s1150_s5 = inlined_call_operand.vmem [shape: f32[2,256,32], index: 5, kind: output, shape index: {}]  }
   0x1   :  { %s718_s20 = smov 0  }
   0x2 LB: > { %s27_s21 = sadd.s32 1, %s678_s19  ;;  %p624_p0 = scmp.ge.s32.totalorder %s682_s20, 1  ;;  %s682_s20 = sphi %s718_s20, %s15_s20   ;;  %s678_s19 = sphi %s716_s19, %s1159_s19   ;;  %s674_s18 = sphi %s714_s18, %s1158_s18  }
   0x3   : > { %p29_p1 = scmp.ge.s32.totalorder %s27_s21, 2  ;;  %p224_p2 = scmp.lt.s32.totalorder %s682_s20, 3 }
   0x5   : > { %s1161_s21 = smov (%p29_p1, %s27_s21), 0  ;;  %p225_p3 = pnand %p624_p0, %p224_p2 }
   0x6   : > { %p267_p4 = scmp.lt.s32.totalorder (!%p225_p3), %s674_s18, 1 }
   0x7   : > { %228 = sbr.rel (%p225_p3) target bundleno = 75 (0x4b), region = 40 }
   0xc   : > { %s1163_s18 = smov (!%p267_p4, %s674_s18), 1  ;;  %v334_v5 = vlaneseq  ;;  %v371_v27 = vld [vmem:[%s1148_s3] sm:$0x1]  ;;  %vm482_vm0 = vcmask 261120  }
   0xd   : > { %s278_s24 = scalar_lea.vmem %s1146_s1, %s1163_s18  ;;  %s281_s27 = scalar_lea.vmem %s1147_s2, %s1163_s18 }
   0xe   : > { %v324_v0 = vld [vmem:[%s278_s24] sm:$0x1]  ;;  %v742_v8 = vshrl.u32 %v334_v5, 7  ;;  %s632_s28 = sshll.u32 %s1163_s18, 8 }
   0xf   : > { %v325_v1 = vmul.f32 0.00390625, %v324_v0  ;;  %v326_v2 = vld [vmem:[%s281_s27] sm:$0x1]  ;;  %s750_s6 = scalar_lea.vmem %s1145_s0, %s632_s28  ;;  %s946_s13 = scalar_lea.vmem %s1150_s5, %s632_s28 }
  0x10   : > { %v327_v3 = vmul.f32 0.00390625, %v326_v2  ;;  %v336_v10 = vsub.s32 0, %v742_v8  ;;  %v754_v11 = vld [vmem:[%s750_s6] sm:$0xff]  ;;  %v757_v12 = vld [vmem:[%s750_s6 + $0x8] sm:$0xff]  ;;  %v764_v14 = vld [vmem:[%s750_s6 + $0x10] sm:$0xff] }
  0x11   : > { %v328_v4 = vmul.f32 %v325_v1, %v325_v1  ;;  %v767_v15 = vld [vmem:[%s750_s6 + $0x18] sm:$0xff]  ;;  %v770_v16 = vld [vmem:[%s750_s6 + $0x20] sm:$0xff]  ;;  %v773_v17 = vld [vmem:[%s750_s6 + $0x28] sm:$0xff] }
  0x12   : > { %v761_v13 = vrot.slane %v325_v1, %v336_v10  ;;  %v776_v18 = vld [vmem:[%s750_s6 + $0x30] sm:$0xff]  ;;  %v779_v19 = vld [vmem:[%s750_s6 + $0x38] sm:$0xff]  ;;  %v782_v20 = vld [vmem:[%s750_s6 + $0x40] sm:$0xff] }
  0x13   : > { %v329_v6 = vsub.f32 %v327_v3, %v328_v4  ;;  %v785_v21 = vld [vmem:[%s750_s6 + $0x48] sm:$0xff]  ;;  %v788_v22 = vld [vmem:[%s750_s6 + $0x50] sm:$0xff]  ;;  %v791_v23 = vld [vmem:[%s750_s6 + $0x58] sm:$0xff] }
  0x14   : > { %v794_v24 = vld [vmem:[%s750_s6 + $0x60] sm:$0xff]  ;;  %v797_v25 = vld [vmem:[%s750_s6 + $0x68] sm:$0xff]  ;;  %v339_v26 = vsub.f32 %v754_v11, %v761_v13  ;;  %v340_v28 = vsub.f32 %v757_v12, %v761_v13  ;;  %v807_v29 = vld [vmem:[%s750_s6 + $0x70] sm:$0xff]  ;;  %v341_v32 = vsub.f32 %v764_v14, %v761_v13  ;;  %v342_v33 = vsub.f32 %v767_v15, %v761_v13 }
  0x15   : > { %v330_v7 = vmax.f32 %v329_v6, 0.0  ;;  %v810_v30 = vld [vmem:[%s750_s6 + $0x78] sm:$0xff]  ;;  %v813_v31 = vld [vmem:[%s750_s6 + $0x80] sm:$0xff]  ;;  %v343_v34 = vsub.f32 %v770_v16, %v761_v13  ;;  %v344_v35 = vsub.f32 %v773_v17, %v761_v13  ;;  %v824_v36 = vld [vmem:[%s750_s6 + $0x88] sm:$0xff]  ;;  %v345_v39 = vsub.f32 %v776_v18, %v761_v13 }
  0x16   : > { %v827_v37 = vld [vmem:[%s750_s6 + $0x90] sm:$0xff]  ;;  %v830_v38 = vld [vmem:[%s750_s6 + $0x98] sm:$0xff]  ;;  %v346_v40 = vsub.f32 %v779_v19, %v761_v13  ;;  %v347_v41 = vsub.f32 %v782_v20, %v761_v13  ;;  %v348_v42 = vsub.f32 %v785_v21, %v761_v13  ;;  %v841_v43 = vld [vmem:[%s750_s6 + $0xa0] sm:$0xff]  ;;  %v349_v46 = vsub.f32 %v788_v22, %v761_v13 }
  0x17   : > { %v331_v9 = vadd.f32 1e-05, %v330_v7  ;;  %v844_v44 = vld [vmem:[%s750_s6 + $0xa8] sm:$0xff]  ;;  %v847_v45 = vld [vmem:[%s750_s6 + $0xb0] sm:$0xff]  ;;  %v350_v47 = vsub.f32 %v791_v23, %v761_v13  ;;  %v351_v48 = vsub.f32 %v794_v24, %v761_v13  ;;  %v352_v49 = vsub.f32 %v797_v25, %v761_v13  ;;  %v858_v50 = vld [vmem:[%s750_s6 + $0xb8] sm:$0xff] }
  0x18   : > { %v861_v51 = vld [vmem:[%s750_s6 + $0xc0] sm:$0xff]  ;;  %v864_v52 = vld [vmem:[%s750_s6 + $0xc8] sm:$0xff]  ;;  %v353_v54 = vsub.f32 %v807_v29, %v761_v13  ;;  %v354_v55 = vsub.f32 %v810_v30, %v761_v13  ;;  %v355_v56 = vsub.f32 %v813_v31, %v761_v13  ;;  %v356_v57 = vsub.f32 %v824_v36, %v761_v13  ;;  %v875_v58 = vld [vmem:[%s750_s6 + $0xd0] sm:$0xff] }
  0x19   : > { %658 = vrsqrt.f32 %v331_v9  ;;  %v878_v59 = vld [vmem:[%s750_s6 + $0xd8] sm:$0xff]  ;;  %v881_v60 = vld [vmem:[%s750_s6 + $0xe0] sm:$0xff]  ;;  %v357_v62 = vsub.f32 %v827_v37, %v761_v13  ;;  %v358_v63 = vsub.f32 %v830_v38, %v761_v13  ;;  %v359_v0 = vsub.f32 %v841_v43, %v761_v13  ;;  %v890_v1 = vld [vmem:[%s750_s6 + $0xe8] sm:$0xff] }
  0x1a   : > { %v893_v2 = vld [vmem:[%s750_s6 + $0xf0] sm:$0xff]  ;;  %v896_v3 = vld [vmem:[%s750_s6 + $0xf8] sm:$0xff]  ;;  %v360_v4 = vsub.f32 %v844_v44, %v761_v13  ;;  %v361_v5 = vsub.f32 %v847_v45, %v761_v13  ;;  %v362_v6 = vsub.f32 %v858_v50, %v761_v13  ;;  %v363_v7 = vsub.f32 %v861_v51, %v761_v13  ;;  %v919_v15 = vld [vmem:[%s1149_s4] ss:$0 sm:$0xff] }
  0x1b   : > { %v1154_v51 = vsub.f32 %v881_v60, %v761_v13 }
  0x26   : > { %v659_v53 = vpop.eup %658 }
  0x27   : > { %v372_v61 = vmul.f32 %v659_v53, %v371_v27 }
  0x29   : > { %v908_v9 = vrot.slane %v372_v61, %v336_v10 }
  0x2b   : > { %v379_v18 = vmul.f32 %v908_v9, %v339_v26  ;;  %v380_v19 = vmul.f32 %v908_v9, %v340_v28  ;;  %v381_v27 = vmul.f32 %v908_v9, %v341_v32  ;;  %v382_v53 = vmul.f32 %v908_v9, %v342_v33 }
  0x2c   : > { %v383_v61 = vmul.f32 %v908_v9, %v343_v34  ;;  %v384_v16 = vmul.f32 %v908_v9, %v344_v35  ;;  %v385_v8 = vmul.f32 %v908_v9, %v345_v39  ;;  %v386_v14 = vmul.f32 %v908_v9, %v346_v40 }
  0x2d   : > { %v418_v10 = vadd.f32 %v919_v15, %v379_v18  ;;  %v419_v17 = vadd.f32 %v919_v15, %v380_v19  ;;  %v420_v26 = vadd.f32 %v919_v15, %v381_v27  ;;  %v421_v28 = vadd.f32 %v919_v15, %v382_v53 }
  0x2e   : > { %v422_v32 = vadd.f32 %v919_v15, %v383_v61  ;;  %v423_v33 = vadd.f32 %v919_v15, %v384_v16  ;;  %v424_v34 = vadd.f32 %v919_v15, %v385_v8  ;;  %v425_v35 = vadd.f32 %v919_v15, %v386_v14 }
  0x2f   : > { %v450_v39 = vmax.f32 %v418_v10, 0.0  ;;  %v451_v40 = vmax.f32 %v419_v17, 0.0  ;;  %v452_v18 = vmax.f32 %v420_v26, 0.0  ;;  %v453_v19 = vmax.f32 %v421_v28, 0.0 }
  0x30   : > { %v454_v27 = vmax.f32 %v422_v32, 0.0  ;;  %v455_v53 = vmax.f32 %v423_v33, 0.0  ;;  %v456_v12 = vmax.f32 %v424_v34, 0.0  ;;  %v457_v11 = vmax.f32 %v425_v35, 0.0 }
  0x31   : > { %483 = vst.msk [vmem:[%s946_s13] sm:$0xff] %vm482_vm0, %v450_v39  ;;  %484 = vst.msk [vmem:[%s946_s13 + $0x8] sm:$0xff] %vm482_vm0, %v451_v40  ;;  %v387_v14 = vmul.f32 %v908_v9, %v347_v41  ;;  %v388_v16 = vmul.f32 %v908_v9, %v348_v42  ;;  %v389_v8 = vmul.f32 %v908_v9, %v349_v46 }
  0x32   : > { %485 = vst.msk [vmem:[%s946_s13 + $0x10] sm:$0xff] %vm482_vm0, %v452_v18  ;;  %486 = vst.msk [vmem:[%s946_s13 + $0x18] sm:$0xff] %vm482_vm0, %v453_v19  ;;  %v390_v10 = vmul.f32 %v908_v9, %v350_v47  ;;  %v391_v20 = vmul.f32 %v908_v9, %v351_v48  ;;  %v392_v21 = vmul.f32 %v908_v9, %v352_v49 }
  0x33   : > { %487 = vst.msk [vmem:[%s946_s13 + $0x20] sm:$0xff] %vm482_vm0, %v454_v27  ;;  %488 = vst.msk [vmem:[%s946_s13 + $0x28] sm:$0xff] %vm482_vm0, %v455_v53  ;;  %v393_v22 = vmul.f32 %v908_v9, %v353_v54  ;;  %v394_v23 = vmul.f32 %v908_v9, %v354_v55  ;;  %v426_v41 = vadd.f32 %v919_v15, %v387_v14 }
  0x34   : > { %489 = vst.msk [vmem:[%s946_s13 + $0x30] sm:$0xff] %vm482_vm0, %v456_v12  ;;  %490 = vst.msk [vmem:[%s946_s13 + $0x38] sm:$0xff] %vm482_vm0, %v457_v11  ;;  %v427_v24 = vadd.f32 %v919_v15, %v388_v16  ;;  %v428_v25 = vadd.f32 %v919_v15, %v389_v8  ;;  %v429_v42 = vadd.f32 %v919_v15, %v390_v10 }
  0x35   : > { %v430_v29 = vadd.f32 %v919_v15, %v391_v20  ;;  %v431_v46 = vadd.f32 %v919_v15, %v392_v21  ;;  %v432_v30 = vadd.f32 %v919_v15, %v393_v22  ;;  %v433_v47 = vadd.f32 %v919_v15, %v394_v23 }
  0x36   : > { %v458_v48 = vmax.f32 %v426_v41, 0.0  ;;  %v459_v49 = vmax.f32 %v427_v24, 0.0  ;;  %v460_v54 = vmax.f32 %v428_v25, 0.0  ;;  %v461_v55 = vmax.f32 %v429_v42, 0.0 }
  0x37   : > { %v462_v11 = vmax.f32 %v430_v29, 0.0  ;;  %v463_v12 = vmax.f32 %v431_v46, 0.0  ;;  %v464_v17 = vmax.f32 %v432_v30, 0.0  ;;  %v465_v61 = vmax.f32 %v433_v47, 0.0 }
  0x38   : > { %491 = vst.msk [vmem:[%s946_s13 + $0x40] sm:$0xff] %vm482_vm0, %v458_v48  ;;  %492 = vst.msk [vmem:[%s946_s13 + $0x48] sm:$0xff] %vm482_vm0, %v459_v49  ;;  %v395_v26 = vmul.f32 %v908_v9, %v355_v56  ;;  %v396_v28 = vmul.f32 %v908_v9, %v356_v57  ;;  %v397_v32 = vmul.f32 %v908_v9, %v357_v62 }
  0x39   : > { %493 = vst.msk [vmem:[%s946_s13 + $0x50] sm:$0xff] %vm482_vm0, %v460_v54  ;;  %494 = vst.msk [vmem:[%s946_s13 + $0x58] sm:$0xff] %vm482_vm0, %v461_v55  ;;  %v398_v33 = vmul.f32 %v908_v9, %v358_v63  ;;  %v399_v31 = vmul.f32 %v908_v9, %v359_v0  ;;  %v400_v36 = vmul.f32 %v908_v9, %v360_v4 }
  0x3a   : > { %495 = vst.msk [vmem:[%s946_s13 + $0x60] sm:$0xff] %vm482_vm0, %v462_v11  ;;  %496 = vst.msk [vmem:[%s946_s13 + $0x68] sm:$0xff] %vm482_vm0, %v463_v12  ;;  %v401_v37 = vmul.f32 %v908_v9, %v361_v5  ;;  %v402_v38 = vmul.f32 %v908_v9, %v362_v6  ;;  %v434_v56 = vadd.f32 %v919_v15, %v395_v26 }
  0x3b   : > { %497 = vst.msk [vmem:[%s946_s13 + $0x70] sm:$0xff] %vm482_vm0, %v464_v17  ;;  %498 = vst.msk [vmem:[%s946_s13 + $0x78] sm:$0xff] %vm482_vm0, %v465_v61  ;;  %v435_v43 = vadd.f32 %v919_v15, %v396_v28  ;;  %v436_v44 = vadd.f32 %v919_v15, %v397_v32  ;;  %v437_v57 = vadd.f32 %v919_v15, %v398_v33 }
  0x3c   : > { %v438_v45 = vadd.f32 %v919_v15, %v399_v31  ;;  %v439_v62 = vadd.f32 %v919_v15, %v400_v36  ;;  %v440_v50 = vadd.f32 %v919_v15, %v401_v37  ;;  %v441_v63 = vadd.f32 %v919_v15, %v402_v38 }
  0x3d   : > { %v466_v0 = vmax.f32 %v434_v56, 0.0  ;;  %v467_v4 = vmax.f32 %v435_v43, 0.0  ;;  %v468_v5 = vmax.f32 %v436_v44, 0.0  ;;  %v469_v6 = vmax.f32 %v437_v57, 0.0 }
  0x3e   : > { %v470_v34 = vmax.f32 %v438_v45, 0.0  ;;  %v471_v35 = vmax.f32 %v439_v62, 0.0  ;;  %v472_v39 = vmax.f32 %v440_v50, 0.0  ;;  %v473_v40 = vmax.f32 %v441_v63, 0.0 }
  0x3f   : > { %499 = vst.msk [vmem:[%s946_s13 + $0x80] sm:$0xff] %vm482_vm0, %v466_v0  ;;  %500 = vst.msk [vmem:[%s946_s13 + $0x88] sm:$0xff] %vm482_vm0, %v467_v4  ;;  %v403_v18 = vmul.f32 %v908_v9, %v363_v7  ;;  %v1151_v19 = vsub.f32 %v864_v52, %v761_v13  ;;  %v1152_v53 = vsub.f32 %v875_v58, %v761_v13 }
  0x40   : > { %501 = vst.msk [vmem:[%s946_s13 + $0x90] sm:$0xff] %vm482_vm0, %v468_v5  ;;  %502 = vst.msk [vmem:[%s946_s13 + $0x98] sm:$0xff] %vm482_vm0, %v469_v6  ;;  %v1153_v16 = vsub.f32 %v878_v59, %v761_v13  ;;  %v407_v52 = vmul.f32 %v908_v9, %v1154_v51  ;;  %v1155_v58 = vsub.f32 %v890_v1, %v761_v13 }
  0x41   : > { %v404_v27 = vmul.f32 %v908_v9, %v1151_v19  ;;  %v405_v14 = vmul.f32 %v908_v9, %v1152_v53  ;;  %503 = vst.msk [vmem:[%s946_s13 + $0xa0] sm:$0xff] %vm482_vm0, %v470_v34  ;;  %504 = vst.msk [vmem:[%s946_s13 + $0xa8] sm:$0xff] %vm482_vm0, %v471_v35  ;;  %v1156_v7 = vsub.f32 %v893_v2, %v761_v13 }
  0x42   : > { %v406_v8 = vmul.f32 %v908_v9, %v1153_v16  ;;  %505 = vst.msk [vmem:[%s946_s13 + $0xb0] sm:$0xff] %vm482_vm0, %v472_v39  ;;  %506 = vst.msk [vmem:[%s946_s13 + $0xb8] sm:$0xff] %vm482_vm0, %v473_v40  ;;  %v408_v59 = vmul.f32 %v908_v9, %v1155_v58  ;;  %v1157_v20 = vsub.f32 %v896_v3, %v761_v13 }
  0x43   : > { %v409_v10 = vmul.f32 %v908_v9, %v1156_v7  ;;  %v442_v22 = vadd.f32 %v919_v15, %v403_v18  ;;  %v443_v60 = vadd.f32 %v919_v15, %v404_v27  ;;  %v444_v1 = vadd.f32 %v919_v15, %v405_v14 }
  0x44   : > { %v410_v21 = vmul.f32 %v908_v9, %v1157_v20  ;;  %v445_v23 = vadd.f32 %v919_v15, %v406_v8  ;;  %v446_v2 = vadd.f32 %v919_v15, %v407_v52  ;;  %v447_v41 = vadd.f32 %v919_v15, %v408_v59 }
  0x45   : > { %v448_v13 = vadd.f32 %v919_v15, %v409_v10  ;;  %v474_v9 = vmax.f32 %v442_v22, 0.0  ;;  %v475_v24 = vmax.f32 %v443_v60, 0.0  ;;  %v476_v25 = vmax.f32 %v444_v1, 0.0 }
  0x46   : > { %v449_v3 = vadd.f32 %v919_v15, %v410_v21  ;;  %v477_v42 = vmax.f32 %v445_v23, 0.0  ;;  %v478_v29 = vmax.f32 %v446_v2, 0.0  ;;  %v479_v46 = vmax.f32 %v447_v41, 0.0 }
  0x47   : > { %v480_v30 = vmax.f32 %v448_v13, 0.0  ;;  %507 = vst.msk [vmem:[%s946_s13 + $0xc0] sm:$0xff] %vm482_vm0, %v474_v9  ;;  %508 = vst.msk [vmem:[%s946_s13 + $0xc8] sm:$0xff] %vm482_vm0, %v475_v24 }
  0x48   : > { %v481_v47 = vmax.f32 %v449_v3, 0.0  ;;  %509 = vst.msk [vmem:[%s946_s13 + $0xd0] sm:$0xff] %vm482_vm0, %v476_v25  ;;  %510 = vst.msk [vmem:[%s946_s13 + $0xd8] sm:$0xff] %vm482_vm0, %v477_v42 }
  0x49   : > { %511 = vst.msk [vmem:[%s946_s13 + $0xe0] sm:$0xff] %vm482_vm0, %v478_v29  ;;  %512 = vst.msk [vmem:[%s946_s13 + $0xe8] sm:$0xff] %vm482_vm0, %v479_v46 }
  0x4a   : > { %513 = vst.msk [vmem:[%s946_s13 + $0xf0] sm:$0xff] %vm482_vm0, %v480_v30  ;;  %514 = vst.msk [vmem:[%s946_s13 + $0xf8] sm:$0xff] %vm482_vm0, %v481_v47 }
  0x4b PF: > { %s15_s20 = sadd.s32 1, %s682_s20   ;;  %s1158_s18 = smov %s678_s19 }
  0x4c   : > { %p12_p5 = scmp.ge.s32.totalorder %s15_s20, 4   ;;  %s1159_s19 = smov %s1161_s21 }
  0x4e   :  { %14 = sbr.rel (!%p12_p5) target bundleno = 2 (0x2), region = 76 }

// kernel: transformer_forward.45
= control target key start
LH: loop header
LB: loop body
LE: loop exit
PB: predicated region body
PF: predicated region fallthrough
CT: control target
= control target key end

     0   :  { %s1033_s12 = smov 0   ;;  %s1035_s13 = smov 0   ;;  %s1189_s0 = inlined_call_operand.vmem [shape: bf16[128,384], index: 0, kind: input, shape index: {}]   ;;  %s1190_s1 = inlined_call_operand.vmem [shape: bf16[384,128], index: 1, kind: input, shape index: {}]   ;;  %s1191_s2 = inlined_call_operand.vmem [shape: f32[1,128], index: 2, kind: input, shape index: {}]   ;;  %s1192_s3 = inlined_call_operand.vmem [shape: f32[128,128], index: 3, kind: output, shape index: {}]  }
   0x1   :  { %s1037_s14 = smov 0   ;;  %s1039_s15 = smov 0  }
   0x2   :  { %s1041_s16 = smov 0  }
   0x3 LB: > { %s25_s17 = sadd.s32 1, %s1006_s15  ;;  %p48_p1 = scmp.ne.s32.totalorder %s998_s13, %s994_s12  ;;  %s1010_s16 = sphi %s1041_s16, %s13_s16   ;;  %s1006_s15 = sphi %s1039_s15, %s1196_s15   ;;  %s1002_s14 = sphi %s1037_s14, %s1195_s14   ;;  %s998_s13 = sphi %s1035_s13, %s1194_s13   ;;  %s994_s12 = sphi %s1033_s12, %s1193_s12  }
   0x4   : > { %p26_p0 = scmp.ge.s32.totalorder %s25_s17, 3  ;;  %p49_p2 = scmp.eq.s32.totalorder %s1010_s16, 0 }
   0x5   : > { %s41_s19 = sadd.s32 1, %s998_s13  ;;  %p821_p5 = scmp.ge.s32.totalorder %s1010_s16, 3 }
   0x6   : > { %s1198_s17 = smov (%p26_p0, %s25_s17), 0  ;;  %p50_p3 = por %p49_p2, %p48_p1 }
   0x7   : > { %s37_s18 = ssub.s32 %s1006_s15, %s1198_s17  ;;  %162 = sbr.rel (%p821_p5) target bundleno = 26 (0x1a), region = 20 }
   0x8   : > { %p39_p4 = scmp.eq.s32.totalorder %s37_s18, 0 }
   0xa   : > { %s1068_s20 = scalar_select %p39_p4, %s998_s13, %s41_s19  }
   0xc   : > { %165 = sbr.rel (!%p50_p3) target bundleno = 26 (0x1a), region = 24  ;;  %s167_s21 = sand.u32 (%p50_p3), 1, %s998_s13  }
   0xd   : > { %s823_s22 = sshll.u32 (%p50_p3), %s1006_s15, 2  ;;  %s822_s23 = sshll.u32 (%p50_p3), %s167_s21, 6 }
   0xe   : > { %s1076_s26 = scalar_lea.vmem (%p50_p3), %s1189_s0, %s823_s22  ;;  %s169_s27 = scalar_lea.vmem (%p50_p3), [#allocation3], %s822_s23 }
   0xf   : > { %v191_v0 = vld [vmem:[%s1076_s26] sm:$0xf] (%p50_p3)  ;;  %v193_v1 = vld [vmem:[%s1076_s26 + $0xc] sm:$0xf] (%p50_p3)  ;;  %v195_v2 = vld [vmem:[%s1076_s26 + $0x18] sm:$0xf] (%p50_p3) }
  0x10   : > { %192 = vst [vmem:[%s169_s27] sm:$0xf] (%p50_p3), %v191_v0  ;;  %194 = vst [vmem:[%s169_s27 + $0x4] sm:$0xf] (%p50_p3), %v193_v1  ;;  %v197_v3 = vld [vmem:[%s1076_s26 + $0x24] sm:$0xf] (%p50_p3) }
  0x11   : > { %v199_v4 = vld [vmem:[%s1076_s26 + $0x30] sm:$0xf]  ;;  %196 = vst [vmem:[%s169_s27 + $0x8] sm:$0xf] %v195_v2  ;;  %198 = vst [vmem:[%s169_s27 + $0xc] sm:$0xf] %v197_v3 }
  0x12   : > { %200 = vst [vmem:[%s169_s27 + $0x10] sm:$0xf] %v199_v4  ;;  %v201_v5 = vld [vmem:[%s1076_s26 + $0x3c] sm:$0xf]  ;;  %v203_v6 = vld [vmem:[%s1076_s26 + $0x48] sm:$0xf] }
  0x13   : > { %v205_v7 = vld [vmem:[%s1076_s26 + $0x54] sm:$0xf]  ;;  %202 = vst [vmem:[%s169_s27 + $0x14] sm:$0xf] %v201_v5  ;;  %204 = vst [vmem:[%s169_s27 + $0x18] sm:$0xf] %v203_v6 }
  0x14   : > { %206 = vst [vmem:[%s169_s27 + $0x1c] sm:$0xf] %v205_v7  ;;  %v207_v8 = vld [vmem:[%s1076_s26 + $0x60] sm:$0xf]  ;;  %v209_v9 = vld [vmem:[%s1076_s26 + $0x6c] sm:$0xf] }
  0x15   : > { %v211_v10 = vld [vmem:[%s1076_s26 + $0x78] sm:$0xf]  ;;  %208 = vst [vmem:[%s169_s27 + $0x20] sm:$0xf] %v207_v8  ;;  %210 = vst [vmem:[%s169_s27 + $0x24] sm:$0xf] %v209_v9 }
  0x16   : > { %212 = vst [vmem:[%s169_s27 + $0x28] sm:$0xf] %v211_v10  ;;  %v213_v11 = vld [vmem:[%s1076_s26 + $0x84] sm:$0xf]  ;;  %v215_v12 = vld [vmem:[%s1076_s26 + $0x90] sm:$0xf] }
  0x17   : > { %v217_v13 = vld [vmem:[%s1076_s26 + $0x9c] sm:$0xf]  ;;  %214 = vst [vmem:[%s169_s27 + $0x2c] sm:$0xf] %v213_v11  ;;  %216 = vst [vmem:[%s169_s27 + $0x30] sm:$0xf] %v215_v12 }
  0x18   : > { %218 = vst [vmem:[%s169_s27 + $0x34] sm:$0xf] %v217_v13  ;;  %v219_v14 = vld [vmem:[%s1076_s26 + $0xa8] sm:$0xf]  ;;  %v221_v15 = vld [vmem:[%s1076_s26 + $0xb4] sm:$0xf] }
  0x19   : > { %220 = vst [vmem:[%s169_s27 + $0x38] sm:$0xf] %v219_v14  ;;  %222 = vst [vmem:[%s169_s27 + $0x3c] sm:$0xf] %v221_v15 }
  0x1a PF: > { %p824_p6 = scmp.ge.s32.totalorder %s1010_s16, 1  ;;  %p289_p7 = scmp.lt.s32.totalorder %s1010_s16, 4 }
  0x1c   : > { %p290_p8 = pnand %p824_p6, %p289_p7 }
  0x1d   : > { %s296_s28 = sand.u32 (!%p290_p8), 1, %s994_s12   ;;  %s826_s29 = sshll.u32 (!%p290_p8), %s1002_s14, 4 }
  0x1e   : > { %293 = sbr.rel (%p290_p8) target bundleno = 303 (0x12f), region = 69  ;;  %s825_s30 = sshll.u32 (!%p290_p8), %s296_s28, 6 }
  0x1f   : > { %p335_p9 = scmp.lt.s32.totalorder (!%p290_p8), %s826_s29, 47  ;;  %s1103_s8 = scalar_lea.vmem (!%p290_p8), [#allocation3], %s825_s30 }
  0x20   : > { %p828_p10 = scmp.ne.s32.totalorder (!%p290_p8), %s1002_s14, 0 }
  0x23   : > { %s1200_s29 = smov (!%p335_p9, %s826_s29), 47  ;;  %359 = sbr.rel (%p828_p10) target bundleno = 49 (0x31), region = 77 }
  0x24   : > { %s827_s4 = sshll.u32 %s1200_s29, 2 }
  0x25   : > { %s1101_s7 = scalar_lea.vmem %s1190_s1, %s827_s4 }
  0x28   : > { %v1012_v16 = vmov 0.0  }
  0x29   : > { %360 = vst [vmem:[#allocation2 + $0x30] sm:$0xff] %v1012_v16  ;;  %361 = vst [vmem:[#allocation2] sm:$0xff] %v1012_v16 }
  0x2a   : > { %362 = vst [vmem:[#allocation2 + $0x58] sm:$0xff] %v1012_v16  ;;  %363 = vst [vmem:[#allocation2 + $0x18] sm:$0xff] %v1012_v16 }
  0x2b   : > { %364 = vst [vmem:[#allocation2 + $0x50] sm:$0xff] %v1012_v16  ;;  %365 = vst [vmem:[#allocation2 + $0x68] sm:$0xff] %v1012_v16 }
  0x2c   : > { %366 = vst [vmem:[#allocation2 + $0x8] sm:$0xff] %v1012_v16  ;;  %367 = vst [vmem:[#allocation2 + $0x48] sm:$0xff] %v1012_v16 }
  0x2d   : > { %368 = vst [vmem:[#allocation2 + $0x40] sm:$0xff] %v1012_v16  ;;  %369 = vst [vmem:[#allocation2 + $0x20] sm:$0xff] %v1012_v16 }
  0x2e   : > { %370 = vst [vmem:[#allocation2 + $0x10] sm:$0xff] %v1012_v16  ;;  %371 = vst [vmem:[#allocation2 + $0x38] sm:$0xff] %v1012_v16 }
  0x2f   : > { %372 = vst [vmem:[#allocation2 + $0x60] sm:$0xff] %v1012_v16  ;;  %373 = vst [vmem:[#allocation2 + $0x70] sm:$0xff] %v1012_v16 }
  0x30   : > { %374 = vst [vmem:[#allocation2 + $0x78] sm:$0xff] %v1012_v16  ;;  %375 = vst [vmem:[#allocation2 + $0x28] sm:$0xff] %v1012_v16 }
  0x31 PF: > { %v956_v17 = vld [vmem:[%s1101_s7 + $0x38] sm:$0xff]   ;;  %v957_v18 = vld [vmem:[%s1101_s7 + $0x30] sm:$0xff]   ;;  %v958_v19 = vld [vmem:[%s1101_s7 + $0x28] sm:$0xff]   ;;  %p845_p11 = scmp.ne.s32.totalorder %s1002_s14, 2 }
  0x32   : > { %867 = vmatprep.subr.bf16.mxu0 %v956_v17  ;;  %899 = vmatprep.subr.bf16.mxu1 %v956_v17  ;;  %v959_v20 = vld [vmem:[%s1101_s7 + $0x20] sm:$0xff]   ;;  %v960_v23 = vld [vmem:[%s1101_s7 + $0x18] sm:$0xff]   ;;  %v961_v24 = vld [vmem:[%s1101_s7 + $0x10] sm:$0xff]  }
  0x33   : > { %868 = vmatpush3.bf16.msra.mxu0 %v956_v17  ;;  %907 = vmatpush3.bf16.msra.mxu1 %v956_v17  ;;  %v964_v21 = vld [vmem:[%s1103_s8] sm:$0xff]   ;;  %v962_v25 = vld [vmem:[%s1101_s7 + $0x8] sm:$0xff]   ;;  %v968_v29 = vld [vmem:[%s1103_s8 + $0x10] sm:$0xff]  }
  0x34   : > { %869 = vmatprep.subr.bf16.mxu0 %v957_v18  ;;  %900 = vmatprep.subr.bf16.mxu1 %v957_v18  ;;  %v965_v22 = vld [vmem:[%s1103_s8 + $0x20] sm:$0xff]   ;;  %v966_v27 = vld [vmem:[%s1103_s8 + $0x8] sm:$0xff]   ;;  %v969_v30 = vld [vmem:[%s1103_s8 + $0x30] sm:$0xff]  }
  0x35   : > { %883 = vmatprep.mubr.bf16.mxu0 %v964_v21  ;;  %891 = vmatprep.mubr.bf16.mxu1 %v965_v22  ;;  %v963_v26 = vld [vmem:[%s1101_s7] sm:$0xff]   ;;  %v967_v28 = vld [vmem:[%s1103_s8 + $0x28] sm:$0xff]   ;;  %v970_v31 = vld [vmem:[%s1103_s8 + $0x18] sm:$0xff]  }
  0x36   : > { %v971_v32 = vld [vmem:[%s1103_s8 + $0x38] sm:$0xff]   ;;  %v386_v34 = vld [vmem:[#allocation2 + $0x10] sm:$0xff]  ;;  %v384_v38 = vld [vmem:[#allocation2 + $0x40] sm:$0xff] }
  0x37   : > { %870 = vmatpush3.bf16.msra.mxu0 %v957_v18  ;;  %908 = vmatpush3.bf16.msra.mxu1 %v957_v18  ;;  %v378_v33 = vld [vmem:[#allocation2 + $0x58] sm:$0xff]  ;;  %v376_v37 = vld [vmem:[#allocation2 + $0x30] sm:$0xff]  ;;  %v377_v49 = vld [vmem:[#allocation2] sm:$0xff] }
  0x38   : > { %871 = vmatprep.subr.bf16.mxu0 %v958_v19  ;;  %901 = vmatprep.subr.bf16.mxu1 %v958_v19  ;;  %v379_v43 = vld [vmem:[#allocation2 + $0x18] sm:$0xff]  ;;  %v385_v50 = vld [vmem:[#allocation2 + $0x20] sm:$0xff]  ;;  %v382_v55 = vld [vmem:[#allocation2 + $0x8] sm:$0xff] }
  0x39   : > { %v387_v44 = vld [vmem:[#allocation2 + $0x38] sm:$0xff]  ;;  %v380_v61 = vld [vmem:[#allocation2 + $0x50] sm:$0xff]  ;;  %v388_v62 = vld [vmem:[#allocation2 + $0x60] sm:$0xff] }
  0x3a   : > { %v390_v56 = vld [vmem:[#allocation2 + $0x78] sm:$0xff]  ;;  %v383_v3 = vld [vmem:[#allocation2 + $0x48] sm:$0xff]  ;;  %v389_v10 = vld [vmem:[#allocation2 + $0x70] sm:$0xff] }
  0x3b   : > { %872 = vmatpush3.bf16.msra.mxu0 %v958_v19  ;;  %909 = vmatpush3.bf16.msra.mxu1 %v958_v19  ;;  %v391_v4 = vld [vmem:[#allocation2 + $0x28] sm:$0xff] }
  0x3c   : > { %873 = vmatprep.subr.bf16.mxu0 %v959_v20  ;;  %902 = vmatprep.subr.bf16.mxu1 %v959_v20  ;;  %v381_v9 = vld [vmem:[#allocation2 + $0x68] sm:$0xff] }
  0x3f   : > { %874 = vmatpush3.bf16.msra.mxu0 %v959_v20  ;;  %910 = vmatpush3.bf16.msra.mxu1 %v959_v20 }
  0x40   : > { %875 = vmatprep.subr.bf16.mxu0 %v960_v23  ;;  %903 = vmatprep.subr.bf16.mxu1 %v960_v23 }
  0x43   : > { %876 = vmatpush3.bf16.msra.mxu0 %v960_v23  ;;  %911 = vmatpush3.bf16.msra.mxu1 %v960_v23 }
  0x44   : > { %877 = vmatprep.subr.bf16.mxu0 %v961_v24  ;;  %904 = vmatprep.subr.bf16.mxu1 %v961_v24 }
  0x47   : > { %878 = vmatpush3.bf16.msra.mxu0 %v961_v24  ;;  %912 = vmatpush3.bf16.msra.mxu1 %v961_v24 }
  0x48   : > { %879 = vmatprep.subr.bf16.mxu0 %v962_v25  ;;  %905 = vmatprep.subr.bf16.mxu1 %v962_v25 }
  0x4b   : > { %880 = vmatpush3.bf16.msra.mxu0 %v962_v25  ;;  %913 = vmatpush3.bf16.msra.mxu1 %v962_v25 }
  0x4c   : > { %881 = vmatprep.subr.bf16.mxu0 %v963_v26  ;;  %906 = vmatprep.subr.bf16.mxu1 %v963_v26 }
  0x4f   : > { %882 = vmatpush3.bf16.msra.mxu0 %v963_v26  ;;  %914 = vmatpush3.bf16.msra.mxu1 %v963_v26 }
  0x52   : > { %884 = vmatmul.mubr.bf16.vlgmr.msra.gmra.mxu0 %v966_v27  ;;  %892 = vmatmul.mubr.bf16.vlgmr.msra.gmra.mxu1 %v967_v28 }
  0x53   : > { %887 = vmatprep.mubr.bf16.mxu0 %v968_v29  ;;  %895 = vmatprep.mubr.bf16.mxu1 %v969_v30 }
  0x5a   : > { %888 = vmatmul.mubr.bf16.gmra.mxu0 %v970_v31  ;;  %896 = vmatmul.mubr.bf16.gmra.mxu1 %v971_v32 }
 0x112   : > { %v885_v35 = vpop.f32.mrf.mxu0  ;;  %v893_v36 = vpop.f32.mrf.mxu1 }
 0x113   : > { %v619_v39 = vadd.f32 %v885_v35, %v378_v33  ;;  %v627_v40 = vadd.f32 %v893_v36, %v386_v34 }
 0x114   : > { %v554_v41 = vpop.f32.mrf.mxu0  ;;  %v586_v42 = vpop.f32.mrf.mxu1 }
 0x115   : > { %635 = vst [vmem:[#allocation2 + $0x58] sm:$0xff] %v619_v39  ;;  %643 = vst [vmem:[#allocation2 + $0x10] sm:$0xff] %v627_v40  ;;  %v617_v45 = vadd.f32 %v554_v41, %v376_v37  ;;  %v625_v46 = vadd.f32 %v586_v42, %v384_v38 }
 0x116   : > { %v886_v47 = vpop.f32.mrf.mxu0  ;;  %v894_v48 = vpop.f32.mrf.mxu1 }
 0x117   : > { %633 = vst [vmem:[#allocation2 + $0x30] sm:$0xff] %v617_v45  ;;  %641 = vst [vmem:[#allocation2 + $0x40] sm:$0xff] %v625_v46  ;;  %v620_v51 = vadd.f32 %v886_v47, %v379_v43  ;;  %v628_v52 = vadd.f32 %v894_v48, %v387_v44 }
 0x118   : > { %v557_v53 = vpop.f32.mrf.mxu0  ;;  %v589_v54 = vpop.f32.mrf.mxu1 }
 0x119   : > { %636 = vst [vmem:[#allocation2 + $0x18] sm:$0xff] %v620_v51  ;;  %644 = vst [vmem:[#allocation2 + $0x38] sm:$0xff] %v628_v52  ;;  %v618_v57 = vadd.f32 %v557_v53, %v377_v49  ;;  %v626_v58 = vadd.f32 %v589_v54, %v385_v50 }
 0x11a   : > { %v889_v59 = vpop.f32.mrf.mxu0  ;;  %v897_v60 = vpop.f32.mrf.mxu1 }
 0x11b   : > { %634 = vst [vmem:[#allocation2] sm:$0xff] %v618_v57  ;;  %642 = vst [vmem:[#allocation2 + $0x20] sm:$0xff] %v626_v58  ;;  %v623_v63 = vadd.f32 %v889_v59, %v382_v55  ;;  %v631_v0 = vadd.f32 %v897_v60, %v390_v56 }
 0x11c   : > { %v570_v1 = vpop.f32.mrf.mxu0  ;;  %v602_v2 = vpop.f32.mrf.mxu1 }
 0x11d   : > { %639 = vst [vmem:[#allocation2 + $0x8] sm:$0xff] %v623_v63  ;;  %647 = vst [vmem:[#allocation2 + $0x78] sm:$0xff] %v631_v0  ;;  %v621_v5 = vadd.f32 %v570_v1, %v380_v61  ;;  %v629_v6 = vadd.f32 %v602_v2, %v388_v62 }
 0x11e   : > { %v890_v7 = vpop.f32.mrf.mxu0  ;;  %v898_v8 = vpop.f32.mrf.mxu1 }
 0x11f   : > { %637 = vst [vmem:[#allocation2 + $0x50] sm:$0xff] %v621_v5  ;;  %645 = vst [vmem:[#allocation2 + $0x60] sm:$0xff] %v629_v6  ;;  %v624_v11 = vadd.f32 %v890_v7, %v383_v3  ;;  %v632_v12 = vadd.f32 %v898_v8, %v391_v4  ;;  %652 = sbr.rel (%p845_p11) target bundleno = 303 (0x12f), region = 81 }
 0x120   : > { %v573_v13 = vpop.f32.mrf.mxu0  ;;  %v605_v14 = vpop.f32.mrf.mxu1 }
 0x121   : > { %640 = vst [vmem:[#allocation2 + $0x48] sm:$0xff] %v624_v11  ;;  %648 = vst [vmem:[#allocation2 + $0x28] sm:$0xff] %v632_v12  ;;  %v622_v15 = vadd.f32 %v573_v13, %v381_v9  ;;  %v630_v16 = vadd.f32 %v605_v14, %v389_v10 }
 0x123   : > { %638 = vst [vmem:[#allocation2 + $0x68] sm:$0xff] %v622_v15  ;;  %646 = vst [vmem:[#allocation2 + $0x70] sm:$0xff] %v630_v16 }
 0x124   : > { %v653_v17 = vld [vmem:[#allocation2 + $0x30] sm:$0xff]  ;;  %v846_v18 = vld [vmem:[%s1191_s2] ss:$0 sm:$0xff]  ;;  %v655_v22 = vld [vmem:[#allocation2 + $0x58] sm:$0xff] }
 0x125   : > { %v654_v19 = vld [vmem:[#allocation2] sm:$0xff]  ;;  %v676_v20 = vadd.f32 %v846_v18, %v653_v17  ;;  %v656_v23 = vld [vmem:[#allocation2 + $0x18] sm:$0xff]  ;;  %v678_v25 = vadd.f32 %v846_v18, %v655_v22  ;;  %v659_v29 = vld [vmem:[#allocation2 + $0x8] sm:$0xff] }
 0x126   : > { %v677_v21 = vadd.f32 %v846_v18, %v654_v19  ;;  %v657_v24 = vld [vmem:[#allocation2 + $0x50] sm:$0xff]  ;;  %v679_v26 = vadd.f32 %v846_v18, %v656_v23  ;;  %v682_v32 = vadd.f32 %v846_v18, %v659_v29  ;;  %v661_v34 = vld [vmem:[#allocation2 + $0x40] sm:$0xff]  ;;  %v664_v40 = vld [vmem:[#allocation2 + $0x38] sm:$0xff] }
 0x127   : > { %v680_v27 = vadd.f32 %v846_v18, %v657_v24  ;;  %692 = vst [vmem:[%s1192_s3] sm:$0xff] %v676_v20  ;;  %v662_v35 = vld [vmem:[#allocation2 + $0x20] sm:$0xff]  ;;  %v663_v36 = vld [vmem:[#allocation2 + $0x10] sm:$0xff]  ;;  %694 = vst [vmem:[%s1192_s3 + $0x10] sm:$0xff] %v678_v25  ;;  %v684_v37 = vadd.f32 %v846_v18, %v661_v34  ;;  %v687_v43 = vadd.f32 %v846_v18, %v664_v40 }
 0x128   : > { %v660_v30 = vld [vmem:[#allocation2 + $0x48] sm:$0xff]  ;;  %693 = vst [vmem:[%s1192_s3 + $0x8] sm:$0xff] %v677_v21  ;;  %695 = vst [vmem:[%s1192_s3 + $0x18] sm:$0xff] %v679_v26  ;;  %v685_v38 = vadd.f32 %v846_v18, %v662_v35  ;;  %v686_v39 = vadd.f32 %v846_v18, %v663_v36  ;;  %v665_v41 = vld [vmem:[#allocation2 + $0x60] sm:$0xff] }
 0x129   : > { %v683_v33 = vadd.f32 %v846_v18, %v660_v30  ;;  %696 = vst [vmem:[%s1192_s3 + $0x20] sm:$0xff] %v680_v27  ;;  %698 = vst [vmem:[%s1192_s3 + $0x30] sm:$0xff] %v682_v32  ;;  %v688_v44 = vadd.f32 %v846_v18, %v665_v41  ;;  %v667_v46 = vld [vmem:[#allocation2 + $0x78] sm:$0xff]  ;;  %v668_v47 = vld [vmem:[#allocation2 + $0x28] sm:$0xff] }
 0x12a   : > { %v658_v28 = vld [vmem:[#allocation2 + $0x68] sm:$0xff]  ;;  %v666_v42 = vld [vmem:[#allocation2 + $0x70] sm:$0xff]  ;;  %700 = vst [vmem:[%s1192_s3 + $0x40] sm:$0xff] %v684_v37  ;;  %701 = vst [vmem:[%s1192_s3 + $0x48] sm:$0xff] %v685_v38  ;;  %v690_v48 = vadd.f32 %v846_v18, %v667_v46  ;;  %v691_v49 = vadd.f32 %v846_v18, %v668_v47 }
 0x12b   : > { %v681_v31 = vadd.f32 %v846_v18, %v658_v28  ;;  %699 = vst [vmem:[%s1192_s3 + $0x38] sm:$0xff] %v683_v33  ;;  %v689_v45 = vadd.f32 %v846_v18, %v666_v42  ;;  %702 = vst [vmem:[%s1192_s3 + $0x50] sm:$0xff] %v686_v39 }
 0x12c   : > { %703 = vst [vmem:[%s1192_s3 + $0x58] sm:$0xff] %v687_v43  ;;  %704 = vst [vmem:[%s1192_s3 + $0x60] sm:$0xff] %v688_v44 }
 0x12d   : > { %697 = vst [vmem:[%s1192_s3 + $0x28] sm:$0xff] %v681_v31  ;;  %705 = vst [vmem:[%s1192_s3 + $0x68] sm:$0xff] %v689_v45 }
 0x12e   : > { %706 = vst [vmem:[%s1192_s3 + $0x70] sm:$0xff] %v690_v48  ;;  %707 = vst [vmem:[%s1192_s3 + $0x78] sm:$0xff] %v691_v49 }
 0x12f PF: > { %s13_s16 = sadd.s32 1, %s1010_s16   ;;  %s1193_s12 = smov %s998_s13 }
 0x130   : > { %p10_p12 = scmp.ge.s32.totalorder %s13_s16, 5   ;;  %s1194_s13 = smov %s1068_s20 }
 0x131   : > { %s1195_s14 = smov %s1006_s15  ;;  %s1196_s15 = smov %s1198_s17 }
 0x132   :  { %12 = sbr.rel (!%p10_p12) target bundleno = 3 (0x3), region = 122 }

// kernel: transformer_forward.46
= control target key start
LH: loop header
LB: loop body
LE: loop exit
PB: predicated region body
PF: predicated region fallthrough
CT: control target
= control target key end

     0   :  { %s411_s9 = smov 0   ;;  %s413_s10 = smov 0   ;;  %s487_s0 = inlined_call_operand.vmem [shape: f32[2,64,64], index: 0, kind: input, shape index: {}]   ;;  %s488_s1 = inlined_call_operand.vmem [shape: f32[2,1,64], index: 1, kind: output, shape index: {0}]   ;;  %s489_s2 = inlined_call_operand.vmem [shape: f32[2,1,64], index: 2, kind: output, shape index: {1}]  }
   0x1   :  { %s415_s11 = smov 0  }
   0x2 LB: > { %s25_s12 = sadd.s32 1, %s389_s10  ;;  %p340_p0 = scmp.ge.s32.totalorder %s393_s11, 1  ;;  %s393_s11 = sphi %s415_s11, %s13_s11   ;;  %s389_s10 = sphi %s413_s10, %s491_s10   ;;  %s385_s9 = sphi %s411_s9, %s490_s9  }
   0x3   : > { %p27_p1 = scmp.ge.s32.totalorder %s25_s12, 2  ;;  %p134_p2 = scmp.lt.s32.totalorder %s393_s11, 3 }
   0x5   : > { %s493_s12 = smov (%p27_p1, %s25_s12), 0  ;;  %p135_p3 = pnand %p340_p0, %p134_p2 }
   0x6   : > { %p162_p4 = scmp.lt.s32.totalorder (!%p135_p3), %s385_s9, 1 }
   0x7   : > { %138 = sbr.rel (%p135_p3) target bundleno = 49 (0x31), region = 24 }
   0xc   : > { %s495_s9 = smov (!%p162_p4, %s385_s9), 1  ;;  %vm181_vm0 = vcmask 516096   ;;  %vm193_vm1 = vcmask 523264   ;;  %v395_v0 = vmov 0.0  }
   0xd   : > { %s345_s13 = sshll.u32 %s495_s9, 6  ;;  %s432_s16 = scalar_lea.vmem %s488_s1, %s495_s9 }
   0xe   : > { %s437_s19 = scalar_lea.vmem %s487_s0, %s345_s13  ;;  %182 = vst.msk [vmem:[%s432_s16] sm:$0x1] %vm181_vm0, %v395_v0  ;;  %s444_s22 = scalar_lea.vmem %s489_s2, %s495_s9 }
   0xf   : > { %v184_v1 = vld [vmem:[%s437_s19] sm:$0xff]  ;;  %v185_v2 = vld [vmem:[%s437_s19 + $0x8] sm:$0xff]  ;;  %v186_v3 = vld [vmem:[%s437_s19 + $0x10] sm:$0xff]  ;;  %183 = vst.msk [vmem:[%s444_s22] sm:$0x1] %vm181_vm0, %v395_v0 }
  0x10   : > { %v187_v4 = vld [vmem:[%s437_s19 + $0x18] sm:$0xff]  ;;  %v194_v5 = vsel %vm193_vm1, %v184_v1, 0.0  ;;  %v195_v6 = vsel %vm193_vm1, %v185_v2, 0.0  ;;  %v197_v7 = vsel %vm193_vm1, %v186_v3, 0.0  ;;  %v219_v8 = vmul.f32 %v184_v1, %v184_v1  ;;  %v188_v9 = vld [vmem:[%s437_s19 + $0x20] sm:$0xff]  ;;  %v189_v14 = vld [vmem:[%s437_s19 + $0x28] sm:$0xff] }
  0x11   : > { %v196_v10 = vadd.f32 %v195_v6, %v194_v5  ;;  %v199_v11 = vsel %vm193_vm1, %v187_v4, 0.0  ;;  %v220_v12 = vmul.f32 %v185_v2, %v185_v2  ;;  %v221_v13 = vmul.f32 %v186_v3, %v186_v3  ;;  %v190_v21 = vld [vmem:[%s437_s19 + $0x30] sm:$0xff]  ;;  %v191_v28 = vld [vmem:[%s437_s19 + $0x38] sm:$0xff] }
  0x12   : > { %v222_v16 = vmul.f32 %v187_v4, %v187_v4  ;;  %v201_v17 = vsel %vm193_vm1, %v188_v9, 0.0  ;;  %v223_v18 = vmul.f32 %v188_v9, %v188_v9  ;;  %v227_v19 = vsel %vm193_vm1, %v219_v8, 0.0 }
  0x13   : > { %v198_v15 = vadd.f32 %v197_v7, %v196_v10  ;;  %v228_v20 = vsel %vm193_vm1, %v220_v12, 0.0  ;;  %v230_v24 = vsel %vm193_vm1, %v221_v13, 0.0  ;;  %v203_v25 = vsel %vm193_vm1, %v189_v14, 0.0 }
  0x14   : > { %v229_v23 = vadd.f32 %v228_v20, %v227_v19  ;;  %v224_v26 = vmul.f32 %v189_v14, %v189_v14  ;;  %v232_v27 = vsel %vm193_vm1, %v222_v16, 0.0  ;;  %v205_v31 = vsel %vm193_vm1, %v190_v21, 0.0 }
  0x15   : > { %v200_v22 = vadd.f32 %v199_v11, %v198_v15  ;;  %v225_v32 = vmul.f32 %v190_v21, %v190_v21  ;;  %v234_v33 = vsel %vm193_vm1, %v223_v18, 0.0  ;;  %v207_v36 = vsel %vm193_vm1, %v191_v28, 0.0  ;;  %v192_v55 = vld [vmem:[%s432_s16] sm:$0x1] }
  0x16   : > { %v231_v30 = vadd.f32 %v230_v24, %v229_v23  ;;  %v226_v37 = vmul.f32 %v191_v28, %v191_v28  ;;  %v236_v38 = vsel %vm193_vm1, %v224_v26, 0.0  ;;  %v218_v60 = vld [vmem:[%s444_s22] sm:$0x1] }
  0x17   : > { %v202_v29 = vadd.f32 %v201_v17, %v200_v22  ;;  %v238_v41 = vsel %vm193_vm1, %v225_v32, 0.0 }
  0x18   : > { %v233_v35 = vadd.f32 %v232_v27, %v231_v30  ;;  %v240_v44 = vsel %vm193_vm1, %v226_v37, 0.0 }
  0x19   : > { %v204_v34 = vadd.f32 %v203_v25, %v202_v29 }
  0x1a   : > { %v235_v40 = vadd.f32 %v234_v33, %v233_v35 }
  0x1b   : > { %v206_v39 = vadd.f32 %v205_v31, %v204_v34 }
  0x1c   : > { %v237_v43 = vadd.f32 %v236_v38, %v235_v40 }
  0x1d   : > { %v208_v42 = vadd.f32 %v207_v36, %v206_v39 }
  0x1e   : > { %v239_v46 = vadd.f32 %v238_v41, %v237_v43 }
  0x1f   : > { %v209_v45 = vrot.slane %v208_v42, 4 }
  0x20   : > { %v241_v48 = vadd.f32 %v240_v44, %v239_v46 }
  0x21   : > { %v210_v47 = vadd.f32 %v209_v45, %v208_v42 }
  0x22   : > { %v242_v50 = vrot.slane %v241_v48, 4 }
  0x23   : > { %v211_v49 = vrot.slane %v210_v47, 2 }
  0x24   : > { %v243_v52 = vadd.f32 %v242_v50, %v241_v48 }
  0x25   : > { %v212_v51 = vadd.f32 %v211_v49, %v210_v47 }
  0x26   : > { %v244_v54 = vrot.slane %v243_v52, 2 }
  0x27   : > { %v213_v53 = vrot.slane %v212_v51, 1 }
  0x28   : > { %v245_v57 = vadd.f32 %v244_v54, %v243_v52 }
  0x29   : > { %v214_v56 = vadd.f32 %v213_v53, %v212_v51 }
  0x2a   : > { %v246_v59 = vrot.slane %v245_v57, 1 }
  0x2b   : > { %v215_v58 = vadd.f32 %v214_v56, %v192_v55 }
  0x2c   : > { %v247_v61 = vadd.f32 %v246_v59, %v245_v57 }
  0x2d   : > { %217 = vst.msk [vmem:[%s432_s16] sm:$0x1] %vm181_vm0, %v215_v58 }
  0x2e   : > { %v248_v62 = vadd.f32 %v247_v61, %v218_v60 }
  0x30   : > { %249 = vst.msk [vmem:[%s444_s22] sm:$0x1] %vm181_vm0, %v248_v62 }
  0x31 PF: > { %s13_s11 = sadd.s32 1, %s393_s11   ;;  %s490_s9 = smov %s389_s10 }
  0x32   : > { %p10_p5 = scmp.ge.s32.totalorder %s13_s11, 4   ;;  %s491_s10 = smov %s493_s12 }
  0x34   :  { %12 = sbr.rel (!%p10_p5) target bundleno = 2 (0x2), region = 70 }

// kernel: transformer_forward.47
= control target key start
LH: loop header
LB: loop body
LE: loop exit
PB: predicated region body
PF: predicated region fallthrough
CT: control target
= control target key end

     0   :  { %s570_s18 = smov 0   ;;  %s572_s19 = smov 0   ;;  %s632_s0 = inlined_call_operand.vmem [shape: f32[2,64,64], index: 0, kind: input, shape index: {}]   ;;  %s633_s1 = inlined_call_operand.vmem [shape: f32[2,1,64], index: 1, kind: input, shape index: {}]   ;;  %s634_s2 = inlined_call_operand.vmem [shape: f32[2,1,64], index: 2, kind: input, shape index: {}]   ;;  %s635_s3 = inlined_call_operand.vmem [shape: f32[1,64], index: 3, kind: input, shape index: {}]   ;;  %s636_s4 = inlined_call_operand.vmem [shape: f32[1,64], index: 4, kind: input, shape index: {}]   ;;  %s637_s5 = inlined_call_operand.vmem [shape: f32[2,64,64], index: 5, kind: output, shape index: {}]  }
   0x1   :  { %s574_s20 = smov 0  }
   0x2 LB: > { %s27_s21 = sadd.s32 1, %s534_s19  ;;  %p480_p0 = scmp.ge.s32.totalorder %s538_s20, 1  ;;  %s538_s20 = sphi %s574_s20, %s15_s20   ;;  %s534_s19 = sphi %s572_s19, %s639_s19   ;;  %s530_s18 = sphi %s570_s18, %s638_s18  }
   0x3   : > { %p29_p1 = scmp.ge.s32.totalorder %s27_s21, 2  ;;  %p224_p2 = scmp.lt.s32.totalorder %s538_s20, 3 }
   0x5   : > { %s641_s21 = smov (%p29_p1, %s27_s21), 0  ;;  %p225_p3 = pnand %p480_p0, %p224_p2 }
   0x6   : > { %p267_p4 = scmp.lt.s32.totalorder (!%p225_p3), %s530_s18, 1 }
   0x7   : > { %228 = sbr.rel (%p225_p3) target bundleno = 53 (0x35), region = 40 }
   0xc   : > { %s643_s18 = smov (!%p267_p4, %s530_s18), 1  ;;  %v310_v7 = vlaneseq  ;;  %v323_v13 = vld [vmem:[%s635_s3] sm:$0x1]  ;;  %vm362_vm0 = vcmask 523264  }
   0xd   : > { %s278_s24 = scalar_lea.vmem %s633_s1, %s643_s18  ;;  %s281_s27 = scalar_lea.vmem %s634_s2, %s643_s18  ;;  %v485_v32 = vld [vmem:[%s636_s4] ss:$0 sm:$0xff] }
   0xe   : > { %v300_v0 = vld [vmem:[%s278_s24] sm:$0x1]  ;;  %v311_v9 = vshrl.u32 %v310_v7, 7  ;;  %s488_s28 = sshll.u32 %s643_s18, 6 }
   0xf   : > { %v301_v1 = vmul.f32 0.015625, %v300_v0  ;;  %v302_v2 = vld [vmem:[%s281_s27] sm:$0x1]  ;;  %s274_s6 = scalar_lea.vmem %s632_s0, %s488_s28  ;;  %s290_s13 = scalar_lea.vmem %s637_s5, %s488_s28 }
  0x10   : > { %v303_v3 = vmul.f32 0.015625, %v302_v2  ;;  %v312_v10 = vsub.s32 0, %v311_v9  ;;  %v292_v12 = vld [vmem:[%s274_s6] sm:$0xff]  ;;  %v293_v14 = vld [vmem:[%s274_s6 + $0x8] sm:$0xff]  ;;  %v294_v15 = vld [vmem:[%s274_s6 + $0x10] sm:$0xff] }
  0x11   : > { %v304_v4 = vmul.f32 %v301_v1, %v301_v1  ;;  %v295_v16 = vld [vmem:[%s274_s6 + $0x18] sm:$0xff]  ;;  %v296_v17 = vld [vmem:[%s274_s6 + $0x20] sm:$0xff]  ;;  %v297_v18 = vld [vmem:[%s274_s6 + $0x28] sm:$0xff] }
  0x12   : > { %v313_v11 = vrot.slane %v301_v1, %v312_v10  ;;  %v298_v19 = vld [vmem:[%s274_s6 + $0x30] sm:$0xff]  ;;  %v299_v20 = vld [vmem:[%s274_s6 + $0x38] sm:$0xff] }
  0x13   : > { %v305_v5 = vsub.f32 %v303_v3, %v304_v4 }
  0x14   : > { %v315_v22 = vsub.f32 %v292_v12, %v313_v11  ;;  %v316_v24 = vsub.f32 %v293_v14, %v313_v11  ;;  %v317_v25 = vsub.f32 %v294_v15, %v313_v11  ;;  %v318_v26 = vsub.f32 %v295_v16, %v313_v11 }
  0x15   : > { %v306_v6 = vmax.f32 %v305_v5, 0.0  ;;  %v319_v27 = vsub.f32 %v296_v17, %v313_v11  ;;  %v320_v28 = vsub.f32 %v297_v18, %v313_v11  ;;  %v321_v29 = vsub.f32 %v298_v19, %v313_v11 }
  0x16   : > { %v322_v30 = vsub.f32 %v299_v20, %v313_v11 }
  0x17   : > { %v307_v8 = vadd.f32 1e-05, %v306_v6 }
  0x19   : > { %514 = vrsqrt.f32 %v307_v8 }
  0x26   : > { %v515_v21 = vpop.eup %514 }
  0x27   : > { %v324_v23 = vmul.f32 %v515_v21, %v323_v13 }
  0x29   : > { %v329_v31 = vrot.slane %v324_v23, %v312_v10 }
  0x2b   : > { %v331_v33 = vmul.f32 %v329_v31, %v315_v22  ;;  %v332_v34 = vmul.f32 %v329_v31, %v316_v24  ;;  %v333_v35 = vmul.f32 %v329_v31, %v317_v25  ;;  %v334_v36 = vmul.f32 %v329_v31, %v318_v26 }
  0x2c   : > { %v335_v37 = vmul.f32 %v329_v31, %v319_v27  ;;  %v336_v38 = vmul.f32 %v329_v31, %v320_v28  ;;  %v337_v39 = vmul.f32 %v329_v31, %v321_v29  ;;  %v338_v40 = vmul.f32 %v329_v31, %v322_v30 }
  0x2d   : > { %v346_v41 = vadd.f32 %v485_v32, %v331_v33  ;;  %v347_v42 = vadd.f32 %v485_v32, %v332_v34  ;;  %v348_v43 = vadd.f32 %v485_v32, %v333_v35  ;;  %v349_v44 = vadd.f32 %v485_v32, %v334_v36 }
  0x2e   : > { %v350_v45 = vadd.f32 %v485_v32, %v335_v37  ;;  %v351_v46 = vadd.f32 %v485_v32, %v336_v38  ;;  %v352_v47 = vadd.f32 %v485_v32, %v337_v39  ;;  %v353_v48 = vadd.f32 %v485_v32, %v338_v40 }
  0x2f   : > { %v354_v49 = vmax.f32 %v346_v41, 0.0  ;;  %v355_v50 = vmax.f32 %v347_v42, 0.0  ;;  %v356_v51 = vmax.f32 %v348_v43, 0.0  ;;  %v357_v52 = vmax.f32 %v349_v44, 0.0 }
  0x30   : > { %v358_v53 = vmax.f32 %v350_v45, 0.0  ;;  %v359_v54 = vmax.f32 %v351_v46, 0.0  ;;  %v360_v55 = vmax.f32 %v352_v47, 0.0  ;;  %v361_v56 = vmax.f32 %v353_v48, 0.0 }
  0x31   : > { %363 = vst.msk [vmem:[%s290_s13] sm:$0xff] %vm362_vm0, %v354_v49  ;;  %364 = vst.msk [vmem:[%s290_s13 + $0x8] sm:$0xff] %vm362_vm0, %v355_v50 }
  0x32   : > { %365 = vst.msk [vmem:[%s290_s13 + $0x10] sm:$0xff] %vm362_vm0, %v356_v51  ;;  %366 = vst.msk [vmem:[%s290_s13 + $0x18] sm:$0xff] %vm362_vm0, %v357_v52 }
  0x33   : > { %367 = vst.msk [vmem:[%s290_s13 + $0x20] sm:$0xff] %vm362_vm0, %v358_v53  ;;  %368 = vst.msk [vmem:[%s290_s13 + $0x28] sm:$0xff] %vm362_vm0, %v359_v54 }
  0x34   : > { %369 = vst.msk [vmem:[%s290_s13 + $0x30] sm:$0xff] %vm362_vm0, %v360_v55  ;;  %370 = vst.msk [vmem:[%s290_s13 + $0x38] sm:$0xff] %vm362_vm0, %v361_v56 }
  0x35 PF: > { %s15_s20 = sadd.s32 1, %s538_s20   ;;  %s638_s18 = smov %s534_s19 }
  0x36   : > { %p12_p5 = scmp.ge.s32.totalorder %s15_s20, 4   ;;  %s639_s19 = smov %s641_s21 }
  0x38   :  { %14 = sbr.rel (!%p12_p5) target bundleno = 2 (0x2), region = 76 }

// kernel: transformer_forward.48
= control target key start
LH: loop header
LB: loop body
LE: loop exit
PB: predicated region body
PF: predicated region fallthrough
CT: control target
= control target key end

     0   :  { %s759_s12 = smov 0   ;;  %s761_s13 = smov 0   ;;  %s858_s0 = inlined_call_operand.vmem [shape: bf16[32,640], index: 0, kind: input, shape index: {}]   ;;  %s859_s1 = inlined_call_operand.vmem [shape: bf16[640,128], index: 1, kind: input, shape index: {}]   ;;  %s860_s2 = inlined_call_operand.vmem [shape: f32[1,128], index: 2, kind: input, shape index: {}]   ;;  %s861_s3 = inlined_call_operand.vmem [shape: f32[32,128], index: 3, kind: output, shape index: {}]  }
   0x1   :  { %s763_s14 = smov 0   ;;  %s765_s15 = smov 0  }
   0x2   :  { %s767_s16 = smov 0  }
   0x3 LB: > { %s25_s17 = sadd.s32 1, %s732_s15  ;;  %p48_p1 = scmp.ne.s32.totalorder %s724_s13, %s720_s12  ;;  %s736_s16 = sphi %s767_s16, %s13_s16   ;;  %s732_s15 = sphi %s765_s15, %s865_s15   ;;  %s728_s14 = sphi %s763_s14, %s864_s14   ;;  %s724_s13 = sphi %s761_s13, %s863_s13   ;;  %s720_s12 = sphi %s759_s12, %s862_s12  }
   0x4   : > { %p26_p0 = scmp.ge.s32.totalorder %s25_s17, 5  ;;  %p49_p2 = scmp.eq.s32.totalorder %s736_s16, 0 }
   0x5   : > { %s41_s19 = sadd.s32 1, %s724_s13  ;;  %p593_p5 = scmp.ge.s32.totalorder %s736_s16, 5 }
   0x6   : > { %s867_s17 = smov (%p26_p0, %s25_s17), 0  ;;  %p50_p3 = por %p49_p2, %p48_p1 }
   0x7   : > { %s37_s18 = ssub.s32 %s732_s15, %s867_s17  ;;  %162 = sbr.rel (%p593_p5) target bundleno = 18 (0x12), region = 20 }
   0x8   : > { %p39_p4 = scmp.eq.s32.totalorder %s37_s18, 0 }
   0xa   : > { %s794_s20 = scalar_select %p39_p4, %s724_s13, %s41_s19  }
   0xc   : > { %165 = sbr.rel (!%p50_p3) target bundleno = 18 (0x12), region = 24  ;;  %s167_s21 = sand.u32 (%p50_p3), 1, %s724_s13  }
   0xd   : > { %s595_s22 = sshll.u32 (%p50_p3), %s732_s15, 2  ;;  %s594_s23 = sshll.u32 (%p50_p3), %s167_s21, 4 }
   0xe   : > { %s174_s26 = scalar_lea.vmem (%p50_p3), %s858_s0, %s595_s22  ;;  %s169_s27 = scalar_lea.vmem (%p50_p3), [#allocation3], %s594_s23 }
   0xf   : > { %v191_v0 = vld [vmem:[%s174_s26] sm:$0xf] (%p50_p3)  ;;  %v193_v1 = vld [vmem:[%s174_s26 + $0x14] sm:$0xf] (%p50_p3)  ;;  %v195_v2 = vld [vmem:[%s174_s26 + $0x28] sm:$0xf] (%p50_p3) }
  0x10   : > { %192 = vst [vmem:[%s169_s27] sm:$0xf] (%p50_p3), %v191_v0  ;;  %194 = vst [vmem:[%s169_s27 + $0x4] sm:$0xf] (%p50_p3), %v193_v1  ;;  %v197_v3 = vld [vmem:[%s174_s26 + $0x3c] sm:$0xf] (%p50_p3) }
  0x11   : > { %196 = vst [vmem:[%s169_s27 + $0x8] sm:$0xf] %v195_v2  ;;  %198 = vst [vmem:[%s169_s27 + $0xc] sm:$0xf] %v197_v3 }
  0x12 PF: > { %p596_p6 = scmp.ge.s32.totalorder %s736_s16, 1  ;;  %p241_p7 = scmp.lt.s32.totalorder %s736_s16, 6 }
  0x14   : > { %p242_p8 = pnand %p596_p6, %p241_p7 }
  0x15   : > { %s248_s28 = sand.u32 (!%p242_p8), 1, %s720_s12   ;;  %s598_s29 = sshll.u32 (!%p242_p8), %s728_s14, 4 }
  0x16   : > { %245 = sbr.rel (%p242_p8) target bundleno = 280 (0x118), region = 69  ;;  %s806_s30 = sshll.u32 (!%p242_p8), %s248_s28, 4 }
  0x17   : > { %p287_p9 = scmp.lt.s32.totalorder (!%p242_p8), %s598_s29, 79  ;;  %s250_s8 = scalar_lea.vmem (!%p242_p8), [#allocation3], %s806_s30 }
  0x18   : > { %p600_p10 = scmp.ne.s32.totalorder (!%p242_p8), %s728_s14, 0 }
  0x1b   : > { %s869_s29 = smov (!%p287_p9, %s598_s29), 79  ;;  %311 = sbr.rel (%p600_p10) target bundleno = 35 (0x23), region = 77 }
  0x1c   : > { %s599_s4 = sshll.u32 %s869_s29, 2 }
  0x1d   : > { %s811_s7 = scalar_lea.vmem %s859_s1, %s599_s4 }
  0x20   : > { %v738_v4 = vmov 0.0  }
  0x21   : > { %312 = vst [vmem:[#allocation2 + $0x10] sm:$0xff] %v738_v4  ;;  %313 = vst [vmem:[#allocation2] sm:$0xff] %v738_v4 }
  0x22   : > { %314 = vst [vmem:[#allocation2 + $0x18] sm:$0xff] %v738_v4  ;;  %315 = vst [vmem:[#allocation2 + $0x8] sm:$0xff] %v738_v4 }
  0x23 PF: > { %v688_v5 = vld [vmem:[%s811_s7 + $0x38] sm:$0xff]   ;;  %v689_v6 = vld [vmem:[%s811_s7 + $0x30] sm:$0xff]   ;;  %v690_v7 = vld [vmem:[%s811_s7 + $0x28] sm:$0xff]   ;;  %p611_p11 = scmp.ne.s32.totalorder %s728_s14, 4 }
  0x24   : > { %627 = vmatprep.subr.bf16.mxu0 %v688_v5  ;;  %v691_v8 = vld [vmem:[%s811_s7 + $0x20] sm:$0xff]   ;;  %v692_v10 = vld [vmem:[%s811_s7 + $0x18] sm:$0xff]   ;;  %v693_v11 = vld [vmem:[%s811_s7 + $0x10] sm:$0xff]  }
  0x25   : > { %628 = vmatpush3.bf16.msra.mxu0 %v688_v5  ;;  %v696_v9 = vld [vmem:[%s250_s8] sm:$0xff]   ;;  %v694_v12 = vld [vmem:[%s811_s7 + $0x8] sm:$0xff]  }
  0x26   : > { %629 = vmatprep.subr.bf16.mxu0 %v689_v6  ;;  %643 = vmatprep.mubr.bf16.mxu0 %v696_v9  ;;  %v695_v13 = vld [vmem:[%s811_s7] sm:$0xff]   ;;  %v697_v14 = vld [vmem:[%s250_s8 + $0x8] sm:$0xff]  }
  0x28   : > { %v316_v17 = vld [vmem:[#allocation2 + $0x10] sm:$0xff]  ;;  %v317_v23 = vld [vmem:[#allocation2] sm:$0xff] }
  0x29   : > { %630 = vmatpush3.bf16.msra.mxu0 %v689_v6  ;;  %v318_v15 = vld [vmem:[#allocation2 + $0x18] sm:$0xff]  ;;  %v319_v20 = vld [vmem:[#allocation2 + $0x8] sm:$0xff] }
  0x2a   : > { %631 = vmatprep.subr.bf16.mxu0 %v690_v7 }
  0x2d   : > { %632 = vmatpush3.bf16.msra.mxu0 %v690_v7 }
  0x2e   : > { %633 = vmatprep.subr.bf16.mxu0 %v691_v8 }
  0x31   : > { %634 = vmatpush3.bf16.msra.mxu0 %v691_v8 }
  0x32   : > { %635 = vmatprep.subr.bf16.mxu0 %v692_v10 }
  0x35   : > { %636 = vmatpush3.bf16.msra.mxu0 %v692_v10 }
  0x36   : > { %637 = vmatprep.subr.bf16.mxu0 %v693_v11 }
  0x39   : > { %638 = vmatpush3.bf16.msra.mxu0 %v693_v11 }
  0x3a   : > { %639 = vmatprep.subr.bf16.mxu0 %v694_v12 }
  0x3d   : > { %640 = vmatpush3.bf16.msra.mxu0 %v694_v12 }
  0x3e   : > { %641 = vmatprep.subr.bf16.mxu0 %v695_v13 }
  0x41   : > { %642 = vmatpush3.bf16.msra.mxu0 %v695_v13 }
  0x44   : > { %644 = vmatmul.mubr.bf16.vlgmr.msra.gmra.mxu0 %v697_v14 }
 0x104   : > { %v645_v16 = vpop.f32.mrf.mxu0 }
 0x105   : > { %v451_v18 = vadd.f32 %v645_v16, %v318_v15 }
 0x106   : > { %v434_v19 = vpop.f32.mrf.mxu0 }
 0x107   : > { %455 = vst [vmem:[#allocation2 + $0x18] sm:$0xff] %v451_v18  ;;  %v449_v21 = vadd.f32 %v434_v19, %v316_v17 }
 0x108   : > { %v646_v22 = vpop.f32.mrf.mxu0 }
 0x109   : > { %453 = vst [vmem:[#allocation2 + $0x10] sm:$0xff] %v449_v21  ;;  %v452_v24 = vadd.f32 %v646_v22, %v319_v20  ;;  %460 = sbr.rel (%p611_p11) target bundleno = 280 (0x118), region = 81 }
 0x10a   : > { %v437_v25 = vpop.f32.mrf.mxu0 }
 0x10b   : > { %456 = vst [vmem:[#allocation2 + $0x8] sm:$0xff] %v452_v24  ;;  %v450_v26 = vadd.f32 %v437_v25, %v317_v23 }
 0x10d   : > { %454 = vst [vmem:[#allocation2] sm:$0xff] %v450_v26 }
 0x10e   : > { %v612_v28 = vld [vmem:[%s860_s2] ss:$0 sm:$0xff]  ;;  %v463_v32 = vld [vmem:[#allocation2 + $0x18] sm:$0xff] }
 0x10f   : > { %v474_v34 = vadd.f32 %v612_v28, %v463_v32 }
 0x110   : > { %v461_v27 = vld [vmem:[#allocation2 + $0x10] sm:$0xff] }
 0x111   : > { %v472_v30 = vadd.f32 %v612_v28, %v461_v27  ;;  %478 = vst [vmem:[%s861_s3 + $0x10] sm:$0xff] %v474_v34 }
 0x112   : > { %v464_v33 = vld [vmem:[#allocation2 + $0x8] sm:$0xff] }
 0x113   : > { %v475_v35 = vadd.f32 %v612_v28, %v464_v33  ;;  %476 = vst [vmem:[%s861_s3] sm:$0xff] %v472_v30 }
 0x114   : > { %v462_v29 = vld [vmem:[#allocation2] sm:$0xff] }
 0x115   : > { %v473_v31 = vadd.f32 %v612_v28, %v462_v29  ;;  %479 = vst [vmem:[%s861_s3 + $0x18] sm:$0xff] %v475_v35 }
 0x117   : > { %477 = vst [vmem:[%s861_s3 + $0x8] sm:$0xff] %v473_v31 }
 0x118 PF: > { %s13_s16 = sadd.s32 1, %s736_s16   ;;  %s862_s12 = smov %s724_s13 }
 0x119   : > { %p10_p12 = scmp.ge.s32.totalorder %s13_s16, 7   ;;  %s863_s13 = smov %s794_s20 }
 0x11a   : > { %s864_s14 = smov %s732_s15  ;;  %s865_s15 = smov %s867_s17 }
 0x11b   :  { %12 = sbr.rel (!%p10_p12) target bundleno = 3 (0x3), region = 122 }

// kernel: transformer_forward.49
= control target key start
LH: loop header
LB: loop body
LE: loop exit
PB: predicated region body
PF: predicated region fallthrough
CT: control target
= control target key end

     0   :  { %s368_s9 = smov 0   ;;  %s370_s10 = smov 0   ;;  %s404_s0 = inlined_call_operand.vmem [shape: f32[2,16,128], index: 0, kind: input, shape index: {}]   ;;  %s405_s1 = inlined_call_operand.vmem [shape: f32[2,1,128], index: 1, kind: output, shape index: {0}]   ;;  %s406_s2 = inlined_call_operand.vmem [shape: f32[2,1,128], index: 2, kind: output, shape index: {1}]  }
   0x1   :  { %s372_s11 = smov 0  }
   0x2 LB: > { %s25_s12 = sadd.s32 1, %s346_s10  ;;  %p297_p0 = scmp.ge.s32.totalorder %s350_s11, 1  ;;  %s350_s11 = sphi %s372_s11, %s13_s11   ;;  %s346_s10 = sphi %s370_s10, %s408_s10   ;;  %s342_s9 = sphi %s368_s9, %s407_s9  }
   0x3   : > { %p27_p1 = scmp.ge.s32.totalorder %s25_s12, 2  ;;  %p134_p2 = scmp.lt.s32.totalorder %s350_s11, 3 }
   0x5   : > { %s410_s12 = smov (%p27_p1, %s25_s12), 0  ;;  %p135_p3 = pnand %p297_p0, %p134_p2 }
   0x6   : > { %p162_p4 = scmp.lt.s32.totalorder (!%p135_p3), %s342_s9, 1 }
   0x7   : > { %138 = sbr.rel (%p135_p3) target bundleno = 35 (0x23), region = 24 }
   0xc   : > { %s412_s9 = smov (!%p162_p4, %s342_s9), 1  ;;  %v352_v0 = vmov 0.0  }
   0xd   : > { %s302_s13 = sshll.u32 %s412_s9, 4  ;;  %s173_s16 = scalar_lea.vmem %s405_s1, %s412_s9 }
   0xe   : > { %s169_s19 = scalar_lea.vmem %s404_s0, %s302_s13  ;;  %181 = vst [vmem:[%s173_s16] sm:$0x1] %v352_v0  ;;  %s176_s22 = scalar_lea.vmem %s406_s2, %s412_s9 }
   0xf   : > { %v183_v1 = vld [vmem:[%s169_s19] sm:$0xff]  ;;  %v184_v2 = vld [vmem:[%s169_s19 + $0x8] sm:$0xff]  ;;  %182 = vst [vmem:[%s176_s22] sm:$0x1] %v352_v0 }
  0x10   : > { %v196_v3 = vmul.f32 %v183_v1, %v183_v1  ;;  %v197_v4 = vmul.f32 %v184_v2, %v184_v2  ;;  %v186_v5 = vadd.f32 %v184_v2, %v183_v1 }
  0x12   : > { %v187_v6 = vrot.slane %v186_v5, 4  ;;  %v198_v7 = vadd.f32 %v197_v4, %v196_v3 }
  0x14   : > { %v188_v8 = vadd.f32 %v187_v6, %v186_v5  ;;  %v199_v9 = vrot.slane %v198_v7, 4 }
  0x15   : > { %v185_v16 = vld [vmem:[%s173_s16] sm:$0x1] }
  0x16   : > { %v189_v10 = vrot.slane %v188_v8, 2  ;;  %v200_v11 = vadd.f32 %v199_v9, %v198_v7  ;;  %v195_v19 = vld [vmem:[%s176_s22] sm:$0x1] }
  0x18   : > { %v190_v12 = vadd.f32 %v189_v10, %v188_v8  ;;  %v201_v13 = vrot.slane %v200_v11, 2 }
  0x1a   : > { %v191_v14 = vrot.slane %v190_v12, 1  ;;  %v202_v15 = vadd.f32 %v201_v13, %v200_v11 }
  0x1c   : > { %v192_v17 = vadd.f32 %v191_v14, %v190_v12  ;;  %v203_v18 = vrot.slane %v202_v15, 1 }
  0x1e   : > { %v193_v20 = vadd.f32 %v192_v17, %v185_v16  ;;  %v204_v21 = vadd.f32 %v203_v18, %v202_v15 }
  0x20   : > { %194 = vst [vmem:[%s173_s16] sm:$0x1] %v193_v20  ;;  %v205_v22 = vadd.f32 %v204_v21, %v195_v19 }
  0x22   : > { %206 = vst [vmem:[%s176_s22] sm:$0x1] %v205_v22 }
  0x23 PF: > { %s13_s11 = sadd.s32 1, %s350_s11   ;;  %s407_s9 = smov %s346_s10 }
  0x24   : > { %p10_p5 = scmp.ge.s32.totalorder %s13_s11, 4   ;;  %s408_s10 = smov %s410_s12 }
  0x26   :  { %12 = sbr.rel (!%p10_p5) target bundleno = 2 (0x2), region = 70 }

// kernel: transformer_forward.50
= control target key start
LH: loop header
LB: loop body
LE: loop exit
PB: predicated region body
PF: predicated region fallthrough
CT: control target
= control target key end

     0   :  { %s533_s18 = smov 0   ;;  %s535_s19 = smov 0   ;;  %s583_s0 = inlined_call_operand.vmem [shape: f32[2,16,128], index: 0, kind: input, shape index: {}]   ;;  %s584_s1 = inlined_call_operand.vmem [shape: f32[2,1,128], index: 1, kind: input, shape index: {}]   ;;  %s585_s2 = inlined_call_operand.vmem [shape: f32[2,1,128], index: 2, kind: input, shape index: {}]   ;;  %s586_s3 = inlined_call_operand.vmem [shape: f32[1,128], index: 3, kind: input, shape index: {}]   ;;  %s587_s4 = inlined_call_operand.vmem [shape: f32[1,128], index: 4, kind: input, shape index: {}]   ;;  %s588_s5 = inlined_call_operand.vmem [shape: f32[2,16,128], index: 5, kind: output, shape index: {}]  }
   0x1   :  { %s537_s20 = smov 0  }
   0x2 LB: > { %s27_s21 = sadd.s32 1, %s497_s19  ;;  %p443_p0 = scmp.ge.s32.totalorder %s501_s20, 1  ;;  %s501_s20 = sphi %s537_s20, %s15_s20   ;;  %s497_s19 = sphi %s535_s19, %s590_s19   ;;  %s493_s18 = sphi %s533_s18, %s589_s18  }
   0x3   : > { %p29_p1 = scmp.ge.s32.totalorder %s27_s21, 2  ;;  %p224_p2 = scmp.lt.s32.totalorder %s501_s20, 3 }
   0x5   : > { %s592_s21 = smov (%p29_p1, %s27_s21), 0  ;;  %p225_p3 = pnand %p443_p0, %p224_p2 }
   0x6   : > { %p267_p4 = scmp.lt.s32.totalorder (!%p225_p3), %s493_s18, 1 }
   0x7   : > { %228 = sbr.rel (%p225_p3) target bundleno = 50 (0x32), region = 40 }
   0xc   : > { %s594_s18 = smov (!%p267_p4, %s493_s18), 1  ;;  %v304_v8 = vlaneseq  ;;  %v311_v14 = vld [vmem:[%s586_s3] sm:$0x1] }
   0xd   : > { %s278_s24 = scalar_lea.vmem %s584_s1, %s594_s18  ;;  %s281_s27 = scalar_lea.vmem %s585_s2, %s594_s18  ;;  %v448_v20 = vld [vmem:[%s587_s4] ss:$0 sm:$0xff] }
   0xe   : > { %v294_v0 = vld [vmem:[%s278_s24] sm:$0x1]  ;;  %v305_v9 = vshrl.u32 %v304_v8, 7  ;;  %s451_s28 = sshll.u32 %s594_s18, 4 }
   0xf   : > { %v295_v1 = vmul.f32 0.0625, %v294_v0  ;;  %v296_v2 = vld [vmem:[%s281_s27] sm:$0x1]  ;;  %s274_s6 = scalar_lea.vmem %s583_s0, %s451_s28  ;;  %s290_s13 = scalar_lea.vmem %s588_s5, %s451_s28 }
  0x10   : > { %v297_v3 = vmul.f32 0.0625, %v296_v2  ;;  %v306_v10 = vsub.s32 0, %v305_v9  ;;  %v292_v12 = vld [vmem:[%s274_s6] sm:$0xff]  ;;  %v293_v13 = vld [vmem:[%s274_s6 + $0x8] sm:$0xff] }
  0x11   : > { %v298_v4 = vmul.f32 %v295_v1, %v295_v1 }
  0x12   : > { %v307_v11 = vrot.slane %v295_v1, %v306_v10 }
  0x13   : > { %v299_v5 = vsub.f32 %v297_v3, %v298_v4 }
  0x14   : > { %v309_v16 = vsub.f32 %v292_v12, %v307_v11  ;;  %v310_v17 = vsub.f32 %v293_v13, %v307_v11 }
  0x15   : > { %v300_v6 = vmax.f32 %v299_v5, 0.0 }
  0x17   : > { %v301_v7 = vadd.f32 1e-05, %v300_v6 }
  0x19   : > { %477 = vrsqrt.f32 %v301_v7 }
  0x26   : > { %v478_v15 = vpop.eup %477 }
  0x27   : > { %v312_v18 = vmul.f32 %v478_v15, %v311_v14 }
  0x29   : > { %v317_v19 = vrot.slane %v312_v18, %v306_v10 }
  0x2b   : > { %v319_v21 = vmul.f32 %v317_v19, %v309_v16  ;;  %v320_v22 = vmul.f32 %v317_v19, %v310_v17 }
  0x2d   : > { %v328_v23 = vadd.f32 %v448_v20, %v319_v21  ;;  %v329_v24 = vadd.f32 %v448_v20, %v320_v22 }
  0x2f   : > { %v330_v25 = vmax.f32 %v328_v23, 0.0  ;;  %v331_v26 = vmax.f32 %v329_v24, 0.0 }
  0x31   : > { %332 = vst [vmem:[%s290_s13] sm:$0xff] %v330_v25  ;;  %333 = vst [vmem:[%s290_s13 + $0x8] sm:$0xff] %v331_v26 }
  0x32 PF: > { %s15_s20 = sadd.s32 1, %s501_s20   ;;  %s589_s18 = smov %s497_s19 }
  0x33   : > { %p12_p5 = scmp.ge.s32.totalorder %s15_s20, 4   ;;  %s590_s19 = smov %s592_s21 }
  0x35   :  { %14 = sbr.rel (!%p12_p5) target bundleno = 2 (0x2), region = 76 }

// kernel: transformer_forward.51
= control target key start
LH: loop header
LB: loop body
LE: loop exit
PB: predicated region body
PF: predicated region fallthrough
CT: control target
= control target key end

     0   :  { %s759_s12 = smov 0   ;;  %s761_s13 = smov 0   ;;  %s858_s0 = inlined_call_operand.vmem [shape: bf16[32,1152], index: 0, kind: input, shape index: {}]   ;;  %s859_s1 = inlined_call_operand.vmem [shape: bf16[1152,128], index: 1, kind: input, shape index: {}]   ;;  %s860_s2 = inlined_call_operand.vmem [shape: f32[1,128], index: 2, kind: input, shape index: {}]   ;;  %s861_s3 = inlined_call_operand.vmem [shape: f32[32,128], index: 3, kind: output, shape index: {}]  }
   0x1   :  { %s763_s14 = smov 0   ;;  %s765_s15 = smov 0  }
   0x2   :  { %s767_s16 = smov 0  }
   0x3 LB: > { %s25_s17 = sadd.s32 1, %s732_s15  ;;  %p48_p1 = scmp.ne.s32.totalorder %s724_s13, %s720_s12  ;;  %s736_s16 = sphi %s767_s16, %s13_s16   ;;  %s732_s15 = sphi %s765_s15, %s865_s15   ;;  %s728_s14 = sphi %s763_s14, %s864_s14   ;;  %s724_s13 = sphi %s761_s13, %s863_s13   ;;  %s720_s12 = sphi %s759_s12, %s862_s12  }
   0x4   : > { %p26_p0 = scmp.ge.s32.totalorder %s25_s17, 9  ;;  %p49_p2 = scmp.eq.s32.totalorder %s736_s16, 0 }
   0x5   : > { %s41_s19 = sadd.s32 1, %s724_s13  ;;  %p593_p5 = scmp.ge.s32.totalorder %s736_s16, 9 }
   0x6   : > { %s867_s17 = smov (%p26_p0, %s25_s17), 0  ;;  %p50_p3 = por %p49_p2, %p48_p1 }
   0x7   : > { %s37_s18 = ssub.s32 %s732_s15, %s867_s17  ;;  %162 = sbr.rel (%p593_p5) target bundleno = 18 (0x12), region = 20 }
   0x8   : > { %p39_p4 = scmp.eq.s32.totalorder %s37_s18, 0 }
   0xa   : > { %s794_s20 = scalar_select %p39_p4, %s724_s13, %s41_s19  }
   0xc   : > { %165 = sbr.rel (!%p50_p3) target bundleno = 18 (0x12), region = 24  ;;  %s167_s21 = sand.u32 (%p50_p3), 1, %s724_s13  }
   0xd   : > { %s595_s22 = sshll.u32 (%p50_p3), %s732_s15, 2  ;;  %s594_s23 = sshll.u32 (%p50_p3), %s167_s21, 4 }
   0xe   : > { %s174_s26 = scalar_lea.vmem (%p50_p3), %s858_s0, %s595_s22  ;;  %s169_s27 = scalar_lea.vmem (%p50_p3), [#allocation3], %s594_s23 }
   0xf   : > { %v191_v0 = vld [vmem:[%s174_s26] sm:$0xf] (%p50_p3)  ;;  %v193_v1 = vld [vmem:[%s174_s26 + $0x24] sm:$0xf] (%p50_p3)  ;;  %v195_v2 = vld [vmem:[%s174_s26 + $0x48] sm:$0xf] (%p50_p3) }
  0x10   : > { %192 = vst [vmem:[%s169_s27] sm:$0xf] (%p50_p3), %v191_v0  ;;  %194 = vst [vmem:[%s169_s27 + $0x4] sm:$0xf] (%p50_p3), %v193_v1  ;;  %v197_v3 = vld [vmem:[%s174_s26 + $0x6c] sm:$0xf] (%p50_p3) }
  0x11   : > { %196 = vst [vmem:[%s169_s27 + $0x8] sm:$0xf] %v195_v2  ;;  %198 = vst [vmem:[%s169_s27 + $0xc] sm:$0xf] %v197_v3 }
  0x12 PF: > { %p596_p6 = scmp.ge.s32.totalorder %s736_s16, 1  ;;  %p241_p7 = scmp.lt.s32.totalorder %s736_s16, 10 }
  0x14   : > { %p242_p8 = pnand %p596_p6, %p241_p7 }
  0x15   : > { %s248_s28 = sand.u32 (!%p242_p8), 1, %s720_s12   ;;  %s598_s29 = sshll.u32 (!%p242_p8), %s728_s14, 4 }
  0x16   : > { %245 = sbr.rel (%p242_p8) target bundleno = 280 (0x118), region = 69  ;;  %s806_s30 = sshll.u32 (!%p242_p8), %s248_s28, 4 }
  0x17   : > { %p287_p9 = scmp.lt.s32.totalorder (!%p242_p8), %s598_s29, 143  ;;  %s250_s8 = scalar_lea.vmem (!%p242_p8), [#allocation3], %s806_s30 }
  0x18   : > { %p600_p10 = scmp.ne.s32.totalorder (!%p242_p8), %s728_s14, 0 }
  0x1b   : > { %s869_s29 = smov (!%p287_p9, %s598_s29), 143  ;;  %311 = sbr.rel (%p600_p10) target bundleno = 35 (0x23), region = 77 }
  0x1c   : > { %s599_s4 = sshll.u32 %s869_s29, 2 }
  0x1d   : > { %s811_s7 = scalar_lea.vmem %s859_s1, %s599_s4 }
  0x20   : > { %v738_v4 = vmov 0.0  }
  0x21   : > { %312 = vst [vmem:[#allocation2 + $0x10] sm:$0xff] %v738_v4  ;;  %313 = vst [vmem:[#allocation2] sm:$0xff] %v738_v4 }
  0x22   : > { %314 = vst [vmem:[#allocation2 + $0x18] sm:$0xff] %v738_v4  ;;  %315 = vst [vmem:[#allocation2 + $0x8] sm:$0xff] %v738_v4 }
  0x23 PF: > { %v688_v5 = vld [vmem:[%s811_s7 + $0x38] sm:$0xff]   ;;  %v689_v6 = vld [vmem:[%s811_s7 + $0x30] sm:$0xff]   ;;  %v690_v7 = vld [vmem:[%s811_s7 + $0x28] sm:$0xff]   ;;  %p611_p11 = scmp.ne.s32.totalorder %s728_s14, 8 }
  0x24   : > { %627 = vmatprep.subr.bf16.mxu0 %v688_v5  ;;  %v691_v8 = vld [vmem:[%s811_s7 + $0x20] sm:$0xff]   ;;  %v692_v10 = vld [vmem:[%s811_s7 + $0x18] sm:$0xff]   ;;  %v693_v11 = vld [vmem:[%s811_s7 + $0x10] sm:$0xff]  }
  0x25   : > { %628 = vmatpush3.bf16.msra.mxu0 %v688_v5  ;;  %v696_v9 = vld [vmem:[%s250_s8] sm:$0xff]   ;;  %v694_v12 = vld [vmem:[%s811_s7 + $0x8] sm:$0xff]  }
  0x26   : > { %629 = vmatprep.subr.bf16.mxu0 %v689_v6  ;;  %643 = vmatprep.mubr.bf16.mxu0 %v696_v9  ;;  %v695_v13 = vld [vmem:[%s811_s7] sm:$0xff]   ;;  %v697_v14 = vld [vmem:[%s250_s8 + $0x8] sm:$0xff]  }
  0x28   : > { %v316_v17 = vld [vmem:[#allocation2 + $0x10] sm:$0xff]  ;;  %v317_v23 = vld [vmem:[#allocation2] sm:$0xff] }
  0x29   : > { %630 = vmatpush3.bf16.msra.mxu0 %v689_v6  ;;  %v318_v15 = vld [vmem:[#allocation2 + $0x18] sm:$0xff]  ;;  %v319_v20 = vld [vmem:[#allocation2 + $0x8] sm:$0xff] }
  0x2a   : > { %631 = vmatprep.subr.bf16.mxu0 %v690_v7 }
  0x2d   : > { %632 = vmatpush3.bf16.msra.mxu0 %v690_v7 }
  0x2e   : > { %633 = vmatprep.subr.bf16.mxu0 %v691_v8 }
  0x31   : > { %634 = vmatpush3.bf16.msra.mxu0 %v691_v8 }
  0x32   : > { %635 = vmatprep.subr.bf16.mxu0 %v692_v10 }
  0x35   : > { %636 = vmatpush3.bf16.msra.mxu0 %v692_v10 }
  0x36   : > { %637 = vmatprep.subr.bf16.mxu0 %v693_v11 }
  0x39   : > { %638 = vmatpush3.bf16.msra.mxu0 %v693_v11 }
  0x3a   : > { %639 = vmatprep.subr.bf16.mxu0 %v694_v12 }
  0x3d   : > { %640 = vmatpush3.bf16.msra.mxu0 %v694_v12 }
  0x3e   : > { %641 = vmatprep.subr.bf16.mxu0 %v695_v13 }
  0x41   : > { %642 = vmatpush3.bf16.msra.mxu0 %v695_v13 }
  0x44   : > { %644 = vmatmul.mubr.bf16.vlgmr.msra.gmra.mxu0 %v697_v14 }
 0x104   : > { %v645_v16 = vpop.f32.mrf.mxu0 }
 0x105   : > { %v451_v18 = vadd.f32 %v645_v16, %v318_v15 }
 0x106   : > { %v434_v19 = vpop.f32.mrf.mxu0 }
 0x107   : > { %455 = vst [vmem:[#allocation2 + $0x18] sm:$0xff] %v451_v18  ;;  %v449_v21 = vadd.f32 %v434_v19, %v316_v17 }
 0x108   : > { %v646_v22 = vpop.f32.mrf.mxu0 }
 0x109   : > { %453 = vst [vmem:[#allocation2 + $0x10] sm:$0xff] %v449_v21  ;;  %v452_v24 = vadd.f32 %v646_v22, %v319_v20  ;;  %460 = sbr.rel (%p611_p11) target bundleno = 280 (0x118), region = 81 }
 0x10a   : > { %v437_v25 = vpop.f32.mrf.mxu0 }
 0x10b   : > { %456 = vst [vmem:[#allocation2 + $0x8] sm:$0xff] %v452_v24  ;;  %v450_v26 = vadd.f32 %v437_v25, %v317_v23 }
 0x10d   : > { %454 = vst [vmem:[#allocation2] sm:$0xff] %v450_v26 }
 0x10e   : > { %v612_v28 = vld [vmem:[%s860_s2] ss:$0 sm:$0xff]  ;;  %v463_v32 = vld [vmem:[#allocation2 + $0x18] sm:$0xff] }
 0x10f   : > { %v474_v34 = vadd.f32 %v612_v28, %v463_v32 }
 0x110   : > { %v461_v27 = vld [vmem:[#allocation2 + $0x10] sm:$0xff] }
 0x111   : > { %v472_v30 = vadd.f32 %v612_v28, %v461_v27  ;;  %478 = vst [vmem:[%s861_s3 + $0x10] sm:$0xff] %v474_v34 }
 0x112   : > { %v464_v33 = vld [vmem:[#allocation2 + $0x8] sm:$0xff] }
 0x113   : > { %v475_v35 = vadd.f32 %v612_v28, %v464_v33  ;;  %476 = vst [vmem:[%s861_s3] sm:$0xff] %v472_v30 }
 0x114   : > { %v462_v29 = vld [vmem:[#allocation2] sm:$0xff] }
 0x115   : > { %v473_v31 = vadd.f32 %v612_v28, %v462_v29  ;;  %479 = vst [vmem:[%s861_s3 + $0x18] sm:$0xff] %v475_v35 }
 0x117   : > { %477 = vst [vmem:[%s861_s3 + $0x8] sm:$0xff] %v473_v31 }
 0x118 PF: > { %s13_s16 = sadd.s32 1, %s736_s16   ;;  %s862_s12 = smov %s724_s13 }
 0x119   : > { %p10_p12 = scmp.ge.s32.totalorder %s13_s16, 11   ;;  %s863_s13 = smov %s794_s20 }
 0x11a   : > { %s864_s14 = smov %s732_s15  ;;  %s865_s15 = smov %s867_s17 }
 0x11b   :  { %12 = sbr.rel (!%p10_p12) target bundleno = 3 (0x3), region = 122 }

// kernel: transformer_forward.56
= control target key start
LH: loop header
LB: loop body
LE: loop exit
PB: predicated region body
PF: predicated region fallthrough
CT: control target
= control target key end

     0   :  { %s624_s21 = smov 0   ;;  %s626_s22 = smov 0   ;;  %s672_s0 = inlined_call_operand.vmem [shape: f32[2,16,128], index: 0, kind: input, shape index: {}]   ;;  %s673_s1 = inlined_call_operand.vmem [shape: f32[2,1,128], index: 1, kind: input, shape index: {}]   ;;  %s674_s2 = inlined_call_operand.vmem [shape: f32[2,1,128], index: 2, kind: input, shape index: {}]   ;;  %s675_s3 = inlined_call_operand.vmem [shape: f32[1,128], index: 3, kind: input, shape index: {}]   ;;  %s676_s4 = inlined_call_operand.vmem [shape: f32[1,128], index: 4, kind: input, shape index: {}]   ;;  %s677_s5 = inlined_call_operand.vmem [shape: f32[2,16,128], index: 5, kind: input, shape index: {}]   ;;  %s678_s6 = inlined_call_operand.vmem [shape: f32[2,16,128], index: 6, kind: output, shape index: {}]  }
   0x1   :  { %s628_s23 = smov 0  }
   0x2 LB: > { %s28_s24 = sadd.s32 1, %s583_s22  ;;  %p526_p0 = scmp.ge.s32.totalorder %s587_s23, 1  ;;  %s587_s23 = sphi %s628_s23, %s16_s23   ;;  %s583_s22 = sphi %s626_s22, %s680_s22   ;;  %s579_s21 = sphi %s624_s21, %s679_s21  }
   0x3   : > { %p30_p1 = scmp.ge.s32.totalorder %s28_s24, 2  ;;  %p266_p2 = scmp.lt.s32.totalorder %s587_s23, 3 }
   0x5   : > { %s682_s24 = smov (%p30_p1, %s28_s24), 0  ;;  %p267_p3 = pnand %p526_p0, %p266_p2 }
   0x6   : > { %p320_p4 = scmp.lt.s32.totalorder (!%p267_p3), %s579_s21, 1 }
   0x7   : > { %270 = sbr.rel (%p267_p3) target bundleno = 50 (0x32), region = 44 }
   0xc   : > { %s684_s21 = smov (!%p320_p4, %s579_s21), 1  ;;  %v367_v8 = vlaneseq  ;;  %v374_v14 = vld [vmem:[%s675_s3] sm:$0x1] }
   0xd   : > { %s331_s27 = scalar_lea.vmem %s673_s1, %s684_s21  ;;  %s334_s30 = scalar_lea.vmem %s674_s2, %s684_s21  ;;  %v533_v20 = vld [vmem:[%s676_s4] ss:$0 sm:$0xff] }
   0xe   : > { %v357_v0 = vld [vmem:[%s331_s27] sm:$0x1]  ;;  %v368_v9 = vshrl.u32 %v367_v8, 7  ;;  %s536_s7 = sshll.u32 %s684_s21, 4 }
   0xf   : > { %v358_v1 = vmul.f32 0.0625, %v357_v0  ;;  %v359_v2 = vld [vmem:[%s334_s30] sm:$0x1]  ;;  %s327_s10 = scalar_lea.vmem %s672_s0, %s536_s7  ;;  %s343_s15 = scalar_lea.vmem %s677_s5, %s536_s7 }
  0x10   : > { %v360_v3 = vmul.f32 0.0625, %v359_v2  ;;  %v369_v10 = vsub.s32 0, %v368_v9  ;;  %v355_v12 = vld [vmem:[%s327_s10] sm:$0xff]  ;;  %v356_v13 = vld [vmem:[%s327_s10 + $0x8] sm:$0xff]  ;;  %s353_s20 = scalar_lea.vmem %s678_s6, %s536_s7 }
  0x11   : > { %v361_v4 = vmul.f32 %v358_v1, %v358_v1  ;;  %v393_v23 = vld [vmem:[%s343_s15] sm:$0xff]  ;;  %v394_v24 = vld [vmem:[%s343_s15 + $0x8] sm:$0xff] }
  0x12   : > { %v370_v11 = vrot.slane %v358_v1, %v369_v10 }
  0x13   : > { %v362_v5 = vsub.f32 %v360_v3, %v361_v4 }
  0x14   : > { %v372_v16 = vsub.f32 %v355_v12, %v370_v11  ;;  %v373_v17 = vsub.f32 %v356_v13, %v370_v11 }
  0x15   : > { %v363_v6 = vmax.f32 %v362_v5, 0.0 }
  0x17   : > { %v364_v7 = vadd.f32 1e-05, %v363_v6 }
  0x19   : > { %563 = vrsqrt.f32 %v364_v7 }
  0x26   : > { %v564_v15 = vpop.eup %563 }
  0x27   : > { %v375_v18 = vmul.f32 %v564_v15, %v374_v14 }
  0x29   : > { %v380_v19 = vrot.slane %v375_v18, %v369_v10 }
  0x2b   : > { %v382_v21 = vmul.f32 %v380_v19, %v372_v16  ;;  %v383_v22 = vmul.f32 %v380_v19, %v373_v17 }
  0x2d   : > { %v391_v25 = vadd.f32 %v533_v20, %v382_v21  ;;  %v392_v26 = vadd.f32 %v533_v20, %v383_v22 }
  0x2f   : > { %v395_v27 = vadd.f32 %v393_v23, %v391_v25  ;;  %v396_v28 = vadd.f32 %v394_v24, %v392_v26 }
  0x31   : > { %397 = vst [vmem:[%s353_s20] sm:$0xff] %v395_v27  ;;  %398 = vst [vmem:[%s353_s20 + $0x8] sm:$0xff] %v396_v28 }
  0x32 PF: > { %s16_s23 = sadd.s32 1, %s587_s23   ;;  %s679_s21 = smov %s583_s22 }
  0x33   : > { %p13_p5 = scmp.ge.s32.totalorder %s16_s23, 4   ;;  %s680_s22 = smov %s682_s24 }
  0x35   :  { %15 = sbr.rel (!%p13_p5) target bundleno = 2 (0x2), region = 83 }

// kernel: transformer_forward.81
= control target key start
LH: loop header
LB: loop body
LE: loop exit
PB: predicated region body
PF: predicated region fallthrough
CT: control target
= control target key end

     0   :  { %s1049_s12 = smov 0   ;;  %s1051_s13 = smov 0   ;;  %s1205_s0 = inlined_call_operand.vmem [shape: bf16[128,1152], index: 0, kind: input, shape index: {}]   ;;  %s1206_s1 = inlined_call_operand.vmem [shape: bf16[1152,128], index: 1, kind: input, shape index: {}]   ;;  %s1207_s2 = inlined_call_operand.vmem [shape: f32[1,128], index: 2, kind: input, shape index: {}]   ;;  %s1208_s3 = inlined_call_operand.vmem [shape: f32[128,128], index: 3, kind: output, shape index: {}]  }
   0x1   :  { %s1053_s14 = smov 0   ;;  %s1055_s15 = smov 0  }
   0x2   :  { %s1057_s16 = smov 0  }
   0x3 LB: > { %s25_s17 = sadd.s32 1, %s1022_s15  ;;  %p48_p1 = scmp.ne.s32.totalorder %s1014_s13, %s1010_s12  ;;  %s1026_s16 = sphi %s1057_s16, %s13_s16   ;;  %s1022_s15 = sphi %s1055_s15, %s1212_s15   ;;  %s1018_s14 = sphi %s1053_s14, %s1211_s14   ;;  %s1014_s13 = sphi %s1051_s13, %s1210_s13   ;;  %s1010_s12 = sphi %s1049_s12, %s1209_s12  }
   0x4   : > { %p26_p0 = scmp.ge.s32.totalorder %s25_s17, 9  ;;  %p49_p2 = scmp.eq.s32.totalorder %s1026_s16, 0 }
   0x5   : > { %s41_s19 = sadd.s32 1, %s1014_s13  ;;  %p837_p5 = scmp.ge.s32.totalorder %s1026_s16, 9 }
   0x6   : > { %s1214_s17 = smov (%p26_p0, %s25_s17), 0  ;;  %p50_p3 = por %p49_p2, %p48_p1 }
   0x7   : > { %s37_s18 = ssub.s32 %s1022_s15, %s1214_s17  ;;  %162 = sbr.rel (%p837_p5) target bundleno = 26 (0x1a), region = 20 }
   0x8   : > { %p39_p4 = scmp.eq.s32.totalorder %s37_s18, 0 }
   0xa   : > { %s1084_s20 = scalar_select %p39_p4, %s1014_s13, %s41_s19  }
   0xc   : > { %165 = sbr.rel (!%p50_p3) target bundleno = 26 (0x1a), region = 24  ;;  %s167_s21 = sand.u32 (%p50_p3), 1, %s1014_s13  }
   0xd   : > { %s839_s22 = sshll.u32 (%p50_p3), %s1022_s15, 2  ;;  %s838_s23 = sshll.u32 (%p50_p3), %s167_s21, 6 }
   0xe   : > { %s1092_s26 = scalar_lea.vmem (%p50_p3), %s1205_s0, %s839_s22  ;;  %s169_s27 = scalar_lea.vmem (%p50_p3), [#allocation3], %s838_s23 }
   0xf   : > { %v191_v0 = vld [vmem:[%s1092_s26] sm:$0xf] (%p50_p3)  ;;  %v193_v1 = vld [vmem:[%s1092_s26 + $0x24] sm:$0xf] (%p50_p3)  ;;  %v195_v2 = vld [vmem:[%s1092_s26 + $0x48] sm:$0xf] (%p50_p3) }
  0x10   : > { %192 = vst [vmem:[%s169_s27] sm:$0xf] (%p50_p3), %v191_v0  ;;  %194 = vst [vmem:[%s169_s27 + $0x4] sm:$0xf] (%p50_p3), %v193_v1  ;;  %v197_v3 = vld [vmem:[%s1092_s26 + $0x6c] sm:$0xf] (%p50_p3) }
  0x11   : > { %v199_v4 = vld [vmem:[%s1092_s26 + $0x90] sm:$0xf]  ;;  %196 = vst [vmem:[%s169_s27 + $0x8] sm:$0xf] %v195_v2  ;;  %198 = vst [vmem:[%s169_s27 + $0xc] sm:$0xf] %v197_v3 }
  0x12   : > { %200 = vst [vmem:[%s169_s27 + $0x10] sm:$0xf] %v199_v4  ;;  %v201_v5 = vld [vmem:[%s1092_s26 + $0xb4] sm:$0xf]  ;;  %v203_v6 = vld [vmem:[%s1092_s26 + $0xd8] sm:$0xf] }
  0x13   : > { %v205_v7 = vld [vmem:[%s1092_s26 + $0xfc] sm:$0xf]  ;;  %202 = vst [vmem:[%s169_s27 + $0x14] sm:$0xf] %v201_v5  ;;  %204 = vst [vmem:[%s169_s27 + $0x18] sm:$0xf] %v203_v6 }
  0x14   : > { %206 = vst [vmem:[%s169_s27 + $0x1c] sm:$0xf] %v205_v7  ;;  %v207_v8 = vld [vmem:[%s1092_s26 + $0x120] sm:$0xf]  ;;  %v209_v9 = vld [vmem:[%s1092_s26 + $0x144] sm:$0xf] }
  0x15   : > { %v211_v10 = vld [vmem:[%s1092_s26 + $0x168] sm:$0xf]  ;;  %208 = vst [vmem:[%s169_s27 + $0x20] sm:$0xf] %v207_v8  ;;  %210 = vst [vmem:[%s169_s27 + $0x24] sm:$0xf] %v209_v9 }
  0x16   : > { %212 = vst [vmem:[%s169_s27 + $0x28] sm:$0xf] %v211_v10  ;;  %v213_v11 = vld [vmem:[%s1092_s26 + $0x18c] sm:$0xf]  ;;  %v215_v12 = vld [vmem:[%s1092_s26 + $0x1b0] sm:$0xf] }
  0x17   : > { %v217_v13 = vld [vmem:[%s1092_s26 + $0x1d4] sm:$0xf]  ;;  %214 = vst [vmem:[%s169_s27 + $0x2c] sm:$0xf] %v213_v11  ;;  %216 = vst [vmem:[%s169_s27 + $0x30] sm:$0xf] %v215_v12 }
  0x18   : > { %218 = vst [vmem:[%s169_s27 + $0x34] sm:$0xf] %v217_v13  ;;  %v219_v14 = vld [vmem:[%s1092_s26 + $0x1f8] sm:$0xf]  ;;  %v221_v15 = vld [vmem:[%s1092_s26 + $0x21c] sm:$0xf] }
  0x19   : > { %220 = vst [vmem:[%s169_s27 + $0x38] sm:$0xf] %v219_v14  ;;  %222 = vst [vmem:[%s169_s27 + $0x3c] sm:$0xf] %v221_v15 }
  0x1a PF: > { %p840_p6 = scmp.ge.s32.totalorder %s1026_s16, 1  ;;  %p289_p7 = scmp.lt.s32.totalorder %s1026_s16, 10 }
  0x1c   : > { %p290_p8 = pnand %p840_p6, %p289_p7 }
  0x1d   : > { %s296_s28 = sand.u32 (!%p290_p8), 1, %s1010_s12   ;;  %s842_s29 = sshll.u32 (!%p290_p8), %s1018_s14, 4 }
  0x1e   : > { %293 = sbr.rel (%p290_p8) target bundleno = 305 (0x131), region = 69  ;;  %s841_s30 = sshll.u32 (!%p290_p8), %s296_s28, 6 }
  0x1f   : > { %p335_p9 = scmp.lt.s32.totalorder (!%p290_p8), %s842_s29, 143  ;;  %s1119_s8 = scalar_lea.vmem (!%p290_p8), [#allocation3], %s841_s30 }
  0x20   : > { %p844_p10 = scmp.ne.s32.totalorder (!%p290_p8), %s1018_s14, 0 }
  0x23   : > { %s1216_s29 = smov (!%p335_p9, %s842_s29), 143  ;;  %359 = sbr.rel (%p844_p10) target bundleno = 49 (0x31), region = 77 }
  0x24   : > { %s843_s4 = sshll.u32 %s1216_s29, 2 }
  0x25   : > { %s1117_s7 = scalar_lea.vmem %s1206_s1, %s843_s4 }
  0x28   : > { %v1028_v16 = vmov 0.0  }
  0x29   : > { %360 = vst [vmem:[#allocation2 + $0x30] sm:$0xff] %v1028_v16  ;;  %361 = vst [vmem:[#allocation2] sm:$0xff] %v1028_v16 }
  0x2a   : > { %362 = vst [vmem:[#allocation2 + $0x58] sm:$0xff] %v1028_v16  ;;  %363 = vst [vmem:[#allocation2 + $0x18] sm:$0xff] %v1028_v16 }
  0x2b   : > { %364 = vst [vmem:[#allocation2 + $0x50] sm:$0xff] %v1028_v16  ;;  %365 = vst [vmem:[#allocation2 + $0x68] sm:$0xff] %v1028_v16 }
  0x2c   : > { %366 = vst [vmem:[#allocation2 + $0x8] sm:$0xff] %v1028_v16  ;;  %367 = vst [vmem:[#allocation2 + $0x48] sm:$0xff] %v1028_v16 }
  0x2d   : > { %368 = vst [vmem:[#allocation2 + $0x40] sm:$0xff] %v1028_v16  ;;  %369 = vst [vmem:[#allocation2 + $0x20] sm:$0xff] %v1028_v16 }
  0x2e   : > { %370 = vst [vmem:[#allocation2 + $0x10] sm:$0xff] %v1028_v16  ;;  %371 = vst [vmem:[#allocation2 + $0x38] sm:$0xff] %v1028_v16 }
  0x2f   : > { %372 = vst [vmem:[#allocation2 + $0x60] sm:$0xff] %v1028_v16  ;;  %373 = vst [vmem:[#allocation2 + $0x70] sm:$0xff] %v1028_v16 }
  0x30   : > { %374 = vst [vmem:[#allocation2 + $0x78] sm:$0xff] %v1028_v16  ;;  %375 = vst [vmem:[#allocation2 + $0x28] sm:$0xff] %v1028_v16 }
  0x31 PF: > { %v972_v17 = vld [vmem:[%s1117_s7 + $0x38] sm:$0xff]   ;;  %v973_v18 = vld [vmem:[%s1117_s7 + $0x30] sm:$0xff]   ;;  %v974_v19 = vld [vmem:[%s1117_s7 + $0x28] sm:$0xff]   ;;  %p861_p11 = scmp.ne.s32.totalorder %s1018_s14, 8 }
  0x32   : > { %883 = vmatprep.subr.bf16.mxu0 %v972_v17  ;;  %915 = vmatprep.subr.bf16.mxu1 %v972_v17  ;;  %v975_v20 = vld [vmem:[%s1117_s7 + $0x20] sm:$0xff]   ;;  %v976_v23 = vld [vmem:[%s1117_s7 + $0x18] sm:$0xff]   ;;  %v977_v24 = vld [vmem:[%s1117_s7 + $0x10] sm:$0xff]  }
  0x33   : > { %884 = vmatpush3.bf16.msra.mxu0 %v972_v17  ;;  %923 = vmatpush3.bf16.msra.mxu1 %v972_v17  ;;  %v980_v21 = vld [vmem:[%s1119_s8] sm:$0xff]   ;;  %v978_v25 = vld [vmem:[%s1117_s7 + $0x8] sm:$0xff]   ;;  %v984_v29 = vld [vmem:[%s1119_s8 + $0x10] sm:$0xff]  }
  0x34   : > { %885 = vmatprep.subr.bf16.mxu0 %v973_v18  ;;  %916 = vmatprep.subr.bf16.mxu1 %v973_v18  ;;  %v981_v22 = vld [vmem:[%s1119_s8 + $0x20] sm:$0xff]   ;;  %v982_v27 = vld [vmem:[%s1119_s8 + $0x8] sm:$0xff]   ;;  %v985_v30 = vld [vmem:[%s1119_s8 + $0x30] sm:$0xff]  }
  0x35   : > { %899 = vmatprep.mubr.bf16.mxu0 %v980_v21  ;;  %907 = vmatprep.mubr.bf16.mxu1 %v981_v22  ;;  %v979_v26 = vld [vmem:[%s1117_s7] sm:$0xff]   ;;  %v983_v28 = vld [vmem:[%s1119_s8 + $0x28] sm:$0xff]   ;;  %v986_v31 = vld [vmem:[%s1119_s8 + $0x18] sm:$0xff]  }
  0x36   : > { %v987_v32 = vld [vmem:[%s1119_s8 + $0x38] sm:$0xff]   ;;  %v386_v34 = vld [vmem:[#allocation2 + $0x10] sm:$0xff]  ;;  %v384_v38 = vld [vmem:[#allocation2 + $0x40] sm:$0xff] }
  0x37   : > { %886 = vmatpush3.bf16.msra.mxu0 %v973_v18  ;;  %924 = vmatpush3.bf16.msra.mxu1 %v973_v18  ;;  %v378_v33 = vld [vmem:[#allocation2 + $0x58] sm:$0xff]  ;;  %v376_v37 = vld [vmem:[#allocation2 + $0x30] sm:$0xff]  ;;  %v377_v49 = vld [vmem:[#allocation2] sm:$0xff] }
  0x38   : > { %887 = vmatprep.subr.bf16.mxu0 %v974_v19  ;;  %917 = vmatprep.subr.bf16.mxu1 %v974_v19  ;;  %v379_v43 = vld [vmem:[#allocation2 + $0x18] sm:$0xff]  ;;  %v385_v50 = vld [vmem:[#allocation2 + $0x20] sm:$0xff]  ;;  %v382_v55 = vld [vmem:[#allocation2 + $0x8] sm:$0xff] }
  0x39   : > { %v387_v44 = vld [vmem:[#allocation2 + $0x38] sm:$0xff]  ;;  %v380_v61 = vld [vmem:[#allocation2 + $0x50] sm:$0xff]  ;;  %v388_v62 = vld [vmem:[#allocation2 + $0x60] sm:$0xff] }
  0x3a   : > { %v390_v56 = vld [vmem:[#allocation2 + $0x78] sm:$0xff]  ;;  %v383_v3 = vld [vmem:[#allocation2 + $0x48] sm:$0xff]  ;;  %v389_v10 = vld [vmem:[#allocation2 + $0x70] sm:$0xff] }
  0x3b   : > { %888 = vmatpush3.bf16.msra.mxu0 %v974_v19  ;;  %925 = vmatpush3.bf16.msra.mxu1 %v974_v19  ;;  %v391_v4 = vld [vmem:[#allocation2 + $0x28] sm:$0xff] }
  0x3c   : > { %889 = vmatprep.subr.bf16.mxu0 %v975_v20  ;;  %918 = vmatprep.subr.bf16.mxu1 %v975_v20  ;;  %v381_v9 = vld [vmem:[#allocation2 + $0x68] sm:$0xff] }
  0x3f   : > { %890 = vmatpush3.bf16.msra.mxu0 %v975_v20  ;;  %926 = vmatpush3.bf16.msra.mxu1 %v975_v20 }
  0x40   : > { %891 = vmatprep.subr.bf16.mxu0 %v976_v23  ;;  %919 = vmatprep.subr.bf16.mxu1 %v976_v23 }
  0x43   : > { %892 = vmatpush3.bf16.msra.mxu0 %v976_v23  ;;  %927 = vmatpush3.bf16.msra.mxu1 %v976_v23 }
  0x44   : > { %893 = vmatprep.subr.bf16.mxu0 %v977_v24  ;;  %920 = vmatprep.subr.bf16.mxu1 %v977_v24 }
  0x47   : > { %894 = vmatpush3.bf16.msra.mxu0 %v977_v24  ;;  %928 = vmatpush3.bf16.msra.mxu1 %v977_v24 }
  0x48   : > { %895 = vmatprep.subr.bf16.mxu0 %v978_v25  ;;  %921 = vmatprep.subr.bf16.mxu1 %v978_v25 }
  0x4b   : > { %896 = vmatpush3.bf16.msra.mxu0 %v978_v25  ;;  %929 = vmatpush3.bf16.msra.mxu1 %v978_v25 }
  0x4c   : > { %897 = vmatprep.subr.bf16.mxu0 %v979_v26  ;;  %922 = vmatprep.subr.bf16.mxu1 %v979_v26 }
  0x4f   : > { %898 = vmatpush3.bf16.msra.mxu0 %v979_v26  ;;  %930 = vmatpush3.bf16.msra.mxu1 %v979_v26 }
  0x52   : > { %900 = vmatmul.mubr.bf16.vlgmr.msra.gmra.mxu0 %v982_v27  ;;  %908 = vmatmul.mubr.bf16.vlgmr.msra.gmra.mxu1 %v983_v28 }
  0x53   : > { %903 = vmatprep.mubr.bf16.mxu0 %v984_v29  ;;  %911 = vmatprep.mubr.bf16.mxu1 %v985_v30 }
  0x5a   : > { %904 = vmatmul.mubr.bf16.gmra.mxu0 %v986_v31  ;;  %912 = vmatmul.mubr.bf16.gmra.mxu1 %v987_v32 }
 0x112   : > { %v901_v35 = vpop.f32.mrf.mxu0  ;;  %v909_v36 = vpop.f32.mrf.mxu1 }
 0x113   : > { %v619_v39 = vadd.f32 %v901_v35, %v378_v33  ;;  %v627_v40 = vadd.f32 %v909_v36, %v386_v34 }
 0x114   : > { %v554_v41 = vpop.f32.mrf.mxu0  ;;  %v586_v42 = vpop.f32.mrf.mxu1 }
 0x115   : > { %635 = vst [vmem:[#allocation2 + $0x58] sm:$0xff] %v619_v39  ;;  %643 = vst [vmem:[#allocation2 + $0x10] sm:$0xff] %v627_v40  ;;  %v617_v45 = vadd.f32 %v554_v41, %v376_v37  ;;  %v625_v46 = vadd.f32 %v586_v42, %v384_v38 }
 0x116   : > { %v902_v47 = vpop.f32.mrf.mxu0  ;;  %v910_v48 = vpop.f32.mrf.mxu1 }
 0x117   : > { %633 = vst [vmem:[#allocation2 + $0x30] sm:$0xff] %v617_v45  ;;  %641 = vst [vmem:[#allocation2 + $0x40] sm:$0xff] %v625_v46  ;;  %v620_v51 = vadd.f32 %v902_v47, %v379_v43  ;;  %v628_v52 = vadd.f32 %v910_v48, %v387_v44 }
 0x118   : > { %v557_v53 = vpop.f32.mrf.mxu0  ;;  %v589_v54 = vpop.f32.mrf.mxu1 }
 0x119   : > { %636 = vst [vmem:[#allocation2 + $0x18] sm:$0xff] %v620_v51  ;;  %644 = vst [vmem:[#allocation2 + $0x38] sm:$0xff] %v628_v52  ;;  %v618_v57 = vadd.f32 %v557_v53, %v377_v49  ;;  %v626_v58 = vadd.f32 %v589_v54, %v385_v50 }
 0x11a   : > { %v905_v59 = vpop.f32.mrf.mxu0  ;;  %v913_v60 = vpop.f32.mrf.mxu1 }
 0x11b   : > { %634 = vst [vmem:[#allocation2] sm:$0xff] %v618_v57  ;;  %642 = vst [vmem:[#allocation2 + $0x20] sm:$0xff] %v626_v58  ;;  %v623_v63 = vadd.f32 %v905_v59, %v382_v55  ;;  %v631_v0 = vadd.f32 %v913_v60, %v390_v56 }
 0x11c   : > { %v570_v1 = vpop.f32.mrf.mxu0  ;;  %v602_v2 = vpop.f32.mrf.mxu1 }
 0x11d   : > { %639 = vst [vmem:[#allocation2 + $0x8] sm:$0xff] %v623_v63  ;;  %647 = vst [vmem:[#allocation2 + $0x78] sm:$0xff] %v631_v0  ;;  %v621_v5 = vadd.f32 %v570_v1, %v380_v61  ;;  %v629_v6 = vadd.f32 %v602_v2, %v388_v62 }
 0x11e   : > { %v906_v7 = vpop.f32.mrf.mxu0  ;;  %v914_v8 = vpop.f32.mrf.mxu1 }
 0x11f   : > { %637 = vst [vmem:[#allocation2 + $0x50] sm:$0xff] %v621_v5  ;;  %645 = vst [vmem:[#allocation2 + $0x60] sm:$0xff] %v629_v6  ;;  %v624_v11 = vadd.f32 %v906_v7, %v383_v3  ;;  %v632_v12 = vadd.f32 %v914_v8, %v391_v4  ;;  %652 = sbr.rel (%p861_p11) target bundleno = 305 (0x131), region = 81 }
 0x120   : > { %v573_v13 = vpop.f32.mrf.mxu0  ;;  %v605_v14 = vpop.f32.mrf.mxu1 }
 0x121   : > { %640 = vst [vmem:[#allocation2 + $0x48] sm:$0xff] %v624_v11  ;;  %648 = vst [vmem:[#allocation2 + $0x28] sm:$0xff] %v632_v12  ;;  %v622_v15 = vadd.f32 %v573_v13, %v381_v9  ;;  %v630_v16 = vadd.f32 %v605_v14, %v389_v10 }
 0x123   : > { %638 = vst [vmem:[#allocation2 + $0x68] sm:$0xff] %v622_v15  ;;  %646 = vst [vmem:[#allocation2 + $0x70] sm:$0xff] %v630_v16 }
 0x124   : > { %v653_v17 = vld [vmem:[#allocation2 + $0x30] sm:$0xff]  ;;  %v862_v18 = vld [vmem:[%s1207_s2] ss:$0 sm:$0xff]  ;;  %v655_v22 = vld [vmem:[#allocation2 + $0x58] sm:$0xff] }
 0x125   : > { %v654_v19 = vld [vmem:[#allocation2] sm:$0xff]  ;;  %v676_v20 = vadd.f32 %v862_v18, %v653_v17  ;;  %v656_v23 = vld [vmem:[#allocation2 + $0x18] sm:$0xff]  ;;  %v678_v25 = vadd.f32 %v862_v18, %v655_v22  ;;  %v659_v29 = vld [vmem:[#allocation2 + $0x8] sm:$0xff] }
 0x126   : > { %v677_v21 = vadd.f32 %v862_v18, %v654_v19  ;;  %v657_v24 = vld [vmem:[#allocation2 + $0x50] sm:$0xff]  ;;  %v679_v26 = vadd.f32 %v862_v18, %v656_v23  ;;  %v682_v34 = vadd.f32 %v862_v18, %v659_v29  ;;  %v661_v35 = vld [vmem:[#allocation2 + $0x40] sm:$0xff]  ;;  %v664_v42 = vld [vmem:[#allocation2 + $0x38] sm:$0xff] }
 0x127   : > { %v680_v27 = vadd.f32 %v862_v18, %v657_v24  ;;  %v692_v31 = vmax.f32 %v676_v20, 0.0  ;;  %v662_v36 = vld [vmem:[#allocation2 + $0x20] sm:$0xff]  ;;  %v663_v37 = vld [vmem:[#allocation2 + $0x10] sm:$0xff]  ;;  %v694_v38 = vmax.f32 %v678_v25, 0.0  ;;  %v684_v47 = vadd.f32 %v862_v18, %v661_v35  ;;  %v667_v49 = vld [vmem:[#allocation2 + $0x78] sm:$0xff] }
 0x128   : > { %v660_v30 = vld [vmem:[#allocation2 + $0x48] sm:$0xff]  ;;  %v693_v32 = vmax.f32 %v677_v21, 0.0  ;;  %v695_v39 = vmax.f32 %v679_v26, 0.0  ;;  %v665_v43 = vld [vmem:[#allocation2 + $0x60] sm:$0xff]  ;;  %v698_v46 = vmax.f32 %v682_v34, 0.0  ;;  %v685_v48 = vadd.f32 %v862_v18, %v662_v36 }
 0x129   : > { %v696_v40 = vmax.f32 %v680_v27, 0.0  ;;  %v683_v41 = vadd.f32 %v862_v18, %v660_v30  ;;  %708 = vst [vmem:[%s1208_s3] sm:$0xff] %v692_v31  ;;  %v668_v50 = vld [vmem:[#allocation2 + $0x28] sm:$0xff]  ;;  %710 = vst [vmem:[%s1208_s3 + $0x10] sm:$0xff] %v694_v38  ;;  %v686_v52 = vadd.f32 %v862_v18, %v663_v37  ;;  %v687_v53 = vadd.f32 %v862_v18, %v664_v42 }
 0x12a   : > { %v658_v28 = vld [vmem:[#allocation2 + $0x68] sm:$0xff]  ;;  %v666_v44 = vld [vmem:[#allocation2 + $0x70] sm:$0xff]  ;;  %709 = vst [vmem:[%s1208_s3 + $0x8] sm:$0xff] %v693_v32  ;;  %711 = vst [vmem:[%s1208_s3 + $0x18] sm:$0xff] %v695_v39  ;;  %v688_v54 = vadd.f32 %v862_v18, %v665_v43  ;;  %v700_v55 = vmax.f32 %v684_v47, 0.0  ;;  %v701_v56 = vmax.f32 %v685_v48, 0.0  ;;  %v690_v58 = vadd.f32 %v862_v18, %v667_v49 }
 0x12b   : > { %v681_v33 = vadd.f32 %v862_v18, %v658_v28  ;;  %712 = vst [vmem:[%s1208_s3 + $0x20] sm:$0xff] %v696_v40  ;;  %v699_v51 = vmax.f32 %v683_v41, 0.0  ;;  %714 = vst [vmem:[%s1208_s3 + $0x30] sm:$0xff] %v698_v46  ;;  %v689_v57 = vadd.f32 %v862_v18, %v666_v44  ;;  %v702_v59 = vmax.f32 %v686_v52, 0.0 }
 0x12c   : > { %v703_v60 = vmax.f32 %v687_v53, 0.0  ;;  %v704_v61 = vmax.f32 %v688_v54, 0.0  ;;  %v691_v62 = vadd.f32 %v862_v18, %v668_v50  ;;  %716 = vst [vmem:[%s1208_s3 + $0x40] sm:$0xff] %v700_v55  ;;  %717 = vst [vmem:[%s1208_s3 + $0x48] sm:$0xff] %v701_v56  ;;  %v706_v0 = vmax.f32 %v690_v58, 0.0 }
 0x12d   : > { %v697_v45 = vmax.f32 %v681_v33, 0.0  ;;  %715 = vst [vmem:[%s1208_s3 + $0x38] sm:$0xff] %v699_v51  ;;  %v705_v63 = vmax.f32 %v689_v57, 0.0  ;;  %718 = vst [vmem:[%s1208_s3 + $0x50] sm:$0xff] %v702_v59 }
 0x12e   : > { %719 = vst [vmem:[%s1208_s3 + $0x58] sm:$0xff] %v703_v60  ;;  %720 = vst [vmem:[%s1208_s3 + $0x60] sm:$0xff] %v704_v61  ;;  %v707_v1 = vmax.f32 %v691_v62, 0.0 }
 0x12f   : > { %713 = vst [vmem:[%s1208_s3 + $0x28] sm:$0xff] %v697_v45  ;;  %721 = vst [vmem:[%s1208_s3 + $0x68] sm:$0xff] %v705_v63 }
 0x130   : > { %722 = vst [vmem:[%s1208_s3 + $0x70] sm:$0xff] %v706_v0  ;;  %723 = vst [vmem:[%s1208_s3 + $0x78] sm:$0xff] %v707_v1 }
 0x131 PF: > { %s13_s16 = sadd.s32 1, %s1026_s16   ;;  %s1209_s12 = smov %s1014_s13 }
 0x132   : > { %p10_p12 = scmp.ge.s32.totalorder %s13_s16, 11   ;;  %s1210_s13 = smov %s1084_s20 }
 0x133   : > { %s1211_s14 = smov %s1022_s15  ;;  %s1212_s15 = smov %s1214_s17 }
 0x134   :  { %12 = sbr.rel (!%p10_p12) target bundleno = 3 (0x3), region = 122 }

// kernel: transformer_forward.82
= control target key start
LH: loop header
LB: loop body
LE: loop exit
PB: predicated region body
PF: predicated region fallthrough
CT: control target
= control target key end

     0   :  { %s1451_s12 = smov 0   ;;  %s1453_s13 = smov 0   ;;  %s1712_s0 = inlined_call_operand.vmem [shape: bf16[512,640], index: 0, kind: input, shape index: {}]   ;;  %s1713_s1 = inlined_call_operand.vmem [shape: bf16[640,128], index: 1, kind: input, shape index: {}]   ;;  %s1714_s2 = inlined_call_operand.vmem [shape: f32[1,128], index: 2, kind: input, shape index: {}]   ;;  %s1715_s3 = inlined_call_operand.vmem [shape: f32[512,128], index: 3, kind: output, shape index: {}]  }
   0x1   :  { %s1455_s14 = smov 0   ;;  %s1457_s15 = smov 0  }
   0x2   :  { %s1459_s16 = smov 0   ;;  %s1461_s17 = smov 0  }
   0x3   :  { %s1463_s18 = smov 0  }
   0x4 LB: > { %s25_s19 = sadd.s32 1, %s1420_s16  ;;  %s32_s20 = sadd.s32 1, %s1424_s17  ;;  %s1428_s18 = sphi %s1463_s18, %s13_s18   ;;  %s1424_s17 = sphi %s1461_s17, %s1721_s17   ;;  %s1420_s16 = sphi %s1459_s16, %s1720_s16   ;;  %s1416_s15 = sphi %s1457_s15, %s1719_s15   ;;  %s1412_s14 = sphi %s1455_s14, %s1718_s14   ;;  %s1408_s13 = sphi %s1453_s13, %s1717_s13   ;;  %s1404_s12 = sphi %s1451_s12, %s1716_s12  }
   0x5   : > { %p26_p0 = scmp.ge.s32.totalorder %s25_s19, 5  ;;  %p48_p1 = scmp.ne.s32.totalorder %s1408_s13, %s1404_s12 }
   0x6   : > { %p49_p2 = scmp.eq.s32.totalorder %s1428_s18, 0  ;;  %s41_s24 = sadd.s32 1, %s1408_s13 }
   0x7   : > { %s1723_s19 = smov (%p26_p0, %s25_s19), 0  ;;  %s1725_s20 = smov (!%p26_p0, %s32_s20), %s1424_s17 }
   0x8   : > { %p50_p3 = por %p49_p2, %p48_p1  ;;  %p34_p4 = scmp.ge.s32.totalorder %s1725_s20, 2 }
   0x9   : > { %s37_s21 = ssub.s32 %s1420_s16, %s1723_s19  ;;  %p1164_p6 = scmp.ge.s32.totalorder %s1428_s18, 10 }
   0xa   : > { %s1727_s20 = smov (%p34_p4, %s1725_s20), 0 }
   0xb   : > { %s36_s22 = ssub.s32 %s1424_s17, %s1727_s20  ;;  %162 = sbr.rel (%p1164_p6) target bundleno = 44 (0x2c), region = 20 }
   0xc   : > { %s38_s23 = sor.u32 %s37_s21, %s36_s22 }
   0xd   : > { %p39_p5 = scmp.eq.s32.totalorder %s38_s23, 0 }
   0xf   : > { %s1502_s25 = scalar_select %p39_p5, %s1408_s13, %s41_s24  }
  0x10   : > { %165 = sbr.rel (!%p50_p3) target bundleno = 44 (0x2c), region = 24  ;;  %s167_s26 = sand.u32 (%p50_p3), 1, %s1408_s13  }
  0x11   : > { %s1292_s27 = smul.u32 (%p50_p3), 160, %s1424_s17  ;;  %s1165_s28 = sshll.u32 (%p50_p3), %s167_s26, 7 }
  0x12   : > { %s1516_s7 = scalar_lea.vmem (%p50_p3), [#allocation3], %s1165_s28 }
  0x13   : > { %s172_s29 = sadd.s32 (%p50_p3), %s1420_s16, %s1292_s27 }
  0x14   : > { %s1168_s30 = sshll.u32 (%p50_p3), %s172_s29, 2 }
  0x15   : > { %s1511_s6 = scalar_lea.vmem %s1712_s0, %s1168_s30 }
  0x16   : > { %v191_v0 = vld [vmem:[%s1511_s6] sm:$0xf]  ;;  %v193_v1 = vld [vmem:[%s1511_s6 + $0x14] sm:$0xf]  ;;  %v195_v2 = vld [vmem:[%s1511_s6 + $0x28] sm:$0xf] }
  0x17   : > { %192 = vst [vmem:[%s1516_s7] sm:$0xf] %v191_v0  ;;  %194 = vst [vmem:[%s1516_s7 + $0x4] sm:$0xf] %v193_v1  ;;  %v197_v3 = vld [vmem:[%s1511_s6 + $0x3c] sm:$0xf] }
  0x18   : > { %196 = vst [vmem:[%s1516_s7 + $0x8] sm:$0xf] %v195_v2  ;;  %v199_v4 = vld [vmem:[%s1511_s6 + $0x50] sm:$0xf]  ;;  %v201_v5 = vld [vmem:[%s1511_s6 + $0x64] sm:$0xf] }
  0x19   : > { %198 = vst [vmem:[%s1516_s7 + $0xc] sm:$0xf] %v197_v3  ;;  %200 = vst [vmem:[%s1516_s7 + $0x10] sm:$0xf] %v199_v4  ;;  %v203_v6 = vld [vmem:[%s1511_s6 + $0x78] sm:$0xf] }
  0x1a   : > { %202 = vst [vmem:[%s1516_s7 + $0x14] sm:$0xf] %v201_v5  ;;  %v205_v7 = vld [vmem:[%s1511_s6 + $0x8c] sm:$0xf]  ;;  %v207_v8 = vld [vmem:[%s1511_s6 + $0xa0] sm:$0xf] }
  0x1b   : > { %204 = vst [vmem:[%s1516_s7 + $0x18] sm:$0xf] %v203_v6  ;;  %206 = vst [vmem:[%s1516_s7 + $0x1c] sm:$0xf] %v205_v7  ;;  %v209_v9 = vld [vmem:[%s1511_s6 + $0xb4] sm:$0xf] }
  0x1c   : > { %208 = vst [vmem:[%s1516_s7 + $0x20] sm:$0xf] %v207_v8  ;;  %v211_v10 = vld [vmem:[%s1511_s6 + $0xc8] sm:$0xf]  ;;  %v213_v11 = vld [vmem:[%s1511_s6 + $0xdc] sm:$0xf] }
  0x1d   : > { %210 = vst [vmem:[%s1516_s7 + $0x24] sm:$0xf] %v209_v9  ;;  %212 = vst [vmem:[%s1516_s7 + $0x28] sm:$0xf] %v211_v10  ;;  %v215_v12 = vld [vmem:[%s1511_s6 + $0xf0] sm:$0xf] }
  0x1e   : > { %214 = vst [vmem:[%s1516_s7 + $0x2c] sm:$0xf] %v213_v11  ;;  %v217_v13 = vld [vmem:[%s1511_s6 + $0x104] sm:$0xf]  ;;  %v219_v14 = vld [vmem:[%s1511_s6 + $0x118] sm:$0xf] }
  0x1f   : > { %216 = vst [vmem:[%s1516_s7 + $0x30] sm:$0xf] %v215_v12  ;;  %218 = vst [vmem:[%s1516_s7 + $0x34] sm:$0xf] %v217_v13  ;;  %v221_v15 = vld [vmem:[%s1511_s6 + $0x12c] sm:$0xf] }
  0x20   : > { %220 = vst [vmem:[%s1516_s7 + $0x38] sm:$0xf] %v219_v14  ;;  %v223_v16 = vld [vmem:[%s1511_s6 + $0x140] sm:$0xf]  ;;  %v225_v17 = vld [vmem:[%s1511_s6 + $0x154] sm:$0xf] }
  0x21   : > { %222 = vst [vmem:[%s1516_s7 + $0x3c] sm:$0xf] %v221_v15  ;;  %224 = vst [vmem:[%s1516_s7 + $0x40] sm:$0xf] %v223_v16  ;;  %v227_v18 = vld [vmem:[%s1511_s6 + $0x168] sm:$0xf] }
  0x22   : > { %226 = vst [vmem:[%s1516_s7 + $0x44] sm:$0xf] %v225_v17  ;;  %v229_v19 = vld [vmem:[%s1511_s6 + $0x17c] sm:$0xf]  ;;  %v231_v20 = vld [vmem:[%s1511_s6 + $0x190] sm:$0xf] }
  0x23   : > { %228 = vst [vmem:[%s1516_s7 + $0x48] sm:$0xf] %v227_v18  ;;  %230 = vst [vmem:[%s1516_s7 + $0x4c] sm:$0xf] %v229_v19  ;;  %v233_v21 = vld [vmem:[%s1511_s6 + $0x1a4] sm:$0xf] }
  0x24   : > { %232 = vst [vmem:[%s1516_s7 + $0x50] sm:$0xf] %v231_v20  ;;  %v235_v22 = vld [vmem:[%s1511_s6 + $0x1b8] sm:$0xf]  ;;  %v237_v23 = vld [vmem:[%s1511_s6 + $0x1cc] sm:$0xf] }
  0x25   : > { %234 = vst [vmem:[%s1516_s7 + $0x54] sm:$0xf] %v233_v21  ;;  %236 = vst [vmem:[%s1516_s7 + $0x58] sm:$0xf] %v235_v22  ;;  %v239_v24 = vld [vmem:[%s1511_s6 + $0x1e0] sm:$0xf] }
  0x26   : > { %238 = vst [vmem:[%s1516_s7 + $0x5c] sm:$0xf] %v237_v23  ;;  %v241_v25 = vld [vmem:[%s1511_s6 + $0x1f4] sm:$0xf]  ;;  %v243_v26 = vld [vmem:[%s1511_s6 + $0x208] sm:$0xf] }
  0x27   : > { %240 = vst [vmem:[%s1516_s7 + $0x60] sm:$0xf] %v239_v24  ;;  %242 = vst [vmem:[%s1516_s7 + $0x64] sm:$0xf] %v241_v25  ;;  %v245_v27 = vld [vmem:[%s1511_s6 + $0x21c] sm:$0xf] }
  0x28   : > { %244 = vst [vmem:[%s1516_s7 + $0x68] sm:$0xf] %v243_v26  ;;  %v247_v28 = vld [vmem:[%s1511_s6 + $0x230] sm:$0xf]  ;;  %v249_v29 = vld [vmem:[%s1511_s6 + $0x244] sm:$0xf] }
  0x29   : > { %246 = vst [vmem:[%s1516_s7 + $0x6c] sm:$0xf] %v245_v27  ;;  %248 = vst [vmem:[%s1516_s7 + $0x70] sm:$0xf] %v247_v28  ;;  %v251_v30 = vld [vmem:[%s1511_s6 + $0x258] sm:$0xf] }
  0x2a   : > { %250 = vst [vmem:[%s1516_s7 + $0x74] sm:$0xf] %v249_v29  ;;  %v253_v31 = vld [vmem:[%s1511_s6 + $0x26c] sm:$0xf]  ;;  %252 = vst [vmem:[%s1516_s7 + $0x78] sm:$0xf] %v251_v30 }
  0x2b   : > { %254 = vst [vmem:[%s1516_s7 + $0x7c] sm:$0xf] %v253_v31 }
  0x2c PF: > { %p1169_p7 = scmp.ge.s32.totalorder %s1428_s18, 1  ;;  %p353_p8 = scmp.lt.s32.totalorder %s1428_s18, 11 }
  0x2e   : > { %p354_p9 = pnand %p1169_p7, %p353_p8 }
  0x2f   : > { %s360_s8 = sand.u32 (!%p354_p9), 1, %s1404_s12   ;;  %s1171_s9 = sshll.u32 (!%p354_p9), %s1412_s14, 4 }
  0x30   : > { %357 = sbr.rel (%p354_p9) target bundleno = 358 (0x166), region = 69  ;;  %s1170_s10 = sshll.u32 (!%p354_p9), %s360_s8, 7 }
  0x31   : > { %p399_p10 = scmp.lt.s32.totalorder (!%p354_p9), %s1171_s9, 79  ;;  %s1173_s11 = sshll.u32 (!%p354_p9), %s1416_s15, 5 }
  0x32   : > { %p411_p11 = scmp.lt.s32.totalorder (!%p354_p9), %s1173_s11, 63  ;;  %s1594_s12 = scalar_lea.vmem (!%p354_p9), [#allocation3], %s1170_s10 }
  0x33   : > { %p1175_p12 = scmp.ne.s32.totalorder (!%p354_p9), %s1412_s14, 0 }
  0x35   : > { %s1729_s9 = smov (!%p399_p10, %s1171_s9), 79  ;;  %s1731_s11 = smov (!%p411_p11, %s1173_s11), 63 }
  0x36   : > { %s1172_s21 = sshll.u32 %s1729_s9, 2  ;;  %s1174_s26 = sshll.u32 %s1731_s11, 3 }
  0x37   : > { %s1587_s24 = scalar_lea.vmem %s1713_s1, %s1172_s21  ;;  %s1592_s29 = scalar_lea.vmem %s1715_s3, %s1174_s26 }
  0x38   : > { %423 = sbr.rel (%p1175_p12) target bundleno = 78 (0x4e), region = 77 }
  0x3d   : > { %v1430_v32 = vmov 0.0  }
  0x3e   : > { %424 = vst [vmem:[#allocation2 + $0xb0] sm:$0xff] %v1430_v32  ;;  %425 = vst [vmem:[#allocation2] sm:$0xff] %v1430_v32 }
  0x3f   : > { %426 = vst [vmem:[#allocation2 + $0xd8] sm:$0xff] %v1430_v32  ;;  %427 = vst [vmem:[#allocation2 + $0x18] sm:$0xff] %v1430_v32 }
  0x40   : > { %428 = vst [vmem:[#allocation2 + $0x50] sm:$0xff] %v1430_v32  ;;  %429 = vst [vmem:[#allocation2 + $0x68] sm:$0xff] %v1430_v32 }
  0x41   : > { %430 = vst [vmem:[#allocation2 + $0x30] sm:$0xff] %v1430_v32  ;;  %431 = vst [vmem:[#allocation2 + $0x48] sm:$0xff] %v1430_v32 }
  0x42   : > { %432 = vst [vmem:[#allocation2 + $0x80] sm:$0xff] %v1430_v32  ;;  %433 = vst [vmem:[#allocation2 + $0x88] sm:$0xff] %v1430_v32 }
  0x43   : > { %434 = vst [vmem:[#allocation2 + $0xe8] sm:$0xff] %v1430_v32  ;;  %435 = vst [vmem:[#allocation2 + $0xb8] sm:$0xff] %v1430_v32 }
  0x44   : > { %436 = vst [vmem:[#allocation2 + $0x60] sm:$0xff] %v1430_v32  ;;  %437 = vst [vmem:[#allocation2 + $0xf0] sm:$0xff] %v1430_v32 }
  0x45   : > { %438 = vst [vmem:[#allocation2 + $0x8] sm:$0xff] %v1430_v32  ;;  %439 = vst [vmem:[#allocation2 + $0x78] sm:$0xff] %v1430_v32 }
  0x46   : > { %440 = vst [vmem:[#allocation2 + $0x38] sm:$0xff] %v1430_v32  ;;  %441 = vst [vmem:[#allocation2 + $0x58] sm:$0xff] %v1430_v32 }
  0x47   : > { %442 = vst [vmem:[#allocation2 + $0x40] sm:$0xff] %v1430_v32  ;;  %443 = vst [vmem:[#allocation2 + $0xc8] sm:$0xff] %v1430_v32 }
  0x48   : > { %444 = vst [vmem:[#allocation2 + $0xe0] sm:$0xff] %v1430_v32  ;;  %445 = vst [vmem:[#allocation2 + $0x90] sm:$0xff] %v1430_v32 }
  0x49   : > { %446 = vst [vmem:[#allocation2 + $0x70] sm:$0xff] %v1430_v32  ;;  %447 = vst [vmem:[#allocation2 + $0xc0] sm:$0xff] %v1430_v32 }
  0x4a   : > { %448 = vst [vmem:[#allocation2 + $0xa8] sm:$0xff] %v1430_v32  ;;  %449 = vst [vmem:[#allocation2 + $0xd0] sm:$0xff] %v1430_v32 }
  0x4b   : > { %450 = vst [vmem:[#allocation2 + $0x10] sm:$0xff] %v1430_v32  ;;  %451 = vst [vmem:[#allocation2 + $0x28] sm:$0xff] %v1430_v32 }
  0x4c   : > { %452 = vst [vmem:[#allocation2 + $0xa0] sm:$0xff] %v1430_v32  ;;  %453 = vst [vmem:[#allocation2 + $0xf8] sm:$0xff] %v1430_v32 }
  0x4d   : > { %454 = vst [vmem:[#allocation2 + $0x20] sm:$0xff] %v1430_v32  ;;  %455 = vst [vmem:[#allocation2 + $0x98] sm:$0xff] %v1430_v32 }
  0x4e PF: > { %v1350_v33 = vld [vmem:[%s1587_s24 + $0x38] sm:$0xff]   ;;  %v1351_v34 = vld [vmem:[%s1587_s24 + $0x30] sm:$0xff]   ;;  %v1352_v35 = vld [vmem:[%s1587_s24 + $0x28] sm:$0xff]   ;;  %p1200_p13 = scmp.ne.s32.totalorder %s1412_s14, 4 }
  0x4f   : > { %1228 = vmatprep.subr.bf16.mxu0 %v1350_v33  ;;  %1276 = vmatprep.subr.bf16.mxu1 %v1350_v33  ;;  %v1353_v36 = vld [vmem:[%s1587_s24 + $0x20] sm:$0xff]   ;;  %v1354_v39 = vld [vmem:[%s1587_s24 + $0x18] sm:$0xff]   ;;  %v1355_v40 = vld [vmem:[%s1587_s24 + $0x10] sm:$0xff]  }
  0x50   : > { %1229 = vmatpush3.bf16.msra.mxu0 %v1350_v33  ;;  %1284 = vmatpush3.bf16.msra.mxu1 %v1350_v33  ;;  %v1358_v37 = vld [vmem:[%s1594_s12] sm:$0xff]   ;;  %v1356_v41 = vld [vmem:[%s1587_s24 + $0x8] sm:$0xff]   ;;  %v1362_v45 = vld [vmem:[%s1594_s12 + $0x10] sm:$0xff]  }
  0x51   : > { %1230 = vmatprep.subr.bf16.mxu0 %v1351_v34  ;;  %1277 = vmatprep.subr.bf16.mxu1 %v1351_v34  ;;  %v1359_v38 = vld [vmem:[%s1594_s12 + $0x40] sm:$0xff]   ;;  %v1360_v43 = vld [vmem:[%s1594_s12 + $0x8] sm:$0xff]   ;;  %v1363_v46 = vld [vmem:[%s1594_s12 + $0x50] sm:$0xff]  }
  0x52   : > { %1244 = vmatprep.mubr.bf16.mxu0 %v1358_v37  ;;  %1260 = vmatprep.mubr.bf16.mxu1 %v1359_v38  ;;  %v1357_v42 = vld [vmem:[%s1587_s24] sm:$0xff]   ;;  %v1361_v44 = vld [vmem:[%s1594_s12 + $0x48] sm:$0xff]   ;;  %v1364_v47 = vld [vmem:[%s1594_s12 + $0x18] sm:$0xff]  }
  0x53   : > { %v1365_v48 = vld [vmem:[%s1594_s12 + $0x58] sm:$0xff]   ;;  %v1366_v49 = vld [vmem:[%s1594_s12 + $0x20] sm:$0xff]   ;;  %v1368_v51 = vld [vmem:[%s1594_s12 + $0x28] sm:$0xff]  }
  0x54   : > { %1231 = vmatpush3.bf16.msra.mxu0 %v1351_v34  ;;  %1285 = vmatpush3.bf16.msra.mxu1 %v1351_v34  ;;  %v1367_v50 = vld [vmem:[%s1594_s12 + $0x60] sm:$0xff]   ;;  %v1369_v52 = vld [vmem:[%s1594_s12 + $0x68] sm:$0xff]   ;;  %v1370_v53 = vld [vmem:[%s1594_s12 + $0x30] sm:$0xff]  }
  0x55   : > { %1232 = vmatprep.subr.bf16.mxu0 %v1352_v35  ;;  %1278 = vmatprep.subr.bf16.mxu1 %v1352_v35  ;;  %v1371_v54 = vld [vmem:[%s1594_s12 + $0x70] sm:$0xff]   ;;  %v1372_v55 = vld [vmem:[%s1594_s12 + $0x38] sm:$0xff]   ;;  %v474_v58 = vld [vmem:[#allocation2 + $0x40] sm:$0xff] }
  0x56   : > { %v1373_v56 = vld [vmem:[%s1594_s12 + $0x78] sm:$0xff]   ;;  %v456_v61 = vld [vmem:[#allocation2 + $0xb0] sm:$0xff]  ;;  %v475_v4 = vld [vmem:[#allocation2 + $0xc8] sm:$0xff] }
  0x57   : > { %v458_v57 = vld [vmem:[#allocation2 + $0xd8] sm:$0xff]  ;;  %v457_v9 = vld [vmem:[#allocation2] sm:$0xff]  ;;  %v462_v15 = vld [vmem:[#allocation2 + $0x30] sm:$0xff] }
  0x58   : > { %1233 = vmatpush3.bf16.msra.mxu0 %v1352_v35  ;;  %1286 = vmatpush3.bf16.msra.mxu1 %v1352_v35  ;;  %v472_v62 = vld [vmem:[#allocation2 + $0x38] sm:$0xff]  ;;  %v478_v16 = vld [vmem:[#allocation2 + $0x70] sm:$0xff]  ;;  %v476_v22 = vld [vmem:[#allocation2 + $0xe0] sm:$0xff] }
  0x59   : > { %1234 = vmatprep.subr.bf16.mxu0 %v1353_v36  ;;  %1279 = vmatprep.subr.bf16.mxu1 %v1353_v36  ;;  %v459_v3 = vld [vmem:[#allocation2 + $0x18] sm:$0xff]  ;;  %v460_v21 = vld [vmem:[#allocation2 + $0x50] sm:$0xff]  ;;  %v463_v27 = vld [vmem:[#allocation2 + $0x48] sm:$0xff] }
  0x5a   : > { %v473_v10 = vld [vmem:[#allocation2 + $0x58] sm:$0xff]  ;;  %v479_v28 = vld [vmem:[#allocation2 + $0xc0] sm:$0xff]  ;;  %v461_v33 = vld [vmem:[#allocation2 + $0x68] sm:$0xff] }
  0x5b   : > { %v477_v34 = vld [vmem:[#allocation2 + $0x90] sm:$0xff] }
  0x5c   : > { %1235 = vmatpush3.bf16.msra.mxu0 %v1353_v36  ;;  %1287 = vmatpush3.bf16.msra.mxu1 %v1353_v36 }
  0x5d   : > { %1236 = vmatprep.subr.bf16.mxu0 %v1354_v39  ;;  %1280 = vmatprep.subr.bf16.mxu1 %v1354_v39 }
  0x60   : > { %1237 = vmatpush3.bf16.msra.mxu0 %v1354_v39  ;;  %1288 = vmatpush3.bf16.msra.mxu1 %v1354_v39  ;;  %v466_v39 = vld [vmem:[#allocation2 + $0xe8] sm:$0xff] }
  0x61   : > { %1238 = vmatprep.subr.bf16.mxu0 %v1355_v40  ;;  %1281 = vmatprep.subr.bf16.mxu1 %v1355_v40 }
  0x64   : > { %1239 = vmatpush3.bf16.msra.mxu0 %v1355_v40  ;;  %1289 = vmatpush3.bf16.msra.mxu1 %v1355_v40  ;;  %v482_v40 = vld [vmem:[#allocation2 + $0x10] sm:$0xff] }
  0x65   : > { %1240 = vmatprep.subr.bf16.mxu0 %v1356_v41  ;;  %1282 = vmatprep.subr.bf16.mxu1 %v1356_v41 }
  0x68   : > { %1241 = vmatpush3.bf16.msra.mxu0 %v1356_v41  ;;  %1290 = vmatpush3.bf16.msra.mxu1 %v1356_v41 }
  0x69   : > { %1242 = vmatprep.subr.bf16.mxu0 %v1357_v42  ;;  %1283 = vmatprep.subr.bf16.mxu1 %v1357_v42 }
  0x6c   : > { %1243 = vmatpush3.bf16.msra.mxu0 %v1357_v42  ;;  %1291 = vmatpush3.bf16.msra.mxu1 %v1357_v42 }
  0x6f   : > { %1245 = vmatmul.mubr.bf16.vlgmr.msra.gmra.mxu0 %v1360_v43  ;;  %1261 = vmatmul.mubr.bf16.vlgmr.msra.gmra.mxu1 %v1361_v44 }
  0x70   : > { %1248 = vmatprep.mubr.bf16.mxu0 %v1362_v45  ;;  %1264 = vmatprep.mubr.bf16.mxu1 %v1363_v46  ;;  %v464_v45 = vld [vmem:[#allocation2 + $0x80] sm:$0xff]  ;;  %v480_v46 = vld [vmem:[#allocation2 + $0xa8] sm:$0xff] }
  0x77   : > { %1249 = vmatmul.mubr.bf16.gmra.mxu0 %v1364_v47  ;;  %1265 = vmatmul.mubr.bf16.gmra.mxu1 %v1365_v48 }
  0x78   : > { %1252 = vmatprep.mubr.bf16.mxu0 %v1366_v49  ;;  %1268 = vmatprep.mubr.bf16.mxu1 %v1367_v50 }
  0x7f   : > { %1253 = vmatmul.mubr.bf16.gmra.mxu0 %v1368_v51  ;;  %1269 = vmatmul.mubr.bf16.gmra.mxu1 %v1369_v52  ;;  %v467_v51 = vld [vmem:[#allocation2 + $0xb8] sm:$0xff]  ;;  %v483_v52 = vld [vmem:[#allocation2 + $0x28] sm:$0xff] }
  0x80   : > { %1256 = vmatprep.mubr.bf16.mxu0 %v1370_v53  ;;  %1272 = vmatprep.mubr.bf16.mxu1 %v1371_v54 }
  0x87   : > { %1257 = vmatmul.mubr.bf16.gmra.mxu0 %v1372_v55  ;;  %1273 = vmatmul.mubr.bf16.gmra.mxu1 %v1373_v56 }
 0x12f   : > { %v1246_v59 = vpop.f32.mrf.mxu0  ;;  %v1262_v60 = vpop.f32.mrf.mxu1 }
 0x130   : > { %v843_v63 = vadd.f32 %v1246_v59, %v458_v57  ;;  %v859_v0 = vadd.f32 %v1262_v60, %v474_v58  ;;  %v465_v57 = vld [vmem:[#allocation2 + $0x88] sm:$0xff]  ;;  %v481_v58 = vld [vmem:[#allocation2 + $0xd0] sm:$0xff] }
 0x131   : > { %v714_v1 = vpop.f32.mrf.mxu0  ;;  %v778_v2 = vpop.f32.mrf.mxu1 }
 0x132   : > { %875 = vst [vmem:[#allocation2 + $0xd8] sm:$0xff] %v843_v63  ;;  %891 = vst [vmem:[#allocation2 + $0x40] sm:$0xff] %v859_v0  ;;  %v841_v5 = vadd.f32 %v714_v1, %v456_v61  ;;  %v857_v6 = vadd.f32 %v778_v2, %v472_v62  ;;  %v470_v63 = vld [vmem:[#allocation2 + $0x8] sm:$0xff]  ;;  %v486_v0 = vld [vmem:[#allocation2 + $0x20] sm:$0xff] }
 0x133   : > { %v1247_v7 = vpop.f32.mrf.mxu0  ;;  %v1263_v8 = vpop.f32.mrf.mxu1 }
 0x134   : > { %873 = vst [vmem:[#allocation2 + $0xb0] sm:$0xff] %v841_v5  ;;  %889 = vst [vmem:[#allocation2 + $0x38] sm:$0xff] %v857_v6  ;;  %v844_v11 = vadd.f32 %v1247_v7, %v459_v3  ;;  %v860_v12 = vadd.f32 %v1263_v8, %v475_v4  ;;  %v468_v5 = vld [vmem:[#allocation2 + $0x60] sm:$0xff] }
 0x135   : > { %v717_v13 = vpop.f32.mrf.mxu0  ;;  %v781_v14 = vpop.f32.mrf.mxu1  ;;  %v484_v6 = vld [vmem:[#allocation2 + $0xa0] sm:$0xff] }
 0x136   : > { %876 = vst [vmem:[#allocation2 + $0x18] sm:$0xff] %v844_v11  ;;  %892 = vst [vmem:[#allocation2 + $0xc8] sm:$0xff] %v860_v12  ;;  %v842_v17 = vadd.f32 %v717_v13, %v457_v9  ;;  %v858_v18 = vadd.f32 %v781_v14, %v473_v10  ;;  %v471_v11 = vld [vmem:[#allocation2 + $0x78] sm:$0xff] }
 0x137   : > { %v1250_v19 = vpop.f32.mrf.mxu0  ;;  %v1266_v20 = vpop.f32.mrf.mxu1  ;;  %v487_v12 = vld [vmem:[#allocation2 + $0x98] sm:$0xff] }
 0x138   : > { %874 = vst [vmem:[#allocation2] sm:$0xff] %v842_v17  ;;  %890 = vst [vmem:[#allocation2 + $0x58] sm:$0xff] %v858_v18  ;;  %v847_v23 = vadd.f32 %v1250_v19, %v462_v15  ;;  %v863_v24 = vadd.f32 %v1266_v20, %v478_v16  ;;  %v469_v17 = vld [vmem:[#allocation2 + $0xf0] sm:$0xff]  ;;  %v485_v18 = vld [vmem:[#allocation2 + $0xf8] sm:$0xff] }
 0x139   : > { %v730_v25 = vpop.f32.mrf.mxu0  ;;  %v794_v26 = vpop.f32.mrf.mxu1 }
 0x13a   : > { %879 = vst [vmem:[#allocation2 + $0x30] sm:$0xff] %v847_v23  ;;  %895 = vst [vmem:[#allocation2 + $0x70] sm:$0xff] %v863_v24  ;;  %v845_v29 = vadd.f32 %v730_v25, %v460_v21  ;;  %v861_v30 = vadd.f32 %v794_v26, %v476_v22 }
 0x13b   : > { %v1251_v31 = vpop.f32.mrf.mxu0  ;;  %v1267_v32 = vpop.f32.mrf.mxu1 }
 0x13c   : > { %877 = vst [vmem:[#allocation2 + $0x50] sm:$0xff] %v845_v29  ;;  %893 = vst [vmem:[#allocation2 + $0xe0] sm:$0xff] %v861_v30  ;;  %v848_v35 = vadd.f32 %v1251_v31, %v463_v27  ;;  %v864_v36 = vadd.f32 %v1267_v32, %v479_v28 }
 0x13d   : > { %v733_v37 = vpop.f32.mrf.mxu0  ;;  %v797_v38 = vpop.f32.mrf.mxu1 }
 0x13e   : > { %880 = vst [vmem:[#allocation2 + $0x48] sm:$0xff] %v848_v35  ;;  %896 = vst [vmem:[#allocation2 + $0xc0] sm:$0xff] %v864_v36  ;;  %v846_v41 = vadd.f32 %v733_v37, %v461_v33  ;;  %v862_v42 = vadd.f32 %v797_v38, %v477_v34 }
 0x13f   : > { %v1254_v43 = vpop.f32.mrf.mxu0  ;;  %v1270_v44 = vpop.f32.mrf.mxu1 }
 0x140   : > { %878 = vst [vmem:[#allocation2 + $0x68] sm:$0xff] %v846_v41  ;;  %894 = vst [vmem:[#allocation2 + $0x90] sm:$0xff] %v862_v42  ;;  %v851_v47 = vadd.f32 %v1254_v43, %v466_v39  ;;  %v867_v48 = vadd.f32 %v1270_v44, %v482_v40 }
 0x141   : > { %v746_v49 = vpop.f32.mrf.mxu0  ;;  %v810_v50 = vpop.f32.mrf.mxu1 }
 0x142   : > { %883 = vst [vmem:[#allocation2 + $0xe8] sm:$0xff] %v851_v47  ;;  %899 = vst [vmem:[#allocation2 + $0x10] sm:$0xff] %v867_v48  ;;  %v849_v53 = vadd.f32 %v746_v49, %v464_v45  ;;  %v865_v54 = vadd.f32 %v810_v50, %v480_v46 }
 0x143   : > { %v1255_v55 = vpop.f32.mrf.mxu0  ;;  %v1271_v56 = vpop.f32.mrf.mxu1 }
 0x144   : > { %881 = vst [vmem:[#allocation2 + $0x80] sm:$0xff] %v849_v53  ;;  %897 = vst [vmem:[#allocation2 + $0xa8] sm:$0xff] %v865_v54  ;;  %v852_v59 = vadd.f32 %v1255_v55, %v467_v51  ;;  %v868_v60 = vadd.f32 %v1271_v56, %v483_v52 }
 0x145   : > { %v749_v61 = vpop.f32.mrf.mxu0  ;;  %v813_v62 = vpop.f32.mrf.mxu1 }
 0x146   : > { %884 = vst [vmem:[#allocation2 + $0xb8] sm:$0xff] %v852_v59  ;;  %900 = vst [vmem:[#allocation2 + $0x28] sm:$0xff] %v868_v60  ;;  %v850_v1 = vadd.f32 %v749_v61, %v465_v57  ;;  %v866_v2 = vadd.f32 %v813_v62, %v481_v58 }
 0x147   : > { %v1258_v3 = vpop.f32.mrf.mxu0  ;;  %v1274_v4 = vpop.f32.mrf.mxu1 }
 0x148   : > { %882 = vst [vmem:[#allocation2 + $0x88] sm:$0xff] %v850_v1  ;;  %898 = vst [vmem:[#allocation2 + $0xd0] sm:$0xff] %v866_v2  ;;  %v855_v7 = vadd.f32 %v1258_v3, %v470_v63  ;;  %v871_v8 = vadd.f32 %v1274_v4, %v486_v0 }
 0x149   : > { %v762_v9 = vpop.f32.mrf.mxu0  ;;  %v826_v10 = vpop.f32.mrf.mxu1 }
 0x14a   : > { %887 = vst [vmem:[#allocation2 + $0x8] sm:$0xff] %v855_v7  ;;  %903 = vst [vmem:[#allocation2 + $0x20] sm:$0xff] %v871_v8  ;;  %v853_v13 = vadd.f32 %v762_v9, %v468_v5  ;;  %v869_v14 = vadd.f32 %v826_v10, %v484_v6 }
 0x14b   : > { %v1259_v15 = vpop.f32.mrf.mxu0  ;;  %v1275_v16 = vpop.f32.mrf.mxu1 }
 0x14c   : > { %885 = vst [vmem:[#allocation2 + $0x60] sm:$0xff] %v853_v13  ;;  %901 = vst [vmem:[#allocation2 + $0xa0] sm:$0xff] %v869_v14  ;;  %v856_v19 = vadd.f32 %v1259_v15, %v471_v11  ;;  %v872_v20 = vadd.f32 %v1275_v16, %v487_v12  ;;  %908 = sbr.rel (%p1200_p13) target bundleno = 358 (0x166), region = 81 }
 0x14d   : > { %v765_v21 = vpop.f32.mrf.mxu0  ;;  %v829_v22 = vpop.f32.mrf.mxu1 }
 0x14e   : > { %888 = vst [vmem:[#allocation2 + $0x78] sm:$0xff] %v856_v19  ;;  %904 = vst [vmem:[#allocation2 + $0x98] sm:$0xff] %v872_v20  ;;  %v854_v23 = vadd.f32 %v765_v21, %v469_v17  ;;  %v870_v24 = vadd.f32 %v829_v22, %v485_v18 }
 0x150   : > { %886 = vst [vmem:[#allocation2 + $0xf0] sm:$0xff] %v854_v23  ;;  %902 = vst [vmem:[#allocation2 + $0xf8] sm:$0xff] %v870_v24 }
 0x151   : > { %v909_v25 = vld [vmem:[#allocation2 + $0xb0] sm:$0xff]  ;;  %v1625_v26 = vld [vmem:[%s1714_s2] ss:$0 sm:$0xff]  ;;  %v911_v30 = vld [vmem:[#allocation2 + $0xd8] sm:$0xff] }
 0x152   : > { %v910_v27 = vld [vmem:[#allocation2] sm:$0xff]  ;;  %v948_v28 = vadd.f32 %v1625_v26, %v909_v25  ;;  %v912_v31 = vld [vmem:[#allocation2 + $0x18] sm:$0xff]  ;;  %v913_v32 = vld [vmem:[#allocation2 + $0x50] sm:$0xff]  ;;  %v950_v33 = vadd.f32 %v1625_v26, %v911_v30 }
 0x153   : > { %v949_v29 = vadd.f32 %v1625_v26, %v910_v27  ;;  %v951_v34 = vadd.f32 %v1625_v26, %v912_v31  ;;  %v952_v35 = vadd.f32 %v1625_v26, %v913_v32  ;;  %v914_v36 = vld [vmem:[#allocation2 + $0x68] sm:$0xff]  ;;  %v915_v37 = vld [vmem:[#allocation2 + $0x30] sm:$0xff]  ;;  %v917_v43 = vld [vmem:[#allocation2 + $0x80] sm:$0xff] }
 0x154   : > { %v916_v38 = vld [vmem:[#allocation2 + $0x48] sm:$0xff]  ;;  %v980_v39 = vmax.f32 %v948_v28, 0.0  ;;  %v953_v41 = vadd.f32 %v1625_v26, %v914_v36  ;;  %v954_v42 = vadd.f32 %v1625_v26, %v915_v37  ;;  %v982_v46 = vmax.f32 %v950_v33, 0.0  ;;  %v920_v50 = vld [vmem:[#allocation2 + $0xb8] sm:$0xff]  ;;  %v921_v51 = vld [vmem:[#allocation2 + $0x60] sm:$0xff] }
 0x155   : > { %v981_v40 = vmax.f32 %v949_v29, 0.0  ;;  %v918_v44 = vld [vmem:[#allocation2 + $0x88] sm:$0xff]  ;;  %v983_v47 = vmax.f32 %v951_v34, 0.0  ;;  %v984_v48 = vmax.f32 %v952_v35, 0.0  ;;  %v955_v49 = vadd.f32 %v1625_v26, %v916_v38  ;;  %v924_v58 = vld [vmem:[#allocation2 + $0x78] sm:$0xff]  ;;  %v927_v5 = vld [vmem:[#allocation2 + $0x40] sm:$0xff] }
 0x156   : > { %v919_v45 = vld [vmem:[#allocation2 + $0xe8] sm:$0xff]  ;;  %1012 = vst [vmem:[%s1592_s29] sm:$0xff] %v980_v39  ;;  %v985_v53 = vmax.f32 %v953_v41, 0.0  ;;  %v986_v54 = vmax.f32 %v954_v42, 0.0  ;;  %v956_v55 = vadd.f32 %v1625_v26, %v917_v43  ;;  %v957_v56 = vadd.f32 %v1625_v26, %v918_v44  ;;  %1014 = vst [vmem:[%s1592_s29 + $0x10] sm:$0xff] %v982_v46  ;;  %v925_v63 = vld [vmem:[#allocation2 + $0x38] sm:$0xff] }
 0x157   : > { %v922_v52 = vld [vmem:[#allocation2 + $0xf0] sm:$0xff]  ;;  %1013 = vst [vmem:[%s1592_s29 + $0x8] sm:$0xff] %v981_v40  ;;  %v923_v57 = vld [vmem:[#allocation2 + $0x8] sm:$0xff]  ;;  %1015 = vst [vmem:[%s1592_s29 + $0x18] sm:$0xff] %v983_v47  ;;  %v987_v59 = vmax.f32 %v955_v49, 0.0  ;;  %v958_v60 = vadd.f32 %v1625_v26, %v919_v45  ;;  %v959_v61 = vadd.f32 %v1625_v26, %v920_v50  ;;  %v960_v62 = vadd.f32 %v1625_v26, %v921_v51 }
 0x158   : > { %1016 = vst [vmem:[%s1592_s29 + $0x20] sm:$0xff] %v984_v48  ;;  %v926_v0 = vld [vmem:[#allocation2 + $0x58] sm:$0xff]  ;;  %1017 = vst [vmem:[%s1592_s29 + $0x28] sm:$0xff] %v985_v53  ;;  %v988_v1 = vmax.f32 %v956_v55, 0.0  ;;  %v989_v2 = vmax.f32 %v957_v56, 0.0  ;;  %v961_v3 = vadd.f32 %v1625_v26, %v922_v52  ;;  %v962_v4 = vadd.f32 %v1625_v26, %v923_v57  ;;  %v928_v6 = vld [vmem:[#allocation2 + $0xc8] sm:$0xff] }
 0x159   : > { %1018 = vst [vmem:[%s1592_s29 + $0x30] sm:$0xff] %v986_v54  ;;  %v929_v7 = vld [vmem:[#allocation2 + $0xe0] sm:$0xff]  ;;  %1019 = vst [vmem:[%s1592_s29 + $0x38] sm:$0xff] %v987_v59  ;;  %v990_v8 = vmax.f32 %v958_v60, 0.0  ;;  %v991_v9 = vmax.f32 %v959_v61, 0.0  ;;  %v992_v10 = vmax.f32 %v960_v62, 0.0  ;;  %v963_v11 = vadd.f32 %v1625_v26, %v924_v58 }
 0x15a   : > { %v930_v12 = vld [vmem:[#allocation2 + $0x90] sm:$0xff]  ;;  %1020 = vst [vmem:[%s1592_s29 + $0x40] sm:$0xff] %v988_v1  ;;  %1021 = vst [vmem:[%s1592_s29 + $0x48] sm:$0xff] %v989_v2  ;;  %v993_v14 = vmax.f32 %v961_v3, 0.0  ;;  %v994_v15 = vmax.f32 %v962_v4, 0.0  ;;  %v964_v16 = vadd.f32 %v1625_v26, %v925_v63  ;;  %v965_v17 = vadd.f32 %v1625_v26, %v926_v0  ;;  %v932_v18 = vld [vmem:[#allocation2 + $0xc0] sm:$0xff] }
 0x15b   : > { %v931_v13 = vld [vmem:[#allocation2 + $0x70] sm:$0xff]  ;;  %1022 = vst [vmem:[%s1592_s29 + $0x50] sm:$0xff] %v990_v8  ;;  %1023 = vst [vmem:[%s1592_s29 + $0x58] sm:$0xff] %v991_v9  ;;  %v995_v19 = vmax.f32 %v963_v11, 0.0  ;;  %v966_v20 = vadd.f32 %v1625_v26, %v927_v5  ;;  %v967_v21 = vadd.f32 %v1625_v26, %v928_v6  ;;  %v968_v22 = vadd.f32 %v1625_v26, %v929_v7  ;;  %v933_v23 = vld [vmem:[#allocation2 + $0xa8] sm:$0xff] }
 0x15c   : > { %1024 = vst [vmem:[%s1592_s29 + $0x60] sm:$0xff] %v992_v10  ;;  %v934_v24 = vld [vmem:[#allocation2 + $0xd0] sm:$0xff]  ;;  %1025 = vst [vmem:[%s1592_s29 + $0x68] sm:$0xff] %v993_v14  ;;  %v996_v25 = vmax.f32 %v964_v16, 0.0  ;;  %v997_v27 = vmax.f32 %v965_v17, 0.0  ;;  %v969_v28 = vadd.f32 %v1625_v26, %v930_v12  ;;  %v970_v29 = vadd.f32 %v1625_v26, %v931_v13  ;;  %v936_v31 = vld [vmem:[#allocation2 + $0x28] sm:$0xff] }
 0x15d   : > { %1026 = vst [vmem:[%s1592_s29 + $0x70] sm:$0xff] %v994_v15  ;;  %v935_v30 = vld [vmem:[#allocation2 + $0x10] sm:$0xff]  ;;  %v937_v32 = vld [vmem:[#allocation2 + $0xa0] sm:$0xff]  ;;  %1027 = vst [vmem:[%s1592_s29 + $0x78] sm:$0xff] %v995_v19  ;;  %v998_v33 = vmax.f32 %v966_v20, 0.0  ;;  %v999_v34 = vmax.f32 %v967_v21, 0.0  ;;  %v971_v36 = vadd.f32 %v1625_v26, %v932_v18  ;;  %v972_v41 = vadd.f32 %v1625_v26, %v933_v23 }
 0x15e   : > { %v1000_v35 = vmax.f32 %v968_v22, 0.0  ;;  %v938_v37 = vld [vmem:[#allocation2 + $0xf8] sm:$0xff]  ;;  %v939_v38 = vld [vmem:[#allocation2 + $0x20] sm:$0xff]  ;;  %1028 = vst [vmem:[%s1592_s29 + $0x80] sm:$0xff] %v996_v25  ;;  %1029 = vst [vmem:[%s1592_s29 + $0x88] sm:$0xff] %v997_v27  ;;  %v1001_v39 = vmax.f32 %v969_v28, 0.0  ;;  %v973_v42 = vadd.f32 %v1625_v26, %v934_v24  ;;  %v974_v45 = vadd.f32 %v1625_v26, %v935_v30 }
 0x15f   : > { %v1002_v40 = vmax.f32 %v970_v29, 0.0  ;;  %v940_v43 = vld [vmem:[#allocation2 + $0x98] sm:$0xff]  ;;  %1030 = vst [vmem:[%s1592_s29 + $0x90] sm:$0xff] %v998_v33  ;;  %1031 = vst [vmem:[%s1592_s29 + $0x98] sm:$0xff] %v999_v34  ;;  %v1003_v44 = vmax.f32 %v971_v36, 0.0  ;;  %v975_v46 = vadd.f32 %v1625_v26, %v936_v31  ;;  %v976_v47 = vadd.f32 %v1625_v26, %v937_v32 }
 0x160   : > { %1032 = vst [vmem:[%s1592_s29 + $0xa0] sm:$0xff] %v1000_v35  ;;  %1033 = vst [vmem:[%s1592_s29 + $0xa8] sm:$0xff] %v1001_v39  ;;  %v1004_v48 = vmax.f32 %v972_v41, 0.0  ;;  %v1005_v49 = vmax.f32 %v973_v42, 0.0  ;;  %v977_v50 = vadd.f32 %v1625_v26, %v938_v37  ;;  %v978_v51 = vadd.f32 %v1625_v26, %v939_v38 }
 0x161   : > { %1034 = vst [vmem:[%s1592_s29 + $0xb0] sm:$0xff] %v1002_v40  ;;  %1035 = vst [vmem:[%s1592_s29 + $0xb8] sm:$0xff] %v1003_v44  ;;  %v1006_v52 = vmax.f32 %v974_v45, 0.0  ;;  %v1007_v53 = vmax.f32 %v975_v46, 0.0  ;;  %v1008_v54 = vmax.f32 %v976_v47, 0.0  ;;  %v979_v55 = vadd.f32 %v1625_v26, %v940_v43 }
 0x162   : > { %1036 = vst [vmem:[%s1592_s29 + $0xc0] sm:$0xff] %v1004_v48  ;;  %1037 = vst [vmem:[%s1592_s29 + $0xc8] sm:$0xff] %v1005_v49  ;;  %v1009_v56 = vmax.f32 %v977_v50, 0.0  ;;  %v1010_v57 = vmax.f32 %v978_v51, 0.0 }
 0x163   : > { %1038 = vst [vmem:[%s1592_s29 + $0xd0] sm:$0xff] %v1006_v52  ;;  %1039 = vst [vmem:[%s1592_s29 + $0xd8] sm:$0xff] %v1007_v53  ;;  %v1011_v58 = vmax.f32 %v979_v55, 0.0 }
 0x164   : > { %1040 = vst [vmem:[%s1592_s29 + $0xe0] sm:$0xff] %v1008_v54  ;;  %1041 = vst [vmem:[%s1592_s29 + $0xe8] sm:$0xff] %v1009_v56 }
 0x165   : > { %1042 = vst [vmem:[%s1592_s29 + $0xf0] sm:$0xff] %v1010_v57  ;;  %1043 = vst [vmem:[%s1592_s29 + $0xf8] sm:$0xff] %v1011_v58 }
 0x166 PF: > { %s13_s18 = sadd.s32 1, %s1428_s18   ;;  %s1716_s12 = smov %s1408_s13 }
 0x167   : > { %p10_p0 = scmp.ge.s32.totalorder %s13_s18, 12   ;;  %s1717_s13 = smov %s1502_s25 }
 0x168   : > { %s1718_s14 = smov %s1420_s16  ;;  %s1719_s15 = smov %s1424_s17 }
 0x169   : > { %s1720_s16 = smov %s1723_s19  ;;  %s1721_s17 = smov %s1727_s20 }
 0x16a   :  { %12 = sbr.rel (!%p10_p0) target bundleno = 4 (0x4), region = 122 }

// kernel: transformer_forward.83
= control target key start
LH: loop header
LB: loop body
LE: loop exit
PB: predicated region body
PF: predicated region fallthrough
CT: control target
= control target key end

     0   :  { %s1451_s12 = smov 0   ;;  %s1453_s13 = smov 0   ;;  %s1712_s0 = inlined_call_operand.vmem [shape: bf16[512,2688], index: 0, kind: input, shape index: {}]   ;;  %s1713_s1 = inlined_call_operand.vmem [shape: bf16[2688,128], index: 1, kind: input, shape index: {}]   ;;  %s1714_s2 = inlined_call_operand.vmem [shape: f32[1,128], index: 2, kind: input, shape index: {}]   ;;  %s1715_s3 = inlined_call_operand.vmem [shape: f32[512,128], index: 3, kind: output, shape index: {}]  }
   0x1   :  { %s1455_s14 = smov 0   ;;  %s1457_s15 = smov 0  }
   0x2   :  { %s1459_s16 = smov 0   ;;  %s1461_s17 = smov 0  }
   0x3   :  { %s1463_s18 = smov 0  }
   0x4 LB: > { %s25_s19 = sadd.s32 1, %s1420_s16  ;;  %s32_s20 = sadd.s32 1, %s1424_s17  ;;  %s1428_s18 = sphi %s1463_s18, %s13_s18   ;;  %s1424_s17 = sphi %s1461_s17, %s1721_s17   ;;  %s1420_s16 = sphi %s1459_s16, %s1720_s16   ;;  %s1416_s15 = sphi %s1457_s15, %s1719_s15   ;;  %s1412_s14 = sphi %s1455_s14, %s1718_s14   ;;  %s1408_s13 = sphi %s1453_s13, %s1717_s13   ;;  %s1404_s12 = sphi %s1451_s12, %s1716_s12  }
   0x5   : > { %p26_p0 = scmp.ge.s32.totalorder %s25_s19, 21  ;;  %p48_p1 = scmp.ne.s32.totalorder %s1408_s13, %s1404_s12 }
   0x6   : > { %p49_p2 = scmp.eq.s32.totalorder %s1428_s18, 0  ;;  %s41_s24 = sadd.s32 1, %s1408_s13 }
   0x7   : > { %s1723_s19 = smov (%p26_p0, %s25_s19), 0  ;;  %s1725_s20 = smov (!%p26_p0, %s32_s20), %s1424_s17 }
   0x8   : > { %p50_p3 = por %p49_p2, %p48_p1  ;;  %p34_p4 = scmp.ge.s32.totalorder %s1725_s20, 2 }
   0x9   : > { %s37_s21 = ssub.s32 %s1420_s16, %s1723_s19  ;;  %p1164_p6 = scmp.ge.s32.totalorder %s1428_s18, 42 }
   0xa   : > { %s1727_s20 = smov (%p34_p4, %s1725_s20), 0 }
   0xb   : > { %s36_s22 = ssub.s32 %s1424_s17, %s1727_s20  ;;  %162 = sbr.rel (%p1164_p6) target bundleno = 44 (0x2c), region = 20 }
   0xc   : > { %s38_s23 = sor.u32 %s37_s21, %s36_s22 }
   0xd   : > { %p39_p5 = scmp.eq.s32.totalorder %s38_s23, 0 }
   0xf   : > { %s1502_s25 = scalar_select %p39_p5, %s1408_s13, %s41_s24  }
  0x10   : > { %165 = sbr.rel (!%p50_p3) target bundleno = 44 (0x2c), region = 24  ;;  %s167_s26 = sand.u32 (%p50_p3), 1, %s1408_s13  }
  0x11   : > { %s1292_s27 = smul.u32 (%p50_p3), 672, %s1424_s17  ;;  %s1165_s28 = sshll.u32 (%p50_p3), %s167_s26, 7 }
  0x12   : > { %s1516_s7 = scalar_lea.vmem (%p50_p3), [#allocation3], %s1165_s28 }
  0x13   : > { %s172_s29 = sadd.s32 (%p50_p3), %s1420_s16, %s1292_s27 }
  0x14   : > { %s1168_s30 = sshll.u32 (%p50_p3), %s172_s29, 2 }
  0x15   : > { %s1511_s6 = scalar_lea.vmem %s1712_s0, %s1168_s30 }
  0x16   : > { %v191_v0 = vld [vmem:[%s1511_s6] sm:$0xf]  ;;  %v193_v1 = vld [vmem:[%s1511_s6 + $0x54] sm:$0xf]  ;;  %v195_v2 = vld [vmem:[%s1511_s6 + $0xa8] sm:$0xf] }
  0x17   : > { %192 = vst [vmem:[%s1516_s7] sm:$0xf] %v191_v0  ;;  %194 = vst [vmem:[%s1516_s7 + $0x4] sm:$0xf] %v193_v1  ;;  %v197_v3 = vld [vmem:[%s1511_s6 + $0xfc] sm:$0xf] }
  0x18   : > { %196 = vst [vmem:[%s1516_s7 + $0x8] sm:$0xf] %v195_v2  ;;  %v199_v4 = vld [vmem:[%s1511_s6 + $0x150] sm:$0xf]  ;;  %v201_v5 = vld [vmem:[%s1511_s6 + $0x1a4] sm:$0xf] }
  0x19   : > { %198 = vst [vmem:[%s1516_s7 + $0xc] sm:$0xf] %v197_v3  ;;  %200 = vst [vmem:[%s1516_s7 + $0x10] sm:$0xf] %v199_v4  ;;  %v203_v6 = vld [vmem:[%s1511_s6 + $0x1f8] sm:$0xf] }
  0x1a   : > { %202 = vst [vmem:[%s1516_s7 + $0x14] sm:$0xf] %v201_v5  ;;  %v205_v7 = vld [vmem:[%s1511_s6 + $0x24c] sm:$0xf]  ;;  %v207_v8 = vld [vmem:[%s1511_s6 + $0x2a0] sm:$0xf] }
  0x1b   : > { %204 = vst [vmem:[%s1516_s7 + $0x18] sm:$0xf] %v203_v6  ;;  %206 = vst [vmem:[%s1516_s7 + $0x1c] sm:$0xf] %v205_v7  ;;  %v209_v9 = vld [vmem:[%s1511_s6 + $0x2f4] sm:$0xf] }
  0x1c   : > { %208 = vst [vmem:[%s1516_s7 + $0x20] sm:$0xf] %v207_v8  ;;  %v211_v10 = vld [vmem:[%s1511_s6 + $0x348] sm:$0xf]  ;;  %v213_v11 = vld [vmem:[%s1511_s6 + $0x39c] sm:$0xf] }
  0x1d   : > { %210 = vst [vmem:[%s1516_s7 + $0x24] sm:$0xf] %v209_v9  ;;  %212 = vst [vmem:[%s1516_s7 + $0x28] sm:$0xf] %v211_v10  ;;  %v215_v12 = vld [vmem:[%s1511_s6 + $0x3f0] sm:$0xf] }
  0x1e   : > { %214 = vst [vmem:[%s1516_s7 + $0x2c] sm:$0xf] %v213_v11  ;;  %v217_v13 = vld [vmem:[%s1511_s6 + $0x444] sm:$0xf]  ;;  %v219_v14 = vld [vmem:[%s1511_s6 + $0x498] sm:$0xf] }
  0x1f   : > { %216 = vst [vmem:[%s1516_s7 + $0x30] sm:$0xf] %v215_v12  ;;  %218 = vst [vmem:[%s1516_s7 + $0x34] sm:$0xf] %v217_v13  ;;  %v221_v15 = vld [vmem:[%s1511_s6 + $0x4ec] sm:$0xf] }
  0x20   : > { %220 = vst [vmem:[%s1516_s7 + $0x38] sm:$0xf] %v219_v14  ;;  %v223_v16 = vld [vmem:[%s1511_s6 + $0x540] sm:$0xf]  ;;  %v225_v17 = vld [vmem:[%s1511_s6 + $0x594] sm:$0xf] }
  0x21   : > { %222 = vst [vmem:[%s1516_s7 + $0x3c] sm:$0xf] %v221_v15  ;;  %224 = vst [vmem:[%s1516_s7 + $0x40] sm:$0xf] %v223_v16  ;;  %v227_v18 = vld [vmem:[%s1511_s6 + $0x5e8] sm:$0xf] }
  0x22   : > { %226 = vst [vmem:[%s1516_s7 + $0x44] sm:$0xf] %v225_v17  ;;  %v229_v19 = vld [vmem:[%s1511_s6 + $0x63c] sm:$0xf]  ;;  %v231_v20 = vld [vmem:[%s1511_s6 + $0x690] sm:$0xf] }
  0x23   : > { %228 = vst [vmem:[%s1516_s7 + $0x48] sm:$0xf] %v227_v18  ;;  %230 = vst [vmem:[%s1516_s7 + $0x4c] sm:$0xf] %v229_v19  ;;  %v233_v21 = vld [vmem:[%s1511_s6 + $0x6e4] sm:$0xf] }
  0x24   : > { %232 = vst [vmem:[%s1516_s7 + $0x50] sm:$0xf] %v231_v20  ;;  %v235_v22 = vld [vmem:[%s1511_s6 + $0x738] sm:$0xf]  ;;  %v237_v23 = vld [vmem:[%s1511_s6 + $0x78c] sm:$0xf] }
  0x25   : > { %234 = vst [vmem:[%s1516_s7 + $0x54] sm:$0xf] %v233_v21  ;;  %236 = vst [vmem:[%s1516_s7 + $0x58] sm:$0xf] %v235_v22  ;;  %v239_v24 = vld [vmem:[%s1511_s6 + $0x7e0] sm:$0xf] }
  0x26   : > { %238 = vst [vmem:[%s1516_s7 + $0x5c] sm:$0xf] %v237_v23  ;;  %v241_v25 = vld [vmem:[%s1511_s6 + $0x834] sm:$0xf]  ;;  %v243_v26 = vld [vmem:[%s1511_s6 + $0x888] sm:$0xf] }
  0x27   : > { %240 = vst [vmem:[%s1516_s7 + $0x60] sm:$0xf] %v239_v24  ;;  %242 = vst [vmem:[%s1516_s7 + $0x64] sm:$0xf] %v241_v25  ;;  %v245_v27 = vld [vmem:[%s1511_s6 + $0x8dc] sm:$0xf] }
  0x28   : > { %244 = vst [vmem:[%s1516_s7 + $0x68] sm:$0xf] %v243_v26  ;;  %v247_v28 = vld [vmem:[%s1511_s6 + $0x930] sm:$0xf]  ;;  %v249_v29 = vld [vmem:[%s1511_s6 + $0x984] sm:$0xf] }
  0x29   : > { %246 = vst [vmem:[%s1516_s7 + $0x6c] sm:$0xf] %v245_v27  ;;  %248 = vst [vmem:[%s1516_s7 + $0x70] sm:$0xf] %v247_v28  ;;  %v251_v30 = vld [vmem:[%s1511_s6 + $0x9d8] sm:$0xf] }
  0x2a   : > { %250 = vst [vmem:[%s1516_s7 + $0x74] sm:$0xf] %v249_v29  ;;  %v253_v31 = vld [vmem:[%s1511_s6 + $0xa2c] sm:$0xf]  ;;  %252 = vst [vmem:[%s1516_s7 + $0x78] sm:$0xf] %v251_v30 }
  0x2b   : > { %254 = vst [vmem:[%s1516_s7 + $0x7c] sm:$0xf] %v253_v31 }
  0x2c PF: > { %p1169_p7 = scmp.ge.s32.totalorder %s1428_s18, 1  ;;  %p353_p8 = scmp.lt.s32.totalorder %s1428_s18, 43 }
  0x2e   : > { %p354_p9 = pnand %p1169_p7, %p353_p8 }
  0x2f   : > { %s360_s8 = sand.u32 (!%p354_p9), 1, %s1404_s12   ;;  %s1171_s9 = sshll.u32 (!%p354_p9), %s1412_s14, 4 }
  0x30   : > { %357 = sbr.rel (%p354_p9) target bundleno = 358 (0x166), region = 69  ;;  %s1170_s10 = sshll.u32 (!%p354_p9), %s360_s8, 7 }
  0x31   : > { %p399_p10 = scmp.lt.s32.totalorder (!%p354_p9), %s1171_s9, 335  ;;  %s1173_s11 = sshll.u32 (!%p354_p9), %s1416_s15, 5 }
  0x32   : > { %p411_p11 = scmp.lt.s32.totalorder (!%p354_p9), %s1173_s11, 63  ;;  %s1594_s12 = scalar_lea.vmem (!%p354_p9), [#allocation3], %s1170_s10 }
  0x33   : > { %p1175_p12 = scmp.ne.s32.totalorder (!%p354_p9), %s1412_s14, 0 }
  0x35   : > { %s1729_s9 = smov (!%p399_p10, %s1171_s9), 335  ;;  %s1731_s11 = smov (!%p411_p11, %s1173_s11), 63 }
  0x36   : > { %s1172_s21 = sshll.u32 %s1729_s9, 2  ;;  %s1174_s26 = sshll.u32 %s1731_s11, 3 }
  0x37   : > { %s1587_s24 = scalar_lea.vmem %s1713_s1, %s1172_s21  ;;  %s1592_s29 = scalar_lea.vmem %s1715_s3, %s1174_s26 }
  0x38   : > { %423 = sbr.rel (%p1175_p12) target bundleno = 78 (0x4e), region = 77 }
  0x3d   : > { %v1430_v32 = vmov 0.0  }
  0x3e   : > { %424 = vst [vmem:[#allocation2 + $0xb0] sm:$0xff] %v1430_v32  ;;  %425 = vst [vmem:[#allocation2] sm:$0xff] %v1430_v32 }
  0x3f   : > { %426 = vst [vmem:[#allocation2 + $0xd8] sm:$0xff] %v1430_v32  ;;  %427 = vst [vmem:[#allocation2 + $0x18] sm:$0xff] %v1430_v32 }
  0x40   : > { %428 = vst [vmem:[#allocation2 + $0x50] sm:$0xff] %v1430_v32  ;;  %429 = vst [vmem:[#allocation2 + $0x68] sm:$0xff] %v1430_v32 }
  0x41   : > { %430 = vst [vmem:[#allocation2 + $0x30] sm:$0xff] %v1430_v32  ;;  %431 = vst [vmem:[#allocation2 + $0x48] sm:$0xff] %v1430_v32 }
  0x42   : > { %432 = vst [vmem:[#allocation2 + $0x80] sm:$0xff] %v1430_v32  ;;  %433 = vst [vmem:[#allocation2 + $0x88] sm:$0xff] %v1430_v32 }
  0x43   : > { %434 = vst [vmem:[#allocation2 + $0xe8] sm:$0xff] %v1430_v32  ;;  %435 = vst [vmem:[#allocation2 + $0xb8] sm:$0xff] %v1430_v32 }
  0x44   : > { %436 = vst [vmem:[#allocation2 + $0x60] sm:$0xff] %v1430_v32  ;;  %437 = vst [vmem:[#allocation2 + $0xf0] sm:$0xff] %v1430_v32 }
  0x45   : > { %438 = vst [vmem:[#allocation2 + $0x8] sm:$0xff] %v1430_v32  ;;  %439 = vst [vmem:[#allocation2 + $0x78] sm:$0xff] %v1430_v32 }
  0x46   : > { %440 = vst [vmem:[#allocation2 + $0x38] sm:$0xff] %v1430_v32  ;;  %441 = vst [vmem:[#allocation2 + $0x58] sm:$0xff] %v1430_v32 }
  0x47   : > { %442 = vst [vmem:[#allocation2 + $0x40] sm:$0xff] %v1430_v32  ;;  %443 = vst [vmem:[#allocation2 + $0xc8] sm:$0xff] %v1430_v32 }
  0x48   : > { %444 = vst [vmem:[#allocation2 + $0xe0] sm:$0xff] %v1430_v32  ;;  %445 = vst [vmem:[#allocation2 + $0x90] sm:$0xff] %v1430_v32 }
  0x49   : > { %446 = vst [vmem:[#allocation2 + $0x70] sm:$0xff] %v1430_v32  ;;  %447 = vst [vmem:[#allocation2 + $0xc0] sm:$0xff] %v1430_v32 }
  0x4a   : > { %448 = vst [vmem:[#allocation2 + $0xa8] sm:$0xff] %v1430_v32  ;;  %449 = vst [vmem:[#allocation2 + $0xd0] sm:$0xff] %v1430_v32 }
  0x4b   : > { %450 = vst [vmem:[#allocation2 + $0x10] sm:$0xff] %v1430_v32  ;;  %451 = vst [vmem:[#allocation2 + $0x28] sm:$0xff] %v1430_v32 }
  0x4c   : > { %452 = vst [vmem:[#allocation2 + $0xa0] sm:$0xff] %v1430_v32  ;;  %453 = vst [vmem:[#allocation2 + $0xf8] sm:$0xff] %v1430_v32 }
  0x4d   : > { %454 = vst [vmem:[#allocation2 + $0x20] sm:$0xff] %v1430_v32  ;;  %455 = vst [vmem:[#allocation2 + $0x98] sm:$0xff] %v1430_v32 }
  0x4e PF: > { %v1350_v33 = vld [vmem:[%s1587_s24 + $0x38] sm:$0xff]   ;;  %v1351_v34 = vld [vmem:[%s1587_s24 + $0x30] sm:$0xff]   ;;  %v1352_v35 = vld [vmem:[%s1587_s24 + $0x28] sm:$0xff]   ;;  %p1200_p13 = scmp.ne.s32.totalorder %s1412_s14, 20 }
  0x4f   : > { %1228 = vmatprep.subr.bf16.mxu0 %v1350_v33  ;;  %1276 = vmatprep.subr.bf16.mxu1 %v1350_v33  ;;  %v1353_v36 = vld [vmem:[%s1587_s24 + $0x20] sm:$0xff]   ;;  %v1354_v39 = vld [vmem:[%s1587_s24 + $0x18] sm:$0xff]   ;;  %v1355_v40 = vld [vmem:[%s1587_s24 + $0x10] sm:$0xff]  }
  0x50   : > { %1229 = vmatpush3.bf16.msra.mxu0 %v1350_v33  ;;  %1284 = vmatpush3.bf16.msra.mxu1 %v1350_v33  ;;  %v1358_v37 = vld [vmem:[%s1594_s12] sm:$0xff]   ;;  %v1356_v41 = vld [vmem:[%s1587_s24 + $0x8] sm:$0xff]   ;;  %v1362_v45 = vld [vmem:[%s1594_s12 + $0x10] sm:$0xff]  }
  0x51   : > { %1230 = vmatprep.subr.bf16.mxu0 %v1351_v34  ;;  %1277 = vmatprep.subr.bf16.mxu1 %v1351_v34  ;;  %v1359_v38 = vld [vmem:[%s1594_s12 + $0x40] sm:$0xff]   ;;  %v1360_v43 = vld [vmem:[%s1594_s12 + $0x8] sm:$0xff]   ;;  %v1363_v46 = vld [vmem:[%s1594_s12 + $0x50] sm:$0xff]  }
  0x52   : > { %1244 = vmatprep.mubr.bf16.mxu0 %v1358_v37  ;;  %1260 = vmatprep.mubr.bf16.mxu1 %v1359_v38  ;;  %v1357_v42 = vld [vmem:[%s1587_s24] sm:$0xff]   ;;  %v1361_v44 = vld [vmem:[%s1594_s12 + $0x48] sm:$0xff]   ;;  %v1364_v47 = vld [vmem:[%s1594_s12 + $0x18] sm:$0xff]  }
  0x53   : > { %v1365_v48 = vld [vmem:[%s1594_s12 + $0x58] sm:$0xff]   ;;  %v1366_v49 = vld [vmem:[%s1594_s12 + $0x20] sm:$0xff]   ;;  %v1368_v51 = vld [vmem:[%s1594_s12 + $0x28] sm:$0xff]  }
  0x54   : > { %1231 = vmatpush3.bf16.msra.mxu0 %v1351_v34  ;;  %1285 = vmatpush3.bf16.msra.mxu1 %v1351_v34  ;;  %v1367_v50 = vld [vmem:[%s1594_s12 + $0x60] sm:$0xff]   ;;  %v1369_v52 = vld [vmem:[%s1594_s12 + $0x68] sm:$0xff]   ;;  %v1370_v53 = vld [vmem:[%s1594_s12 + $0x30] sm:$0xff]  }
  0x55   : > { %1232 = vmatprep.subr.bf16.mxu0 %v1352_v35  ;;  %1278 = vmatprep.subr.bf16.mxu1 %v1352_v35  ;;  %v1371_v54 = vld [vmem:[%s1594_s12 + $0x70] sm:$0xff]   ;;  %v1372_v55 = vld [vmem:[%s1594_s12 + $0x38] sm:$0xff]   ;;  %v474_v58 = vld [vmem:[#allocation2 + $0x40] sm:$0xff] }
  0x56   : > { %v1373_v56 = vld [vmem:[%s1594_s12 + $0x78] sm:$0xff]   ;;  %v456_v61 = vld [vmem:[#allocation2 + $0xb0] sm:$0xff]  ;;  %v475_v4 = vld [vmem:[#allocation2 + $0xc8] sm:$0xff] }
  0x57   : > { %v458_v57 = vld [vmem:[#allocation2 + $0xd8] sm:$0xff]  ;;  %v457_v9 = vld [vmem:[#allocation2] sm:$0xff]  ;;  %v462_v15 = vld [vmem:[#allocation2 + $0x30] sm:$0xff] }
  0x58   : > { %1233 = vmatpush3.bf16.msra.mxu0 %v1352_v35  ;;  %1286 = vmatpush3.bf16.msra.mxu1 %v1352_v35  ;;  %v472_v62 = vld [vmem:[#allocation2 + $0x38] sm:$0xff]  ;;  %v478_v16 = vld [vmem:[#allocation2 + $0x70] sm:$0xff]  ;;  %v476_v22 = vld [vmem:[#allocation2 + $0xe0] sm:$0xff] }
  0x59   : > { %1234 = vmatprep.subr.bf16.mxu0 %v1353_v36  ;;  %1279 = vmatprep.subr.bf16.mxu1 %v1353_v36  ;;  %v459_v3 = vld [vmem:[#allocation2 + $0x18] sm:$0xff]  ;;  %v460_v21 = vld [vmem:[#allocation2 + $0x50] sm:$0xff]  ;;  %v463_v27 = vld [vmem:[#allocation2 + $0x48] sm:$0xff] }
  0x5a   : > { %v473_v10 = vld [vmem:[#allocation2 + $0x58] sm:$0xff]  ;;  %v479_v28 = vld [vmem:[#allocation2 + $0xc0] sm:$0xff]  ;;  %v461_v33 = vld [vmem:[#allocation2 + $0x68] sm:$0xff] }
  0x5b   : > { %v477_v34 = vld [vmem:[#allocation2 + $0x90] sm:$0xff] }
  0x5c   : > { %1235 = vmatpush3.bf16.msra.mxu0 %v1353_v36  ;;  %1287 = vmatpush3.bf16.msra.mxu1 %v1353_v36 }
  0x5d   : > { %1236 = vmatprep.subr.bf16.mxu0 %v1354_v39  ;;  %1280 = vmatprep.subr.bf16.mxu1 %v1354_v39 }
  0x60   : > { %1237 = vmatpush3.bf16.msra.mxu0 %v1354_v39  ;;  %1288 = vmatpush3.bf16.msra.mxu1 %v1354_v39  ;;  %v466_v39 = vld [vmem:[#allocation2 + $0xe8] sm:$0xff] }
  0x61   : > { %1238 = vmatprep.subr.bf16.mxu0 %v1355_v40  ;;  %1281 = vmatprep.subr.bf16.mxu1 %v1355_v40 }
  0x64   : > { %1239 = vmatpush3.bf16.msra.mxu0 %v1355_v40  ;;  %1289 = vmatpush3.bf16.msra.mxu1 %v1355_v40  ;;  %v482_v40 = vld [vmem:[#allocation2 + $0x10] sm:$0xff] }
  0x65   : > { %1240 = vmatprep.subr.bf16.mxu0 %v1356_v41  ;;  %1282 = vmatprep.subr.bf16.mxu1 %v1356_v41 }
  0x68   : > { %1241 = vmatpush3.bf16.msra.mxu0 %v1356_v41  ;;  %1290 = vmatpush3.bf16.msra.mxu1 %v1356_v41 }
  0x69   : > { %1242 = vmatprep.subr.bf16.mxu0 %v1357_v42  ;;  %1283 = vmatprep.subr.bf16.mxu1 %v1357_v42 }
  0x6c   : > { %1243 = vmatpush3.bf16.msra.mxu0 %v1357_v42  ;;  %1291 = vmatpush3.bf16.msra.mxu1 %v1357_v42 }
  0x6f   : > { %1245 = vmatmul.mubr.bf16.vlgmr.msra.gmra.mxu0 %v1360_v43  ;;  %1261 = vmatmul.mubr.bf16.vlgmr.msra.gmra.mxu1 %v1361_v44 }
  0x70   : > { %1248 = vmatprep.mubr.bf16.mxu0 %v1362_v45  ;;  %1264 = vmatprep.mubr.bf16.mxu1 %v1363_v46  ;;  %v464_v45 = vld [vmem:[#allocation2 + $0x80] sm:$0xff]  ;;  %v480_v46 = vld [vmem:[#allocation2 + $0xa8] sm:$0xff] }
  0x77   : > { %1249 = vmatmul.mubr.bf16.gmra.mxu0 %v1364_v47  ;;  %1265 = vmatmul.mubr.bf16.gmra.mxu1 %v1365_v48 }
  0x78   : > { %1252 = vmatprep.mubr.bf16.mxu0 %v1366_v49  ;;  %1268 = vmatprep.mubr.bf16.mxu1 %v1367_v50 }
  0x7f   : > { %1253 = vmatmul.mubr.bf16.gmra.mxu0 %v1368_v51  ;;  %1269 = vmatmul.mubr.bf16.gmra.mxu1 %v1369_v52  ;;  %v467_v51 = vld [vmem:[#allocation2 + $0xb8] sm:$0xff]  ;;  %v483_v52 = vld [vmem:[#allocation2 + $0x28] sm:$0xff] }
  0x80   : > { %1256 = vmatprep.mubr.bf16.mxu0 %v1370_v53  ;;  %1272 = vmatprep.mubr.bf16.mxu1 %v1371_v54 }
  0x87   : > { %1257 = vmatmul.mubr.bf16.gmra.mxu0 %v1372_v55  ;;  %1273 = vmatmul.mubr.bf16.gmra.mxu1 %v1373_v56 }
 0x12f   : > { %v1246_v59 = vpop.f32.mrf.mxu0  ;;  %v1262_v60 = vpop.f32.mrf.mxu1 }
 0x130   : > { %v843_v63 = vadd.f32 %v1246_v59, %v458_v57  ;;  %v859_v0 = vadd.f32 %v1262_v60, %v474_v58  ;;  %v465_v57 = vld [vmem:[#allocation2 + $0x88] sm:$0xff]  ;;  %v481_v58 = vld [vmem:[#allocation2 + $0xd0] sm:$0xff] }
 0x131   : > { %v714_v1 = vpop.f32.mrf.mxu0  ;;  %v778_v2 = vpop.f32.mrf.mxu1 }
 0x132   : > { %875 = vst [vmem:[#allocation2 + $0xd8] sm:$0xff] %v843_v63  ;;  %891 = vst [vmem:[#allocation2 + $0x40] sm:$0xff] %v859_v0  ;;  %v841_v5 = vadd.f32 %v714_v1, %v456_v61  ;;  %v857_v6 = vadd.f32 %v778_v2, %v472_v62  ;;  %v470_v63 = vld [vmem:[#allocation2 + $0x8] sm:$0xff]  ;;  %v486_v0 = vld [vmem:[#allocation2 + $0x20] sm:$0xff] }
 0x133   : > { %v1247_v7 = vpop.f32.mrf.mxu0  ;;  %v1263_v8 = vpop.f32.mrf.mxu1 }
 0x134   : > { %873 = vst [vmem:[#allocation2 + $0xb0] sm:$0xff] %v841_v5  ;;  %889 = vst [vmem:[#allocation2 + $0x38] sm:$0xff] %v857_v6  ;;  %v844_v11 = vadd.f32 %v1247_v7, %v459_v3  ;;  %v860_v12 = vadd.f32 %v1263_v8, %v475_v4  ;;  %v468_v5 = vld [vmem:[#allocation2 + $0x60] sm:$0xff] }
 0x135   : > { %v717_v13 = vpop.f32.mrf.mxu0  ;;  %v781_v14 = vpop.f32.mrf.mxu1  ;;  %v484_v6 = vld [vmem:[#allocation2 + $0xa0] sm:$0xff] }
 0x136   : > { %876 = vst [vmem:[#allocation2 + $0x18] sm:$0xff] %v844_v11  ;;  %892 = vst [vmem:[#allocation2 + $0xc8] sm:$0xff] %v860_v12  ;;  %v842_v17 = vadd.f32 %v717_v13, %v457_v9  ;;  %v858_v18 = vadd.f32 %v781_v14, %v473_v10  ;;  %v471_v11 = vld [vmem:[#allocation2 + $0x78] sm:$0xff] }
 0x137   : > { %v1250_v19 = vpop.f32.mrf.mxu0  ;;  %v1266_v20 = vpop.f32.mrf.mxu1  ;;  %v487_v12 = vld [vmem:[#allocation2 + $0x98] sm:$0xff] }
 0x138   : > { %874 = vst [vmem:[#allocation2] sm:$0xff] %v842_v17  ;;  %890 = vst [vmem:[#allocation2 + $0x58] sm:$0xff] %v858_v18  ;;  %v847_v23 = vadd.f32 %v1250_v19, %v462_v15  ;;  %v863_v24 = vadd.f32 %v1266_v20, %v478_v16  ;;  %v469_v17 = vld [vmem:[#allocation2 + $0xf0] sm:$0xff]  ;;  %v485_v18 = vld [vmem:[#allocation2 + $0xf8] sm:$0xff] }
 0x139   : > { %v730_v25 = vpop.f32.mrf.mxu0  ;;  %v794_v26 = vpop.f32.mrf.mxu1 }
 0x13a   : > { %879 = vst [vmem:[#allocation2 + $0x30] sm:$0xff] %v847_v23  ;;  %895 = vst [vmem:[#allocation2 + $0x70] sm:$0xff] %v863_v24  ;;  %v845_v29 = vadd.f32 %v730_v25, %v460_v21  ;;  %v861_v30 = vadd.f32 %v794_v26, %v476_v22 }
 0x13b   : > { %v1251_v31 = vpop.f32.mrf.mxu0  ;;  %v1267_v32 = vpop.f32.mrf.mxu1 }
 0x13c   : > { %877 = vst [vmem:[#allocation2 + $0x50] sm:$0xff] %v845_v29  ;;  %893 = vst [vmem:[#allocation2 + $0xe0] sm:$0xff] %v861_v30  ;;  %v848_v35 = vadd.f32 %v1251_v31, %v463_v27  ;;  %v864_v36 = vadd.f32 %v1267_v32, %v479_v28 }
 0x13d   : > { %v733_v37 = vpop.f32.mrf.mxu0  ;;  %v797_v38 = vpop.f32.mrf.mxu1 }
 0x13e   : > { %880 = vst [vmem:[#allocation2 + $0x48] sm:$0xff] %v848_v35  ;;  %896 = vst [vmem:[#allocation2 + $0xc0] sm:$0xff] %v864_v36  ;;  %v846_v41 = vadd.f32 %v733_v37, %v461_v33  ;;  %v862_v42 = vadd.f32 %v797_v38, %v477_v34 }
 0x13f   : > { %v1254_v43 = vpop.f32.mrf.mxu0  ;;  %v1270_v44 = vpop.f32.mrf.mxu1 }
 0x140   : > { %878 = vst [vmem:[#allocation2 + $0x68] sm:$0xff] %v846_v41  ;;  %894 = vst [vmem:[#allocation2 + $0x90] sm:$0xff] %v862_v42  ;;  %v851_v47 = vadd.f32 %v1254_v43, %v466_v39  ;;  %v867_v48 = vadd.f32 %v1270_v44, %v482_v40 }
 0x141   : > { %v746_v49 = vpop.f32.mrf.mxu0  ;;  %v810_v50 = vpop.f32.mrf.mxu1 }
 0x142   : > { %883 = vst [vmem:[#allocation2 + $0xe8] sm:$0xff] %v851_v47  ;;  %899 = vst [vmem:[#allocation2 + $0x10] sm:$0xff] %v867_v48  ;;  %v849_v53 = vadd.f32 %v746_v49, %v464_v45  ;;  %v865_v54 = vadd.f32 %v810_v50, %v480_v46 }
 0x143   : > { %v1255_v55 = vpop.f32.mrf.mxu0  ;;  %v1271_v56 = vpop.f32.mrf.mxu1 }
 0x144   : > { %881 = vst [vmem:[#allocation2 + $0x80] sm:$0xff] %v849_v53  ;;  %897 = vst [vmem:[#allocation2 + $0xa8] sm:$0xff] %v865_v54  ;;  %v852_v59 = vadd.f32 %v1255_v55, %v467_v51  ;;  %v868_v60 = vadd.f32 %v1271_v56, %v483_v52 }
 0x145   : > { %v749_v61 = vpop.f32.mrf.mxu0  ;;  %v813_v62 = vpop.f32.mrf.mxu1 }
 0x146   : > { %884 = vst [vmem:[#allocation2 + $0xb8] sm:$0xff] %v852_v59  ;;  %900 = vst [vmem:[#allocation2 + $0x28] sm:$0xff] %v868_v60  ;;  %v850_v1 = vadd.f32 %v749_v61, %v465_v57  ;;  %v866_v2 = vadd.f32 %v813_v62, %v481_v58 }
 0x147   : > { %v1258_v3 = vpop.f32.mrf.mxu0  ;;  %v1274_v4 = vpop.f32.mrf.mxu1 }
 0x148   : > { %882 = vst [vmem:[#allocation2 + $0x88] sm:$0xff] %v850_v1  ;;  %898 = vst [vmem:[#allocation2 + $0xd0] sm:$0xff] %v866_v2  ;;  %v855_v7 = vadd.f32 %v1258_v3, %v470_v63  ;;  %v871_v8 = vadd.f32 %v1274_v4, %v486_v0 }
 0x149   : > { %v762_v9 = vpop.f32.mrf.mxu0  ;;  %v826_v10 = vpop.f32.mrf.mxu1 }
 0x14a   : > { %887 = vst [vmem:[#allocation2 + $0x8] sm:$0xff] %v855_v7  ;;  %903 = vst [vmem:[#allocation2 + $0x20] sm:$0xff] %v871_v8  ;;  %v853_v13 = vadd.f32 %v762_v9, %v468_v5  ;;  %v869_v14 = vadd.f32 %v826_v10, %v484_v6 }
 0x14b   : > { %v1259_v15 = vpop.f32.mrf.mxu0  ;;  %v1275_v16 = vpop.f32.mrf.mxu1 }
 0x14c   : > { %885 = vst [vmem:[#allocation2 + $0x60] sm:$0xff] %v853_v13  ;;  %901 = vst [vmem:[#allocation2 + $0xa0] sm:$0xff] %v869_v14  ;;  %v856_v19 = vadd.f32 %v1259_v15, %v471_v11  ;;  %v872_v20 = vadd.f32 %v1275_v16, %v487_v12  ;;  %908 = sbr.rel (%p1200_p13) target bundleno = 358 (0x166), region = 81 }
 0x14d   : > { %v765_v21 = vpop.f32.mrf.mxu0  ;;  %v829_v22 = vpop.f32.mrf.mxu1 }
 0x14e   : > { %888 = vst [vmem:[#allocation2 + $0x78] sm:$0xff] %v856_v19  ;;  %904 = vst [vmem:[#allocation2 + $0x98] sm:$0xff] %v872_v20  ;;  %v854_v23 = vadd.f32 %v765_v21, %v469_v17  ;;  %v870_v24 = vadd.f32 %v829_v22, %v485_v18 }
 0x150   : > { %886 = vst [vmem:[#allocation2 + $0xf0] sm:$0xff] %v854_v23  ;;  %902 = vst [vmem:[#allocation2 + $0xf8] sm:$0xff] %v870_v24 }
 0x151   : > { %v909_v25 = vld [vmem:[#allocation2 + $0xb0] sm:$0xff]  ;;  %v1625_v26 = vld [vmem:[%s1714_s2] ss:$0 sm:$0xff]  ;;  %v911_v30 = vld [vmem:[#allocation2 + $0xd8] sm:$0xff] }
 0x152   : > { %v910_v27 = vld [vmem:[#allocation2] sm:$0xff]  ;;  %v948_v28 = vadd.f32 %v1625_v26, %v909_v25  ;;  %v912_v31 = vld [vmem:[#allocation2 + $0x18] sm:$0xff]  ;;  %v913_v32 = vld [vmem:[#allocation2 + $0x50] sm:$0xff]  ;;  %v950_v33 = vadd.f32 %v1625_v26, %v911_v30 }
 0x153   : > { %v949_v29 = vadd.f32 %v1625_v26, %v910_v27  ;;  %v951_v34 = vadd.f32 %v1625_v26, %v912_v31  ;;  %v952_v35 = vadd.f32 %v1625_v26, %v913_v32  ;;  %v914_v36 = vld [vmem:[#allocation2 + $0x68] sm:$0xff]  ;;  %v915_v37 = vld [vmem:[#allocation2 + $0x30] sm:$0xff]  ;;  %v917_v43 = vld [vmem:[#allocation2 + $0x80] sm:$0xff] }
 0x154   : > { %v916_v38 = vld [vmem:[#allocation2 + $0x48] sm:$0xff]  ;;  %v980_v39 = vmax.f32 %v948_v28, 0.0  ;;  %v953_v41 = vadd.f32 %v1625_v26, %v914_v36  ;;  %v954_v42 = vadd.f32 %v1625_v26, %v915_v37  ;;  %v982_v46 = vmax.f32 %v950_v33, 0.0  ;;  %v920_v50 = vld [vmem:[#allocation2 + $0xb8] sm:$0xff]  ;;  %v921_v51 = vld [vmem:[#allocation2 + $0x60] sm:$0xff] }
 0x155   : > { %v981_v40 = vmax.f32 %v949_v29, 0.0  ;;  %v918_v44 = vld [vmem:[#allocation2 + $0x88] sm:$0xff]  ;;  %v983_v47 = vmax.f32 %v951_v34, 0.0  ;;  %v984_v48 = vmax.f32 %v952_v35, 0.0  ;;  %v955_v49 = vadd.f32 %v1625_v26, %v916_v38  ;;  %v924_v58 = vld [vmem:[#allocation2 + $0x78] sm:$0xff]  ;;  %v927_v5 = vld [vmem:[#allocation2 + $0x40] sm:$0xff] }
 0x156   : > { %v919_v45 = vld [vmem:[#allocation2 + $0xe8] sm:$0xff]  ;;  %1012 = vst [vmem:[%s1592_s29] sm:$0xff] %v980_v39  ;;  %v985_v53 = vmax.f32 %v953_v41, 0.0  ;;  %v986_v54 = vmax.f32 %v954_v42, 0.0  ;;  %v956_v55 = vadd.f32 %v1625_v26, %v917_v43  ;;  %v957_v56 = vadd.f32 %v1625_v26, %v918_v44  ;;  %1014 = vst [vmem:[%s1592_s29 + $0x10] sm:$0xff] %v982_v46  ;;  %v925_v63 = vld [vmem:[#allocation2 + $0x38] sm:$0xff] }
 0x157   : > { %v922_v52 = vld [vmem:[#allocation2 + $0xf0] sm:$0xff]  ;;  %1013 = vst [vmem:[%s1592_s29 + $0x8] sm:$0xff] %v981_v40  ;;  %v923_v57 = vld [vmem:[#allocation2 + $0x8] sm:$0xff]  ;;  %1015 = vst [vmem:[%s1592_s29 + $0x18] sm:$0xff] %v983_v47  ;;  %v987_v59 = vmax.f32 %v955_v49, 0.0  ;;  %v958_v60 = vadd.f32 %v1625_v26, %v919_v45  ;;  %v959_v61 = vadd.f32 %v1625_v26, %v920_v50  ;;  %v960_v62 = vadd.f32 %v1625_v26, %v921_v51 }
 0x158   : > { %1016 = vst [vmem:[%s1592_s29 + $0x20] sm:$0xff] %v984_v48  ;;  %v926_v0 = vld [vmem:[#allocation2 + $0x58] sm:$0xff]  ;;  %1017 = vst [vmem:[%s1592_s29 + $0x28] sm:$0xff] %v985_v53  ;;  %v988_v1 = vmax.f32 %v956_v55, 0.0  ;;  %v989_v2 = vmax.f32 %v957_v56, 0.0  ;;  %v961_v3 = vadd.f32 %v1625_v26, %v922_v52  ;;  %v962_v4 = vadd.f32 %v1625_v26, %v923_v57  ;;  %v928_v6 = vld [vmem:[#allocation2 + $0xc8] sm:$0xff] }
 0x159   : > { %1018 = vst [vmem:[%s1592_s29 + $0x30] sm:$0xff] %v986_v54  ;;  %v929_v7 = vld [vmem:[#allocation2 + $0xe0] sm:$0xff]  ;;  %1019 = vst [vmem:[%s1592_s29 + $0x38] sm:$0xff] %v987_v59  ;;  %v990_v8 = vmax.f32 %v958_v60, 0.0  ;;  %v991_v9 = vmax.f32 %v959_v61, 0.0  ;;  %v992_v10 = vmax.f32 %v960_v62, 0.0  ;;  %v963_v11 = vadd.f32 %v1625_v26, %v924_v58 }
 0x15a   : > { %v930_v12 = vld [vmem:[#allocation2 + $0x90] sm:$0xff]  ;;  %1020 = vst [vmem:[%s1592_s29 + $0x40] sm:$0xff] %v988_v1  ;;  %1021 = vst [vmem:[%s1592_s29 + $0x48] sm:$0xff] %v989_v2  ;;  %v993_v14 = vmax.f32 %v961_v3, 0.0  ;;  %v994_v15 = vmax.f32 %v962_v4, 0.0  ;;  %v964_v16 = vadd.f32 %v1625_v26, %v925_v63  ;;  %v965_v17 = vadd.f32 %v1625_v26, %v926_v0  ;;  %v932_v18 = vld [vmem:[#allocation2 + $0xc0] sm:$0xff] }
 0x15b   : > { %v931_v13 = vld [vmem:[#allocation2 + $0x70] sm:$0xff]  ;;  %1022 = vst [vmem:[%s1592_s29 + $0x50] sm:$0xff] %v990_v8  ;;  %1023 = vst [vmem:[%s1592_s29 + $0x58] sm:$0xff] %v991_v9  ;;  %v995_v19 = vmax.f32 %v963_v11, 0.0  ;;  %v966_v20 = vadd.f32 %v1625_v26, %v927_v5  ;;  %v967_v21 = vadd.f32 %v1625_v26, %v928_v6  ;;  %v968_v22 = vadd.f32 %v1625_v26, %v929_v7  ;;  %v933_v23 = vld [vmem:[#allocation2 + $0xa8] sm:$0xff] }
 0x15c   : > { %1024 = vst [vmem:[%s1592_s29 + $0x60] sm:$0xff] %v992_v10  ;;  %v934_v24 = vld [vmem:[#allocation2 + $0xd0] sm:$0xff]  ;;  %1025 = vst [vmem:[%s1592_s29 + $0x68] sm:$0xff] %v993_v14  ;;  %v996_v25 = vmax.f32 %v964_v16, 0.0  ;;  %v997_v27 = vmax.f32 %v965_v17, 0.0  ;;  %v969_v28 = vadd.f32 %v1625_v26, %v930_v12  ;;  %v970_v29 = vadd.f32 %v1625_v26, %v931_v13  ;;  %v936_v31 = vld [vmem:[#allocation2 + $0x28] sm:$0xff] }
 0x15d   : > { %1026 = vst [vmem:[%s1592_s29 + $0x70] sm:$0xff] %v994_v15  ;;  %v935_v30 = vld [vmem:[#allocation2 + $0x10] sm:$0xff]  ;;  %v937_v32 = vld [vmem:[#allocation2 + $0xa0] sm:$0xff]  ;;  %1027 = vst [vmem:[%s1592_s29 + $0x78] sm:$0xff] %v995_v19  ;;  %v998_v33 = vmax.f32 %v966_v20, 0.0  ;;  %v999_v34 = vmax.f32 %v967_v21, 0.0  ;;  %v971_v36 = vadd.f32 %v1625_v26, %v932_v18  ;;  %v972_v41 = vadd.f32 %v1625_v26, %v933_v23 }
 0x15e   : > { %v1000_v35 = vmax.f32 %v968_v22, 0.0  ;;  %v938_v37 = vld [vmem:[#allocation2 + $0xf8] sm:$0xff]  ;;  %v939_v38 = vld [vmem:[#allocation2 + $0x20] sm:$0xff]  ;;  %1028 = vst [vmem:[%s1592_s29 + $0x80] sm:$0xff] %v996_v25  ;;  %1029 = vst [vmem:[%s1592_s29 + $0x88] sm:$0xff] %v997_v27  ;;  %v1001_v39 = vmax.f32 %v969_v28, 0.0  ;;  %v973_v42 = vadd.f32 %v1625_v26, %v934_v24  ;;  %v974_v45 = vadd.f32 %v1625_v26, %v935_v30 }
 0x15f   : > { %v1002_v40 = vmax.f32 %v970_v29, 0.0  ;;  %v940_v43 = vld [vmem:[#allocation2 + $0x98] sm:$0xff]  ;;  %1030 = vst [vmem:[%s1592_s29 + $0x90] sm:$0xff] %v998_v33  ;;  %1031 = vst [vmem:[%s1592_s29 + $0x98] sm:$0xff] %v999_v34  ;;  %v1003_v44 = vmax.f32 %v971_v36, 0.0  ;;  %v975_v46 = vadd.f32 %v1625_v26, %v936_v31  ;;  %v976_v47 = vadd.f32 %v1625_v26, %v937_v32 }
 0x160   : > { %1032 = vst [vmem:[%s1592_s29 + $0xa0] sm:$0xff] %v1000_v35  ;;  %1033 = vst [vmem:[%s1592_s29 + $0xa8] sm:$0xff] %v1001_v39  ;;  %v1004_v48 = vmax.f32 %v972_v41, 0.0  ;;  %v1005_v49 = vmax.f32 %v973_v42, 0.0  ;;  %v977_v50 = vadd.f32 %v1625_v26, %v938_v37  ;;  %v978_v51 = vadd.f32 %v1625_v26, %v939_v38 }
 0x161   : > { %1034 = vst [vmem:[%s1592_s29 + $0xb0] sm:$0xff] %v1002_v40  ;;  %1035 = vst [vmem:[%s1592_s29 + $0xb8] sm:$0xff] %v1003_v44  ;;  %v1006_v52 = vmax.f32 %v974_v45, 0.0  ;;  %v1007_v53 = vmax.f32 %v975_v46, 0.0  ;;  %v1008_v54 = vmax.f32 %v976_v47, 0.0  ;;  %v979_v55 = vadd.f32 %v1625_v26, %v940_v43 }
 0x162   : > { %1036 = vst [vmem:[%s1592_s29 + $0xc0] sm:$0xff] %v1004_v48  ;;  %1037 = vst [vmem:[%s1592_s29 + $0xc8] sm:$0xff] %v1005_v49  ;;  %v1009_v56 = vmax.f32 %v977_v50, 0.0  ;;  %v1010_v57 = vmax.f32 %v978_v51, 0.0 }
 0x163   : > { %1038 = vst [vmem:[%s1592_s29 + $0xd0] sm:$0xff] %v1006_v52  ;;  %1039 = vst [vmem:[%s1592_s29 + $0xd8] sm:$0xff] %v1007_v53  ;;  %v1011_v58 = vmax.f32 %v979_v55, 0.0 }
 0x164   : > { %1040 = vst [vmem:[%s1592_s29 + $0xe0] sm:$0xff] %v1008_v54  ;;  %1041 = vst [vmem:[%s1592_s29 + $0xe8] sm:$0xff] %v1009_v56 }
 0x165   : > { %1042 = vst [vmem:[%s1592_s29 + $0xf0] sm:$0xff] %v1010_v57  ;;  %1043 = vst [vmem:[%s1592_s29 + $0xf8] sm:$0xff] %v1011_v58 }
 0x166 PF: > { %s13_s18 = sadd.s32 1, %s1428_s18   ;;  %s1716_s12 = smov %s1408_s13 }
 0x167   : > { %p10_p0 = scmp.ge.s32.totalorder %s13_s18, 44   ;;  %s1717_s13 = smov %s1502_s25 }
 0x168   : > { %s1718_s14 = smov %s1420_s16  ;;  %s1719_s15 = smov %s1424_s17 }
 0x169   : > { %s1720_s16 = smov %s1723_s19  ;;  %s1721_s17 = smov %s1727_s20 }
 0x16a   :  { %12 = sbr.rel (!%p10_p0) target bundleno = 4 (0x4), region = 122 }

</bundles_post_ra>
